<compile_context>
chip_gen: v7x
topology: tpu7x:2x2x1
jax: 0.10.0
libtpu: 0.0.40
codegen_flags: <defaults>
</compile_context>

<pallas_src>
import functools
import math

import numpy as np
import jax
import jax.numpy as jnp
from jax.experimental import pallas as pl
from jax.experimental.pallas import tpu as pltpu

_F32 = jnp.float32


def _leaky(x, slope):
    # valid for 0 < slope < 1; single VALU max instead of compare+select
    return jnp.maximum(x, slope * x)


# --------------------------- in-kernel building blocks ---------------------------

def _gat_multi(x, adj_sl, ew_sl, w, alrep, arrep, b, tile, sumblk, repblk,
               expand, headmask):
    """WeightedGATCov (heads>1, concat, aggr='add') + outer leaky_relu(0.01).

    All head bookkeeping is expressed as 2D block matmuls against host-precomputed
    scatter/replication matrices; score/alpha are laid out lane-dense as (N, H*N).
    """
    n = x.shape[0]
    h2 = jnp.dot(x, w, preferred_element_type=_F32)                  # (N, H*C)
    ai_b = jnp.dot(h2, alrep, preferred_element_type=_F32)           # (N, H*N)  a_i per head, bcast over j
    aj_full = jnp.dot(h2, arrep, preferred_element_type=_F32)        # (N, H*N)
    ones_row = jnp.ones((1, n), _F32)
    aj_b = jnp.dot(ones_row, aj_full * tile,
                   preferred_element_type=_F32)                      # (1, H*N)  a_j per head
    score = _leaky(ai_b + aj_b, 0.2)                                 # (N, H*N)
    m = jnp.max(score, axis=1, keepdims=True)                        # unmasked row max (exact; cancels)
    adj_rep = jnp.dot(adj_sl, tile, preferred_element_type=_F32)     # adjacency replicated per head
    e = jnp.exp(score - m) * adj_rep                                 # mask folded into multiply
    denom = jnp.maximum(jnp.dot(e, sumblk, preferred_element_type=_F32), 1e-30)  # (N, H)
    inv_b = jnp.dot(pl.reciprocal(denom), repblk,
                    preferred_element_type=_F32)                     # (N, H*N)
    ew_rep = jnp.dot(ew_sl, tile, preferred_element_type=_F32)
    alpha = e * inv_b * ew_rep                                       # softmax * edge_weight
    bd = jnp.dot(expand, h2, preferred_element_type=_F32) * headmask # (H*N, H*C) block-diag h3
    out = jnp.dot(alpha, bd, preferred_element_type=_F32) + b        # aggregation + head concat
    return _leaky(out, 0.01)


def _gat_single(x, adj_sl, w, al, ar, b):
    """WeightedGATCov with heads=1 (edge_weight=None) + outer leaky_relu(0.01)."""
    h2 = jnp.dot(x, w, preferred_element_type=_F32)                  # (N, C)
    a_i = jnp.dot(h2, al, preferred_element_type=_F32)               # (N, 1)
    a_j = jax.lax.dot_general(ar, h2, (((0,), (1,)), ((), ())),
                              preferred_element_type=_F32)           # (1, N)
    score = _leaky(a_i + a_j, 0.2)                                   # (N, N)
    m = jnp.max(score, axis=1, keepdims=True)
    e = jnp.exp(score - m) * adj_sl
    denom = jnp.maximum(jnp.sum(e, axis=1, keepdims=True), 1e-30)
    alpha = e * pl.reciprocal(denom)
    out = jnp.dot(alpha, h2, preferred_element_type=_F32) + b
    return _leaky(out, 0.01)


def _bn_nodes(h, pos_avg):
    """BatchNorm1d over node positions of h.view(G, L, F): batch stats over
    (graphs, features) per position, applied via the host-precomputed (N,N)
    position-averaging matrix pos_avg."""
    row_mean = jnp.mean(h, axis=1, keepdims=True)                    # (N, 1)
    mean_rows = jnp.dot(pos_avg, row_mean, preferred_element_type=_F32)
    d = h - mean_rows
    row_msq = jnp.mean(d * d, axis=1, keepdims=True)
    var_rows = jnp.dot(pos_avg, row_msq, preferred_element_type=_F32)  # biased batch var
    # TODO(synk): affine gamma/beta and running-stat updates of BatchNorm1d omitted
    # (init values gamma=1, beta=0; training-mode batch statistics).
    return d * jax.lax.rsqrt(var_rows + 1e-5)


def _topk_pool(h, adj, p_hat, strict_g, tie_lt, trank, trank_t, *, l):
    """TopKPooling(ratio=0.5, nonlinearity=tanh) applied as one-hot permutation
    matmuls (P@h, P@adj@P^T).  Rank scaffolds (trank / trank_t) and same-graph
    masks are host-precomputed; p_hat is already L2-normalized in the wrapper."""
    n = h.shape[0]
    s = jnp.tanh(jnp.dot(h, p_hat, preferred_element_type=_F32))     # (N, 1)  score
    s_row = jnp.tanh(jax.lax.dot_general(p_hat, h, (((0,), (1,)), ((), ())),
                                         preferred_element_type=_F32))  # (1, N)
    # better[j, i] = 1 iff node j ranks strictly before node i within its graph.
    # strict_g has a zero diagonal so the self comparison never contributes.
    better = (jnp.where(s > s_row, strict_g, 0.0)
              + jnp.where(s == s_row, tie_lt, 0.0))                  # (N, N)
    ones_row = jnp.ones((1, n), _F32)
    ones_col = jnp.ones((n, 1), _F32)
    rank_row = jnp.dot(ones_row, better, preferred_element_type=_F32)          # (1, N)
    rank_col = (l - 1.0) - jnp.dot(better, ones_col, preferred_element_type=_F32)  # (N, 1)
    perm = jnp.where(rank_row == trank, 1.0, 0.0)                    # (NN, N)
    perm_t = jnp.where(rank_col == trank_t, 1.0, 0.0)                # (N, NN)
    gate = jnp.dot(perm, s, preferred_element_type=_F32)             # score of kept nodes
    new_h = jnp.dot(perm, h, preferred_element_type=_F32) * gate
    new_adj = jnp.dot(jnp.dot(perm, adj, preferred_element_type=_F32), perm_t,
                      preferred_element_type=_F32)                   # adj[perm][:, perm]
    return new_h, new_adj


def _readout(h, gmask, gpool, tilefeat, posmask, fc1w, fc1b, fc2w, fc2b):
    """h.view(G, -1); (x - mean) / (unbiased var + 1e-10); fc1 + leaky_relu; fc2."""
    n, f = h.shape
    g = gpool.shape[0]
    l = n // g
    d_tot = l * f
    row_mean = jnp.mean(h, axis=1, keepdims=True)
    mean_rows = jnp.dot(gmask, row_mean, preferred_element_type=_F32) * (1.0 / l)
    d = h - mean_rows
    row_ss = jnp.sum(d * d, axis=1, keepdims=True)
    var_rows = jnp.dot(gmask, row_ss, preferred_element_type=_F32) * (1.0 / (d_tot - 1))
    hn = d / (var_rows + 1e-10)        # NOTE: reference divides by variance (not std)
    # fc1 on per-graph flattened vectors: tile features along lanes, mask by node
    # position, one (N, L*F) x (L*F, 32) matmul, then per-graph row pooling.
    contrib = jnp.dot(jnp.dot(hn, tilefeat, preferred_element_type=_F32) * posmask,
                      fc1w, preferred_element_type=_F32)             # (N, 32)
    z = _leaky(jnp.dot(gpool, contrib, preferred_element_type=_F32) + fc1b, 0.01)
    # TODO(synk): F.dropout(p=0.5, training) is stochastic; treated as identity (eval).
    return jnp.dot(z, fc2w, preferred_element_type=_F32) + fc2b


# --------------------------------- fused kernel ----------------------------------

def _gatnet_kernel(
        x_ref, adj_ref, ew_ref,
        w1_ref, alrep1_ref, arrep1_ref, b1_ref, tile1_ref, sumblk1_ref, repblk1_ref,
        expand1_ref, headmask1_ref,
        posavg1_ref,
        p1_ref, sg1_ref, tielt1_ref, trank1_ref, trankt1_ref,
        w2_ref, al2_ref, ar2_ref, b2_ref,
        posavg2_ref,
        p2_ref, sg2_ref, tielt2_ref, trank2_ref, trankt2_ref,
        w3_ref, al3_ref, ar3_ref, b3_ref,
        posavg3_ref,
        p3_ref, sg3_ref, tielt3_ref, trank3_ref, trankt3_ref,
        gmask_ref, gpool_ref, tilefeat_ref, posmask_ref,
        fc1w_ref, fc1b_ref, fc2w_ref, fc2b_ref,
        o_ref, *, stage_l):
    l0, l1, l2 = stage_l
    adj = adj_ref[...]                 # adjacency WITH self loops (prepared on host)

    # block 1: conv1(heads=5, out=10) + leaky + bn1 + pool1 (uses edge_attr)
    h = _gat_multi(x_ref[...], adj, ew_ref[...], w1_ref[...], alrep1_ref[...],
                   arrep1_ref[...], b1_ref[...], tile1_ref[...], sumblk1_ref[...],
                   repblk1_ref[...], expand1_ref[...], headmask1_ref[...])
    h = _bn_nodes(h, posavg1_ref[...])
    h, adj = _topk_pool(h, adj, p1_ref[...], sg1_ref[...], tielt1_ref[...],
                        trank1_ref[...], trankt1_ref[...], l=l0)

    # block 2: conv2(heads=1, out=30) + leaky + bn2 + pool2 (edge_weight=None)
    h = _gat_single(h, adj, w2_ref[...], al2_ref[...], ar2_ref[...], b2_ref[...])
    h = _bn_nodes(h, posavg2_ref[...])
    h, adj = _topk_pool(h, adj, p2_ref[...], sg2_ref[...], tielt2_ref[...],
                        trank2_ref[...], trankt2_ref[...], l=l1)

    # block 3: conv3(heads=1, out=30) + leaky + bn3 + pool3
    h = _gat_single(h, adj, w3_ref[...], al3_ref[...], ar3_ref[...], b3_ref[...])
    h = _bn_nodes(h, posavg3_ref[...])
    h, adj = _topk_pool(h, adj, p3_ref[...], sg3_ref[...], tielt3_ref[...],
                        trank3_ref[...], trankt3_ref[...], l=l2)

    # readout: view(G, -1), graph norm, fc1 + leaky_relu, (dropout), fc2
    o_ref[...] = _readout(h, gmask_ref[...], gpool_ref[...], tilefeat_ref[...],
                          posmask_ref[...], fc1w_ref[...], fc1b_ref[...],
                          fc2w_ref[...], fc2b_ref[...])


# ------------------------- host-side structural constants -------------------------

def _block_mask_np(g, l):
    n = g * l
    m = np.zeros((n, n), np.float32)
    for gi in range(g):
        m[gi * l:(gi + 1) * l, gi * l:(gi + 1) * l] = 1.0
    return m


def _pool_consts_np(g, l, k):
    n, nn = g * l, g * k
    same_g = _block_mask_np(g, l)
    r = np.arange(n)[:, None]
    c = np.arange(n)[None, :]
    strict_g = same_g * (r != c).astype(np.float32)          # same graph, no diagonal
    tie_lt = same_g * (r < c).astype(np.float32)             # same graph, row index < col index
    trank = np.full((nn, n), -1.0, np.float32)                # rank scaffold for perm
    for gi in range(g):
        trank[gi * k:(gi + 1) * k, gi * l:(gi + 1) * l] = \
            np.arange(k, dtype=np.float32)[:, None]
    return strict_g, tie_lt, trank, np.ascontiguousarray(trank.T)


def _bn_const_np(g, l):
    n = g * l
    pos = np.arange(n) % l
    return (pos[:, None] == pos[None, :]).astype(np.float32) / g   # position averaging


def _head_consts_np(n, heads, c):
    hn, hc = heads * n, heads * c
    headspread = np.zeros((hc, hn), np.float32)   # ALrep/ARrep scaffold
    tile = np.zeros((n, hn), np.float32)          # per-head column replication / diag pick
    sumblk = np.zeros((hn, heads), np.float32)    # per-head column-block sum
    repblk = np.zeros((heads, hn), np.float32)    # per-head column-block broadcast
    expand = np.zeros((hn, n), np.float32)        # row replication per head
    headmask = np.zeros((hn, hc), np.float32)     # block-diagonal head mask
    eye_n = np.eye(n, dtype=np.float32)
    for h in range(heads):
        headspread[h * c:(h + 1) * c, h * n:(h + 1) * n] = 1.0
        tile[:, h * n:(h + 1) * n] = eye_n
        sumblk[h * n:(h + 1) * n, h] = 1.0
        repblk[h, h * n:(h + 1) * n] = 1.0
        expand[h * n:(h + 1) * n, :] = eye_n
        headmask[h * n:(h + 1) * n, h * c:(h + 1) * c] = 1.0
    return headspread, tile, sumblk, repblk, expand, headmask


def _readout_consts_np(g, l, f):
    n = g * l
    gmask = _block_mask_np(g, l)
    gpool = np.zeros((g, n), np.float32)
    tilefeat = np.zeros((f, l * f), np.float32)
    posmask = np.zeros((n, l * f), np.float32)
    eye_f = np.eye(f, dtype=np.float32)
    for gi in range(g):
        gpool[gi, gi * l:(gi + 1) * l] = 1.0
    for li in range(l):
        tilefeat[:, li * f:(li + 1) * f] = eye_f
    for gi in range(g):
        for li in range(l):
            posmask[gi * l + li, li * f:(li + 1) * f] = 1.0
    return gmask, gpool, tilefeat, posmask


# ------------------------------------ wrapper --------------------------------------

@functools.partial(jax.jit, static_argnames=("num_graphs", "nodes_per_graph"))
def gatnet_sf_forward(params, x, adj_noself, ew_dense, *, num_graphs, nodes_per_graph):
    g, l0 = num_graphs, nodes_per_graph
    heads1, c1 = 5, 10
    n0 = g * l0
    l1 = int(math.ceil(0.5 * l0))
    l2 = int(math.ceil(0.5 * l1))
    l3 = int(math.ceil(0.5 * l2))
    f3 = params["w3"].shape[1]                       # 30
    num_classes = params["fc2_w"].shape[1]

    # compile-time structural constants (numpy, < 1 MB total across all stages)
    headspread1, tile1, sumblk1, repblk1, expand1, headmask1 = \
        _head_consts_np(n0, heads1, c1)
    posavg1, posavg2, posavg3 = _bn_const_np(g, l0), _bn_const_np(g, l1), _bn_const_np(g, l2)
    sg1, tielt1, trank1, trankt1 = _pool_consts_np(g, l0, l1)
    sg2, tielt2, trank2, trankt2 = _pool_consts_np(g, l1, l2)
    sg3, tielt3, trank3, trankt3 = _pool_consts_np(g, l2, l3)
    gmask, gpool, tilefeat, posmask = _readout_consts_np(g, l3, f3)

    # tiny parameter rearrangements (hoisted out of the kernel)
    alrep1 = params["att1_l"].reshape(heads1 * c1, 1) * headspread1
    arrep1 = params["att1_r"].reshape(heads1 * c1, 1) * headspread1
    al2 = params["att2_l"].reshape(-1, 1)
    ar2 = params["att2_r"].reshape(-1, 1)
    al3 = params["att3_l"].reshape(-1, 1)
    ar3 = params["att3_r"].reshape(-1, 1)

    def _unit(p):                                    # TopKPooling p / ||p||
        return p * jax.lax.rsqrt(jnp.sum(p * p))
    p1h, p2h, p3h = _unit(params["p1"]), _unit(params["p2"]), _unit(params["p3"])

    # adjacency prep: remove + add self loops; self-loop edge weight := 1.0
    # TODO(synk): reference edge_weight does not cover the added self loops (length
    # mismatch in the original code); self-loop edges get weight 1.0 here.
    eye0 = jnp.asarray(np.eye(n0, dtype=np.float32))
    adj_e = adj_noself * (1.0 - eye0)
    adj_sl = adj_e + eye0
    ew_sl = ew_dense * adj_e + eye0

    args = (x, adj_sl, ew_sl,
            params["w1"], alrep1, arrep1, params["b1"],
            jnp.asarray(tile1), jnp.asarray(sumblk1), jnp.asarray(repblk1),
            jnp.asarray(expand1), jnp.asarray(headmask1),
            jnp.asarray(posavg1),
            p1h, jnp.asarray(sg1), jnp.asarray(tielt1), jnp.asarray(trank1),
            jnp.asarray(trankt1),
            params["w2"], al2, ar2, params["b2"],
            jnp.asarray(posavg2),
            p2h, jnp.asarray(sg2), jnp.asarray(tielt2), jnp.asarray(trank2),
            jnp.asarray(trankt2),
            params["w3"], al3, ar3, params["b3"],
            jnp.asarray(posavg3),
            p3h, jnp.asarray(sg3), jnp.asarray(tielt3), jnp.asarray(trank3),
            jnp.asarray(trankt3),
            jnp.asarray(gmask), jnp.asarray(gpool), jnp.asarray(tilefeat),
            jnp.asarray(posmask),
            params["fc1_w"], params["fc1_b"], params["fc2_w"], params["fc2_b"])

    kern = functools.partial(_gatnet_kernel, stage_l=(l0, l1, l2))
    vmem = pl.BlockSpec(memory_space=pltpu.MemorySpace.VMEM)
    return pl.pallas_call(
        kern,
        out_shape=jax.ShapeDtypeStruct((g, num_classes), jnp.float32),
        in_specs=[vmem] * len(args),
        out_specs=pl.BlockSpec(memory_space=pltpu.MemorySpace.VMEM),
    )(*args)


# ------------------------------- parameter init -----------------------------------

def _glorot(key, shape, fan_in, fan_out):
    lim = math.sqrt(6.0 / (fan_in + fan_out))
    return jax.random.uniform(key, shape, jnp.float32, -lim, lim)


def init_params(key, in_ch, num_classes, nodes_per_graph):
    ks = jax.random.split(key, 12)
    l = nodes_per_graph
    for _ in range(3):
        l = int(math.ceil(l * 0.5))
    fc1_in = l * 30

    def conv(kw, ka, in_c, out_c, heads):
        w = _glorot(kw, (in_c, heads * out_c), in_c, heads * out_c)
        att = _glorot(ka, (heads, 2 * out_c), 1, 2 * out_c)
        att_l = att[:, :out_c]            # target-side attention
        att_r = att[:, out_c:]            # source-side attention
        b = jnp.zeros((1, heads * out_c), jnp.float32)
        return w, att_l, att_r, b

    w1, al1, ar1, b1 = conv(ks[0], ks[1], in_ch, 10, 5)
    w2, al2, ar2, b2 = conv(ks[2], ks[3], 50, 30, 1)
    w3, al3, ar3, b3 = conv(ks[4], ks[5], 30, 30, 1)
    return {
        "w1": w1, "att1_l": al1, "att1_r": ar1, "b1": b1,
        "p1": jax.random.uniform(ks[6], (50, 1), jnp.float32, -0.3, 0.3),
        "w2": w2, "att2_l": al2, "att2_r": ar2, "b2": b2,
        "p2": jax.random.uniform(ks[7], (30, 1), jnp.float32, -0.3, 0.3),
        "w3": w3, "att3_l": al3, "att3_r": ar3, "b3": b3,
        "p3": jax.random.uniform(ks[8], (30, 1), jnp.float32, -0.3, 0.3),
        "fc1_w": _glorot(ks[9], (fc1_in, 32), fc1_in, 32),
        "fc1_b": jnp.zeros((1, 32), jnp.float32),
        "fc2_w": _glorot(ks[10], (32, num_classes), 32, num_classes),
        "fc2_b": jnp.zeros((1, num_classes), jnp.float32),
    }


# -------------------------------------- main ---------------------------------------

if __name__ == "__main__":
    key = jax.random.PRNGKey(0)
    NUM_GRAPHS = 2          # data.num_graphs
    NODES = 16              # nodes per graph (the `num_nodes` ctor arg)
    IN_CH = 4               # node feature dim
    NUM_CLASSES = 3         # out_channels of GatNet_SF
    N = NUM_GRAPHS * NODES

    k_x, k_adj, k_ew, k_par = jax.random.split(key, 4)

    # node features
    x = jax.random.normal(k_x, (N, IN_CH), dtype=jnp.float32)

    # random block-diagonal 0/1 adjacency (no self loops) + positive edge weights
    blocks = (jax.random.uniform(k_adj, (NUM_GRAPHS, NODES, NODES)) < 0.35).astype(jnp.float32)
    blocks = blocks * (1.0 - jnp.eye(NODES, dtype=jnp.float32))
    adj_noself = jnp.zeros((N, N), jnp.float32)
    for g in range(NUM_GRAPHS):
        adj_noself = adj_noself.at[g * NODES:(g + 1) * NODES,
                                   g * NODES:(g + 1) * NODES].set(blocks[g])
    ew_dense = jax.random.uniform(k_ew, (N, N), jnp.float32, 0.1, 1.0) * adj_noself

    params = init_params(k_par, IN_CH, NUM_CLASSES, NODES)

    out = gatnet_sf_forward(params, x, adj_noself, ew_dense,
                            num_graphs=NUM_GRAPHS, nodes_per_graph=NODES)
    out = jax.block_until_ready(out)
    assert out.shape == (NUM_GRAPHS, NUM_CLASSES)
    assert bool(jnp.all(jnp.isfinite(out)))
    print("KERNEL_OK")
</pallas_src>

<mosaic_0001>
module attributes {stable_mosaic.version = 11 : i64} {
  func.func @_gatnet_kernel(%arg0: memref<32x4xf32, #tpu.memory_space<vmem>>, %arg1: memref<32x32xf32, #tpu.memory_space<vmem>>, %arg2: memref<32x32xf32, #tpu.memory_space<vmem>>, %arg3: memref<4x50xf32, #tpu.memory_space<vmem>>, %arg4: memref<50x160xf32, #tpu.memory_space<vmem>>, %arg5: memref<50x160xf32, #tpu.memory_space<vmem>>, %arg6: memref<1x50xf32, #tpu.memory_space<vmem>>, %arg7: memref<32x160xf32, #tpu.memory_space<vmem>>, %arg8: memref<160x5xf32, #tpu.memory_space<vmem>>, %arg9: memref<5x160xf32, #tpu.memory_space<vmem>>, %arg10: memref<160x32xf32, #tpu.memory_space<vmem>>, %arg11: memref<160x50xf32, #tpu.memory_space<vmem>>, %arg12: memref<32x32xf32, #tpu.memory_space<vmem>>, %arg13: memref<50x1xf32, #tpu.memory_space<vmem>>, %arg14: memref<32x32xf32, #tpu.memory_space<vmem>>, %arg15: memref<32x32xf32, #tpu.memory_space<vmem>>, %arg16: memref<16x32xf32, #tpu.memory_space<vmem>>, %arg17: memref<32x16xf32, #tpu.memory_space<vmem>>, %arg18: memref<50x30xf32, #tpu.memory_space<vmem>>, %arg19: memref<30x1xf32, #tpu.memory_space<vmem>>, %arg20: memref<30x1xf32, #tpu.memory_space<vmem>>, %arg21: memref<1x30xf32, #tpu.memory_space<vmem>>, %arg22: memref<16x16xf32, #tpu.memory_space<vmem>>, %arg23: memref<30x1xf32, #tpu.memory_space<vmem>>, %arg24: memref<16x16xf32, #tpu.memory_space<vmem>>, %arg25: memref<16x16xf32, #tpu.memory_space<vmem>>, %arg26: memref<8x16xf32, #tpu.memory_space<vmem>>, %arg27: memref<16x8xf32, #tpu.memory_space<vmem>>, %arg28: memref<30x30xf32, #tpu.memory_space<vmem>>, %arg29: memref<30x1xf32, #tpu.memory_space<vmem>>, %arg30: memref<30x1xf32, #tpu.memory_space<vmem>>, %arg31: memref<1x30xf32, #tpu.memory_space<vmem>>, %arg32: memref<8x8xf32, #tpu.memory_space<vmem>>, %arg33: memref<30x1xf32, #tpu.memory_space<vmem>>, %arg34: memref<8x8xf32, #tpu.memory_space<vmem>>, %arg35: memref<8x8xf32, #tpu.memory_space<vmem>>, %arg36: memref<4x8xf32, #tpu.memory_space<vmem>>, %arg37: memref<8x4xf32, #tpu.memory_space<vmem>>, %arg38: memref<4x4xf32, #tpu.memory_space<vmem>>, %arg39: memref<2x4xf32, #tpu.memory_space<vmem>>, %arg40: memref<30x60xf32, #tpu.memory_space<vmem>>, %arg41: memref<4x60xf32, #tpu.memory_space<vmem>>, %arg42: memref<60x32xf32, #tpu.memory_space<vmem>>, %arg43: memref<1x32xf32, #tpu.memory_space<vmem>>, %arg44: memref<32x3xf32, #tpu.memory_space<vmem>>, %arg45: memref<1x3xf32, #tpu.memory_space<vmem>>, %arg46: memref<2x3xf32, #tpu.memory_space<vmem>>) attributes {dimension_semantics = [], scalar_prefetch = 0 : i64, scratch_operands = 0 : i64, tpu.core_type = #tpu.core_type<tc>} {
    %c0 = arith.constant 0 : index
    %c0_0 = arith.constant 0 : index
    %0 = vector.load %arg1[%c0, %c0_0] : memref<32x32xf32, #tpu.memory_space<vmem>>, vector<32x32xf32>
    %c0_1 = arith.constant 0 : index
    %c0_2 = arith.constant 0 : index
    %1 = vector.load %arg0[%c0_1, %c0_2] : memref<32x4xf32, #tpu.memory_space<vmem>>, vector<32x4xf32>
    %c0_3 = arith.constant 0 : index
    %c0_4 = arith.constant 0 : index
    %2 = vector.load %arg2[%c0_3, %c0_4] : memref<32x32xf32, #tpu.memory_space<vmem>>, vector<32x32xf32>
    %c0_5 = arith.constant 0 : index
    %c0_6 = arith.constant 0 : index
    %3 = vector.load %arg3[%c0_5, %c0_6] : memref<4x50xf32, #tpu.memory_space<vmem>>, vector<4x50xf32>
    %c0_7 = arith.constant 0 : index
    %c0_8 = arith.constant 0 : index
    %4 = vector.load %arg4[%c0_7, %c0_8] : memref<50x160xf32, #tpu.memory_space<vmem>>, vector<50x160xf32>
    %c0_9 = arith.constant 0 : index
    %c0_10 = arith.constant 0 : index
    %5 = vector.load %arg5[%c0_9, %c0_10] : memref<50x160xf32, #tpu.memory_space<vmem>>, vector<50x160xf32>
    %c0_11 = arith.constant 0 : index
    %c0_12 = arith.constant 0 : index
    %6 = vector.load %arg6[%c0_11, %c0_12] : memref<1x50xf32, #tpu.memory_space<vmem>>, vector<1x50xf32>
    %c0_13 = arith.constant 0 : index
    %c0_14 = arith.constant 0 : index
    %7 = vector.load %arg7[%c0_13, %c0_14] : memref<32x160xf32, #tpu.memory_space<vmem>>, vector<32x160xf32>
    %c0_15 = arith.constant 0 : index
    %c0_16 = arith.constant 0 : index
    %8 = vector.load %arg8[%c0_15, %c0_16] : memref<160x5xf32, #tpu.memory_space<vmem>>, vector<160x5xf32>
    %c0_17 = arith.constant 0 : index
    %c0_18 = arith.constant 0 : index
    %9 = vector.load %arg9[%c0_17, %c0_18] : memref<5x160xf32, #tpu.memory_space<vmem>>, vector<5x160xf32>
    %c0_19 = arith.constant 0 : index
    %c0_20 = arith.constant 0 : index
    %10 = vector.load %arg10[%c0_19, %c0_20] : memref<160x32xf32, #tpu.memory_space<vmem>>, vector<160x32xf32>
    %c0_21 = arith.constant 0 : index
    %c0_22 = arith.constant 0 : index
    %11 = vector.load %arg11[%c0_21, %c0_22] : memref<160x50xf32, #tpu.memory_space<vmem>>, vector<160x50xf32>
    %cst = arith.constant dense<0.000000e+00> : vector<32x50xf32>
    %12 = tpu.matmul %1, %3, %cst {dimension_numbers = #tpu.dot_dimension_numbers<[1], [0], [0], [1], [0, 0, 1, 1], [], []>} : vector<32x4xf32>, vector<4x50xf32>, vector<32x50xf32> -> vector<32x50xf32>
    %cst_23 = arith.constant dense<0.000000e+00> : vector<32x160xf32>
    %13 = tpu.matmul %12, %4, %cst_23 {dimension_numbers = #tpu.dot_dimension_numbers<[1], [0], [0], [1], [0, 0, 1, 1], [], []>} : vector<32x50xf32>, vector<50x160xf32>, vector<32x160xf32> -> vector<32x160xf32>
    %cst_24 = arith.constant dense<0.000000e+00> : vector<32x160xf32>
    %14 = tpu.matmul %12, %5, %cst_24 {dimension_numbers = #tpu.dot_dimension_numbers<[1], [0], [0], [1], [0, 0, 1, 1], [], []>} : vector<32x50xf32>, vector<50x160xf32>, vector<32x160xf32> -> vector<32x160xf32>
    %cst_25 = arith.constant 1.000000e+00 : f32
    %15 = vector.broadcast %cst_25 : f32 to vector<1x32xf32>
    %16 = arith.mulf %14, %7 : vector<32x160xf32>
    %cst_26 = arith.constant dense<0.000000e+00> : vector<1x160xf32>
    %17 = tpu.matmul %15, %16, %cst_26 {dimension_numbers = #tpu.dot_dimension_numbers<[1], [0], [0], [1], [0, 0, 1, 1], [], []>} : vector<1x32xf32>, vector<32x160xf32>, vector<1x160xf32> -> vector<1x160xf32>
    %18 = vector.broadcast %17 : vector<1x160xf32> to vector<32x160xf32>
    %19 = arith.addf %13, %18 : vector<32x160xf32>
    %cst_27 = arith.constant 2.000000e-01 : f32
    %20 = vector.broadcast %cst_27 : f32 to vector<32x160xf32>
    %21 = arith.mulf %20, %19 : vector<32x160xf32>
    %22 = arith.maximumf %19, %21 : vector<32x160xf32>
    %cst_28 = arith.constant dense<0xFF800000> : vector<32xf32>
    %23 = vector.multi_reduction <maximumf>, %22, %cst_28 [1] : vector<32x160xf32> to vector<32xf32>
    %24 = vector.shape_cast %23 : vector<32xf32> to vector<32x1xf32>
    %cst_29 = arith.constant dense<0.000000e+00> : vector<32x160xf32>
    %25 = tpu.matmul %0, %7, %cst_29 {dimension_numbers = #tpu.dot_dimension_numbers<[1], [0], [0], [1], [0, 0, 1, 1], [], []>} : vector<32x32xf32>, vector<32x160xf32>, vector<32x160xf32> -> vector<32x160xf32>
    %26 = vector.broadcast %24 : vector<32x1xf32> to vector<32x160xf32>
    %27 = arith.subf %22, %26 : vector<32x160xf32>
    %28 = math.exp %27 : vector<32x160xf32>
    %29 = arith.mulf %28, %25 : vector<32x160xf32>
    %cst_30 = arith.constant dense<0.000000e+00> : vector<32x5xf32>
    %30 = tpu.matmul %29, %8, %cst_30 {dimension_numbers = #tpu.dot_dimension_numbers<[1], [0], [0], [1], [0, 0, 1, 1], [], []>} : vector<32x160xf32>, vector<160x5xf32>, vector<32x5xf32> -> vector<32x5xf32>
    %cst_31 = arith.constant 1.000000e-30 : f32
    %31 = vector.broadcast %cst_31 : f32 to vector<32x5xf32>
    %32 = arith.maximumf %30, %31 : vector<32x5xf32>
    %33 = tpu.reciprocal %32 : vector<32x5xf32> -> vector<32x5xf32>
    %cst_32 = arith.constant dense<0.000000e+00> : vector<32x160xf32>
    %34 = tpu.matmul %33, %9, %cst_32 {dimension_numbers = #tpu.dot_dimension_numbers<[1], [0], [0], [1], [0, 0, 1, 1], [], []>} : vector<32x5xf32>, vector<5x160xf32>, vector<32x160xf32> -> vector<32x160xf32>
    %cst_33 = arith.constant dense<0.000000e+00> : vector<32x160xf32>
    %35 = tpu.matmul %2, %7, %cst_33 {dimension_numbers = #tpu.dot_dimension_numbers<[1], [0], [0], [1], [0, 0, 1, 1], [], []>} : vector<32x32xf32>, vector<32x160xf32>, vector<32x160xf32> -> vector<32x160xf32>
    %36 = arith.mulf %29, %34 : vector<32x160xf32>
    %37 = arith.mulf %36, %35 : vector<32x160xf32>
    %cst_34 = arith.constant dense<0.000000e+00> : vector<160x50xf32>
    %38 = tpu.matmul %10, %12, %cst_34 {dimension_numbers = #tpu.dot_dimension_numbers<[1], [0], [0], [1], [0, 0, 1, 1], [], []>} : vector<160x32xf32>, vector<32x50xf32>, vector<160x50xf32> -> vector<160x50xf32>
    %39 = arith.mulf %38, %11 : vector<160x50xf32>
    %cst_35 = arith.constant dense<0.000000e+00> : vector<32x50xf32>
    %40 = tpu.matmul %37, %39, %cst_35 {dimension_numbers = #tpu.dot_dimension_numbers<[1], [0], [0], [1], [0, 0, 1, 1], [], []>} : vector<32x160xf32>, vector<160x50xf32>, vector<32x50xf32> -> vector<32x50xf32>
    %41 = vector.broadcast %6 : vector<1x50xf32> to vector<32x50xf32>
    %42 = arith.addf %40, %41 : vector<32x50xf32>
    %cst_36 = arith.constant 0.00999999977 : f32
    %43 = vector.broadcast %cst_36 : f32 to vector<32x50xf32>
    %44 = arith.mulf %43, %42 : vector<32x50xf32>
    %45 = arith.maximumf %42, %44 : vector<32x50xf32>
    %c0_37 = arith.constant 0 : index
    %c0_38 = arith.constant 0 : index
    %46 = vector.load %arg12[%c0_37, %c0_38] : memref<32x32xf32, #tpu.memory_space<vmem>>, vector<32x32xf32>
    %cst_39 = arith.constant dense<0.000000e+00> : vector<32xf32>
    %47 = vector.multi_reduction <add>, %45, %cst_39 [1] : vector<32x50xf32> to vector<32xf32>
    %48 = vector.shape_cast %47 : vector<32xf32> to vector<32x1xf32>
    %cst_40 = arith.constant 5.000000e+01 : f32
    %49 = vector.broadcast %cst_40 : f32 to vector<32x1xf32>
    %50 = arith.divf %48, %49 : vector<32x1xf32>
    %cst_41 = arith.constant dense<0.000000e+00> : vector<32x1xf32>
    %51 = tpu.matmul %46, %50, %cst_41 {dimension_numbers = #tpu.dot_dimension_numbers<[1], [0], [0], [1], [0, 0, 1, 1], [], []>} : vector<32x32xf32>, vector<32x1xf32>, vector<32x1xf32> -> vector<32x1xf32>
    %52 = vector.broadcast %51 : vector<32x1xf32> to vector<32x50xf32>
    %53 = arith.subf %45, %52 : vector<32x50xf32>
    %54 = arith.mulf %53, %53 : vector<32x50xf32>
    %cst_42 = arith.constant dense<0.000000e+00> : vector<32xf32>
    %55 = vector.multi_reduction <add>, %54, %cst_42 [1] : vector<32x50xf32> to vector<32xf32>
    %56 = vector.shape_cast %55 : vector<32xf32> to vector<32x1xf32>
    %cst_43 = arith.constant 5.000000e+01 : f32
    %57 = vector.broadcast %cst_43 : f32 to vector<32x1xf32>
    %58 = arith.divf %56, %57 : vector<32x1xf32>
    %cst_44 = arith.constant dense<0.000000e+00> : vector<32x1xf32>
    %59 = tpu.matmul %46, %58, %cst_44 {dimension_numbers = #tpu.dot_dimension_numbers<[1], [0], [0], [1], [0, 0, 1, 1], [], []>} : vector<32x32xf32>, vector<32x1xf32>, vector<32x1xf32> -> vector<32x1xf32>
    %cst_45 = arith.constant 9.99999974E-6 : f32
    %60 = vector.broadcast %cst_45 : f32 to vector<32x1xf32>
    %61 = arith.addf %59, %60 : vector<32x1xf32>
    %62 = math.rsqrt %61 : vector<32x1xf32>
    %63 = vector.broadcast %62 : vector<32x1xf32> to vector<32x50xf32>
    %64 = arith.mulf %53, %63 : vector<32x50xf32>
    %c0_46 = arith.constant 0 : index
    %c0_47 = arith.constant 0 : index
    %65 = vector.load %arg13[%c0_46, %c0_47] : memref<50x1xf32, #tpu.memory_space<vmem>>, vector<50x1xf32>
    %c0_48 = arith.constant 0 : index
    %c0_49 = arith.constant 0 : index
    %66 = vector.load %arg14[%c0_48, %c0_49] : memref<32x32xf32, #tpu.memory_space<vmem>>, vector<32x32xf32>
    %c0_50 = arith.constant 0 : index
    %c0_51 = arith.constant 0 : index
    %67 = vector.load %arg15[%c0_50, %c0_51] : memref<32x32xf32, #tpu.memory_space<vmem>>, vector<32x32xf32>
    %c0_52 = arith.constant 0 : index
    %c0_53 = arith.constant 0 : index
    %68 = vector.load %arg16[%c0_52, %c0_53] : memref<16x32xf32, #tpu.memory_space<vmem>>, vector<16x32xf32>
    %c0_54 = arith.constant 0 : index
    %c0_55 = arith.constant 0 : index
    %69 = vector.load %arg17[%c0_54, %c0_55] : memref<32x16xf32, #tpu.memory_space<vmem>>, vector<32x16xf32>
    %cst_56 = arith.constant dense<0.000000e+00> : vector<32x1xf32>
    %70 = tpu.matmul %64, %65, %cst_56 {dimension_numbers = #tpu.dot_dimension_numbers<[1], [0], [0], [1], [0, 0, 1, 1], [], []>} : vector<32x50xf32>, vector<50x1xf32>, vector<32x1xf32> -> vector<32x1xf32>
    %71 = math.tanh %70 : vector<32x1xf32>
    %cst_57 = arith.constant dense<0.000000e+00> : vector<1x32xf32>
    %72 = tpu.matmul %65, %64, %cst_57 {dimension_numbers = #tpu.dot_dimension_numbers<[0], [1], [1], [0], [0, 1, 1, 0], [], []>} : vector<50x1xf32>, vector<32x50xf32>, vector<1x32xf32> -> vector<1x32xf32>
    %73 = math.tanh %72 : vector<1x32xf32>
    %74 = vector.broadcast %71 : vector<32x1xf32> to vector<32x32xf32>
    %75 = vector.broadcast %73 : vector<1x32xf32> to vector<32x32xf32>
    %76 = arith.cmpf ogt, %74, %75 : vector<32x32xf32>
    %cst_58 = arith.constant 0.000000e+00 : f32
    %77 = vector.broadcast %cst_58 : f32 to vector<32x32xf32>
    %78 = arith.select %76, %66, %77 : vector<32x32xi1>, vector<32x32xf32>
    %79 = vector.broadcast %71 : vector<32x1xf32> to vector<32x32xf32>
    %80 = vector.broadcast %73 : vector<1x32xf32> to vector<32x32xf32>
    %81 = arith.cmpf oeq, %79, %80 : vector<32x32xf32>
    %cst_59 = arith.constant 0.000000e+00 : f32
    %82 = vector.broadcast %cst_59 : f32 to vector<32x32xf32>
    %83 = arith.select %81, %67, %82 : vector<32x32xi1>, vector<32x32xf32>
    %84 = arith.addf %78, %83 : vector<32x32xf32>
    %cst_60 = arith.constant 1.000000e+00 : f32
    %85 = vector.broadcast %cst_60 : f32 to vector<1x32xf32>
    %cst_61 = arith.constant 1.000000e+00 : f32
    %86 = vector.broadcast %cst_61 : f32 to vector<32x1xf32>
    %cst_62 = arith.constant dense<0.000000e+00> : vector<1x32xf32>
    %87 = tpu.matmul %85, %84, %cst_62 {dimension_numbers = #tpu.dot_dimension_numbers<[1], [0], [0], [1], [0, 0, 1, 1], [], []>} : vector<1x32xf32>, vector<32x32xf32>, vector<1x32xf32> -> vector<1x32xf32>
    %cst_63 = arith.constant dense<0.000000e+00> : vector<32x1xf32>
    %88 = tpu.matmul %84, %86, %cst_63 {dimension_numbers = #tpu.dot_dimension_numbers<[1], [0], [0], [1], [0, 0, 1, 1], [], []>} : vector<32x32xf32>, vector<32x1xf32>, vector<32x1xf32> -> vector<32x1xf32>
    %cst_64 = arith.constant 1.500000e+01 : f32
    %89 = vector.broadcast %cst_64 : f32 to vector<32x1xf32>
    %90 = arith.subf %89, %88 : vector<32x1xf32>
    %91 = vector.broadcast %87 : vector<1x32xf32> to vector<16x32xf32>
    %92 = arith.cmpf oeq, %91, %68 : vector<16x32xf32>
    %cst_65 = arith.constant 1.000000e+00 : f32
    %cst_66 = arith.constant 0.000000e+00 : f32
    %93 = vector.broadcast %cst_65 : f32 to vector<16x32xf32>
    %94 = vector.broadcast %cst_66 : f32 to vector<16x32xf32>
    %95 = arith.select %92, %93, %94 : vector<16x32xi1>, vector<16x32xf32>
    %96 = vector.broadcast %90 : vector<32x1xf32> to vector<32x16xf32>
    %97 = arith.cmpf oeq, %96, %69 : vector<32x16xf32>
    %cst_67 = arith.constant 1.000000e+00 : f32
    %cst_68 = arith.constant 0.000000e+00 : f32
    %98 = vector.broadcast %cst_67 : f32 to vector<32x16xf32>
    %99 = vector.broadcast %cst_68 : f32 to vector<32x16xf32>
    %100 = arith.select %97, %98, %99 : vector<32x16xi1>, vector<32x16xf32>
    %cst_69 = arith.constant dense<0.000000e+00> : vector<16x1xf32>
    %101 = tpu.matmul %95, %71, %cst_69 {dimension_numbers = #tpu.dot_dimension_numbers<[1], [0], [0], [1], [0, 0, 1, 1], [], []>} : vector<16x32xf32>, vector<32x1xf32>, vector<16x1xf32> -> vector<16x1xf32>
    %cst_70 = arith.constant dense<0.000000e+00> : vector<16x50xf32>
    %102 = tpu.matmul %95, %64, %cst_70 {dimension_numbers = #tpu.dot_dimension_numbers<[1], [0], [0], [1], [0, 0, 1, 1], [], []>} : vector<16x32xf32>, vector<32x50xf32>, vector<16x50xf32> -> vector<16x50xf32>
    %103 = vector.broadcast %101 : vector<16x1xf32> to vector<16x50xf32>
    %104 = arith.mulf %102, %103 : vector<16x50xf32>
    %cst_71 = arith.constant dense<0.000000e+00> : vector<16x32xf32>
    %105 = tpu.matmul %95, %0, %cst_71 {dimension_numbers = #tpu.dot_dimension_numbers<[1], [0], [0], [1], [0, 0, 1, 1], [], []>} : vector<16x32xf32>, vector<32x32xf32>, vector<16x32xf32> -> vector<16x32xf32>
    %cst_72 = arith.constant dense<0.000000e+00> : vector<16x16xf32>
    %106 = tpu.matmul %105, %100, %cst_72 {dimension_numbers = #tpu.dot_dimension_numbers<[1], [0], [0], [1], [0, 0, 1, 1], [], []>} : vector<16x32xf32>, vector<32x16xf32>, vector<16x16xf32> -> vector<16x16xf32>
    %c0_73 = arith.constant 0 : index
    %c0_74 = arith.constant 0 : index
    %107 = vector.load %arg18[%c0_73, %c0_74] : memref<50x30xf32, #tpu.memory_space<vmem>>, vector<50x30xf32>
    %c0_75 = arith.constant 0 : index
    %c0_76 = arith.constant 0 : index
    %108 = vector.load %arg19[%c0_75, %c0_76] : memref<30x1xf32, #tpu.memory_space<vmem>>, vector<30x1xf32>
    %c0_77 = arith.constant 0 : index
    %c0_78 = arith.constant 0 : index
    %109 = vector.load %arg20[%c0_77, %c0_78] : memref<30x1xf32, #tpu.memory_space<vmem>>, vector<30x1xf32>
    %c0_79 = arith.constant 0 : index
    %c0_80 = arith.constant 0 : index
    %110 = vector.load %arg21[%c0_79, %c0_80] : memref<1x30xf32, #tpu.memory_space<vmem>>, vector<1x30xf32>
    %cst_81 = arith.constant dense<0.000000e+00> : vector<16x30xf32>
    %111 = tpu.matmul %104, %107, %cst_81 {dimension_numbers = #tpu.dot_dimension_numbers<[1], [0], [0], [1], [0, 0, 1, 1], [], []>} : vector<16x50xf32>, vector<50x30xf32>, vector<16x30xf32> -> vector<16x30xf32>
    %cst_82 = arith.constant dense<0.000000e+00> : vector<16x1xf32>
    %112 = tpu.matmul %111, %108, %cst_82 {dimension_numbers = #tpu.dot_dimension_numbers<[1], [0], [0], [1], [0, 0, 1, 1], [], []>} : vector<16x30xf32>, vector<30x1xf32>, vector<16x1xf32> -> vector<16x1xf32>
    %cst_83 = arith.constant dense<0.000000e+00> : vector<1x16xf32>
    %113 = tpu.matmul %109, %111, %cst_83 {dimension_numbers = #tpu.dot_dimension_numbers<[0], [1], [1], [0], [0, 1, 1, 0], [], []>} : vector<30x1xf32>, vector<16x30xf32>, vector<1x16xf32> -> vector<1x16xf32>
    %114 = vector.broadcast %112 : vector<16x1xf32> to vector<16x16xf32>
    %115 = vector.broadcast %113 : vector<1x16xf32> to vector<16x16xf32>
    %116 = arith.addf %114, %115 : vector<16x16xf32>
    %cst_84 = arith.constant 2.000000e-01 : f32
    %117 = vector.broadcast %cst_84 : f32 to vector<16x16xf32>
    %118 = arith.mulf %117, %116 : vector<16x16xf32>
    %119 = arith.maximumf %116, %118 : vector<16x16xf32>
    %cst_85 = arith.constant dense<0xFF800000> : vector<16xf32>
    %120 = vector.multi_reduction <maximumf>, %119, %cst_85 [1] : vector<16x16xf32> to vector<16xf32>
    %121 = vector.shape_cast %120 : vector<16xf32> to vector<16x1xf32>
    %122 = vector.broadcast %121 : vector<16x1xf32> to vector<16x16xf32>
    %123 = arith.subf %119, %122 : vector<16x16xf32>
    %124 = math.exp %123 : vector<16x16xf32>
    %125 = arith.mulf %124, %106 : vector<16x16xf32>
    %cst_86 = arith.constant dense<0.000000e+00> : vector<16xf32>
    %126 = vector.multi_reduction <add>, %125, %cst_86 [1] : vector<16x16xf32> to vector<16xf32>
    %127 = vector.shape_cast %126 : vector<16xf32> to vector<16x1xf32>
    %cst_87 = arith.constant 1.000000e-30 : f32
    %128 = vector.broadcast %cst_87 : f32 to vector<16x1xf32>
    %129 = arith.maximumf %127, %128 : vector<16x1xf32>
    %130 = tpu.reciprocal %129 : vector<16x1xf32> -> vector<16x1xf32>
    %131 = vector.broadcast %130 : vector<16x1xf32> to vector<16x16xf32>
    %132 = arith.mulf %125, %131 : vector<16x16xf32>
    %cst_88 = arith.constant dense<0.000000e+00> : vector<16x30xf32>
    %133 = tpu.matmul %132, %111, %cst_88 {dimension_numbers = #tpu.dot_dimension_numbers<[1], [0], [0], [1], [0, 0, 1, 1], [], []>} : vector<16x16xf32>, vector<16x30xf32>, vector<16x30xf32> -> vector<16x30xf32>
    %134 = vector.broadcast %110 : vector<1x30xf32> to vector<16x30xf32>
    %135 = arith.addf %133, %134 : vector<16x30xf32>
    %cst_89 = arith.constant 0.00999999977 : f32
    %136 = vector.broadcast %cst_89 : f32 to vector<16x30xf32>
    %137 = arith.mulf %136, %135 : vector<16x30xf32>
    %138 = arith.maximumf %135, %137 : vector<16x30xf32>
    %c0_90 = arith.constant 0 : index
    %c0_91 = arith.constant 0 : index
    %139 = vector.load %arg22[%c0_90, %c0_91] : memref<16x16xf32, #tpu.memory_space<vmem>>, vector<16x16xf32>
    %cst_92 = arith.constant dense<0.000000e+00> : vector<16xf32>
    %140 = vector.multi_reduction <add>, %138, %cst_92 [1] : vector<16x30xf32> to vector<16xf32>
    %141 = vector.shape_cast %140 : vector<16xf32> to vector<16x1xf32>
    %cst_93 = arith.constant 3.000000e+01 : f32
    %142 = vector.broadcast %cst_93 : f32 to vector<16x1xf32>
    %143 = arith.divf %141, %142 : vector<16x1xf32>
    %cst_94 = arith.constant dense<0.000000e+00> : vector<16x1xf32>
    %144 = tpu.matmul %139, %143, %cst_94 {dimension_numbers = #tpu.dot_dimension_numbers<[1], [0], [0], [1], [0, 0, 1, 1], [], []>} : vector<16x16xf32>, vector<16x1xf32>, vector<16x1xf32> -> vector<16x1xf32>
    %145 = vector.broadcast %144 : vector<16x1xf32> to vector<16x30xf32>
    %146 = arith.subf %138, %145 : vector<16x30xf32>
    %147 = arith.mulf %146, %146 : vector<16x30xf32>
    %cst_95 = arith.constant dense<0.000000e+00> : vector<16xf32>
    %148 = vector.multi_reduction <add>, %147, %cst_95 [1] : vector<16x30xf32> to vector<16xf32>
    %149 = vector.shape_cast %148 : vector<16xf32> to vector<16x1xf32>
    %cst_96 = arith.constant 3.000000e+01 : f32
    %150 = vector.broadcast %cst_96 : f32 to vector<16x1xf32>
    %151 = arith.divf %149, %150 : vector<16x1xf32>
    %cst_97 = arith.constant dense<0.000000e+00> : vector<16x1xf32>
    %152 = tpu.matmul %139, %151, %cst_97 {dimension_numbers = #tpu.dot_dimension_numbers<[1], [0], [0], [1], [0, 0, 1, 1], [], []>} : vector<16x16xf32>, vector<16x1xf32>, vector<16x1xf32> -> vector<16x1xf32>
    %cst_98 = arith.constant 9.99999974E-6 : f32
    %153 = vector.broadcast %cst_98 : f32 to vector<16x1xf32>
    %154 = arith.addf %152, %153 : vector<16x1xf32>
    %155 = math.rsqrt %154 : vector<16x1xf32>
    %156 = vector.broadcast %155 : vector<16x1xf32> to vector<16x30xf32>
    %157 = arith.mulf %146, %156 : vector<16x30xf32>
    %c0_99 = arith.constant 0 : index
    %c0_100 = arith.constant 0 : index
    %158 = vector.load %arg23[%c0_99, %c0_100] : memref<30x1xf32, #tpu.memory_space<vmem>>, vector<30x1xf32>
    %c0_101 = arith.constant 0 : index
    %c0_102 = arith.constant 0 : index
    %159 = vector.load %arg24[%c0_101, %c0_102] : memref<16x16xf32, #tpu.memory_space<vmem>>, vector<16x16xf32>
    %c0_103 = arith.constant 0 : index
    %c0_104 = arith.constant 0 : index
    %160 = vector.load %arg25[%c0_103, %c0_104] : memref<16x16xf32, #tpu.memory_space<vmem>>, vector<16x16xf32>
    %c0_105 = arith.constant 0 : index
    %c0_106 = arith.constant 0 : index
    %161 = vector.load %arg26[%c0_105, %c0_106] : memref<8x16xf32, #tpu.memory_space<vmem>>, vector<8x16xf32>
    %c0_107 = arith.constant 0 : index
    %c0_108 = arith.constant 0 : index
    %162 = vector.load %arg27[%c0_107, %c0_108] : memref<16x8xf32, #tpu.memory_space<vmem>>, vector<16x8xf32>
    %cst_109 = arith.constant dense<0.000000e+00> : vector<16x1xf32>
    %163 = tpu.matmul %157, %158, %cst_109 {dimension_numbers = #tpu.dot_dimension_numbers<[1], [0], [0], [1], [0, 0, 1, 1], [], []>} : vector<16x30xf32>, vector<30x1xf32>, vector<16x1xf32> -> vector<16x1xf32>
    %164 = math.tanh %163 : vector<16x1xf32>
    %cst_110 = arith.constant dense<0.000000e+00> : vector<1x16xf32>
    %165 = tpu.matmul %158, %157, %cst_110 {dimension_numbers = #tpu.dot_dimension_numbers<[0], [1], [1], [0], [0, 1, 1, 0], [], []>} : vector<30x1xf32>, vector<16x30xf32>, vector<1x16xf32> -> vector<1x16xf32>
    %166 = math.tanh %165 : vector<1x16xf32>
    %167 = vector.broadcast %164 : vector<16x1xf32> to vector<16x16xf32>
    %168 = vector.broadcast %166 : vector<1x16xf32> to vector<16x16xf32>
    %169 = arith.cmpf ogt, %167, %168 : vector<16x16xf32>
    %cst_111 = arith.constant 0.000000e+00 : f32
    %170 = vector.broadcast %cst_111 : f32 to vector<16x16xf32>
    %171 = arith.select %169, %159, %170 : vector<16x16xi1>, vector<16x16xf32>
    %172 = vector.broadcast %164 : vector<16x1xf32> to vector<16x16xf32>
    %173 = vector.broadcast %166 : vector<1x16xf32> to vector<16x16xf32>
    %174 = arith.cmpf oeq, %172, %173 : vector<16x16xf32>
    %cst_112 = arith.constant 0.000000e+00 : f32
    %175 = vector.broadcast %cst_112 : f32 to vector<16x16xf32>
    %176 = arith.select %174, %160, %175 : vector<16x16xi1>, vector<16x16xf32>
    %177 = arith.addf %171, %176 : vector<16x16xf32>
    %cst_113 = arith.constant 1.000000e+00 : f32
    %178 = vector.broadcast %cst_113 : f32 to vector<1x16xf32>
    %cst_114 = arith.constant 1.000000e+00 : f32
    %179 = vector.broadcast %cst_114 : f32 to vector<16x1xf32>
    %cst_115 = arith.constant dense<0.000000e+00> : vector<1x16xf32>
    %180 = tpu.matmul %178, %177, %cst_115 {dimension_numbers = #tpu.dot_dimension_numbers<[1], [0], [0], [1], [0, 0, 1, 1], [], []>} : vector<1x16xf32>, vector<16x16xf32>, vector<1x16xf32> -> vector<1x16xf32>
    %cst_116 = arith.constant dense<0.000000e+00> : vector<16x1xf32>
    %181 = tpu.matmul %177, %179, %cst_116 {dimension_numbers = #tpu.dot_dimension_numbers<[1], [0], [0], [1], [0, 0, 1, 1], [], []>} : vector<16x16xf32>, vector<16x1xf32>, vector<16x1xf32> -> vector<16x1xf32>
    %cst_117 = arith.constant 7.000000e+00 : f32
    %182 = vector.broadcast %cst_117 : f32 to vector<16x1xf32>
    %183 = arith.subf %182, %181 : vector<16x1xf32>
    %184 = vector.broadcast %180 : vector<1x16xf32> to vector<8x16xf32>
    %185 = arith.cmpf oeq, %184, %161 : vector<8x16xf32>
    %cst_118 = arith.constant 1.000000e+00 : f32
    %cst_119 = arith.constant 0.000000e+00 : f32
    %186 = vector.broadcast %cst_118 : f32 to vector<8x16xf32>
    %187 = vector.broadcast %cst_119 : f32 to vector<8x16xf32>
    %188 = arith.select %185, %186, %187 : vector<8x16xi1>, vector<8x16xf32>
    %189 = vector.broadcast %183 : vector<16x1xf32> to vector<16x8xf32>
    %190 = arith.cmpf oeq, %189, %162 : vector<16x8xf32>
    %cst_120 = arith.constant 1.000000e+00 : f32
    %cst_121 = arith.constant 0.000000e+00 : f32
    %191 = vector.broadcast %cst_120 : f32 to vector<16x8xf32>
    %192 = vector.broadcast %cst_121 : f32 to vector<16x8xf32>
    %193 = arith.select %190, %191, %192 : vector<16x8xi1>, vector<16x8xf32>
    %cst_122 = arith.constant dense<0.000000e+00> : vector<8x1xf32>
    %194 = tpu.matmul %188, %164, %cst_122 {dimension_numbers = #tpu.dot_dimension_numbers<[1], [0], [0], [1], [0, 0, 1, 1], [], []>} : vector<8x16xf32>, vector<16x1xf32>, vector<8x1xf32> -> vector<8x1xf32>
    %cst_123 = arith.constant dense<0.000000e+00> : vector<8x30xf32>
    %195 = tpu.matmul %188, %157, %cst_123 {dimension_numbers = #tpu.dot_dimension_numbers<[1], [0], [0], [1], [0, 0, 1, 1], [], []>} : vector<8x16xf32>, vector<16x30xf32>, vector<8x30xf32> -> vector<8x30xf32>
    %196 = vector.broadcast %194 : vector<8x1xf32> to vector<8x30xf32>
    %197 = arith.mulf %195, %196 : vector<8x30xf32>
    %cst_124 = arith.constant dense<0.000000e+00> : vector<8x16xf32>
    %198 = tpu.matmul %188, %106, %cst_124 {dimension_numbers = #tpu.dot_dimension_numbers<[1], [0], [0], [1], [0, 0, 1, 1], [], []>} : vector<8x16xf32>, vector<16x16xf32>, vector<8x16xf32> -> vector<8x16xf32>
    %cst_125 = arith.constant dense<0.000000e+00> : vector<8x8xf32>
    %199 = tpu.matmul %198, %193, %cst_125 {dimension_numbers = #tpu.dot_dimension_numbers<[1], [0], [0], [1], [0, 0, 1, 1], [], []>} : vector<8x16xf32>, vector<16x8xf32>, vector<8x8xf32> -> vector<8x8xf32>
    %c0_126 = arith.constant 0 : index
    %c0_127 = arith.constant 0 : index
    %200 = vector.load %arg28[%c0_126, %c0_127] : memref<30x30xf32, #tpu.memory_space<vmem>>, vector<30x30xf32>
    %c0_128 = arith.constant 0 : index
    %c0_129 = arith.constant 0 : index
    %201 = vector.load %arg29[%c0_128, %c0_129] : memref<30x1xf32, #tpu.memory_space<vmem>>, vector<30x1xf32>
    %c0_130 = arith.constant 0 : index
    %c0_131 = arith.constant 0 : index
    %202 = vector.load %arg30[%c0_130, %c0_131] : memref<30x1xf32, #tpu.memory_space<vmem>>, vector<30x1xf32>
    %c0_132 = arith.constant 0 : index
    %c0_133 = arith.constant 0 : index
    %203 = vector.load %arg31[%c0_132, %c0_133] : memref<1x30xf32, #tpu.memory_space<vmem>>, vector<1x30xf32>
    %cst_134 = arith.constant dense<0.000000e+00> : vector<8x30xf32>
    %204 = tpu.matmul %197, %200, %cst_134 {dimension_numbers = #tpu.dot_dimension_numbers<[1], [0], [0], [1], [0, 0, 1, 1], [], []>} : vector<8x30xf32>, vector<30x30xf32>, vector<8x30xf32> -> vector<8x30xf32>
    %cst_135 = arith.constant dense<0.000000e+00> : vector<8x1xf32>
    %205 = tpu.matmul %204, %201, %cst_135 {dimension_numbers = #tpu.dot_dimension_numbers<[1], [0], [0], [1], [0, 0, 1, 1], [], []>} : vector<8x30xf32>, vector<30x1xf32>, vector<8x1xf32> -> vector<8x1xf32>
    %cst_136 = arith.constant dense<0.000000e+00> : vector<1x8xf32>
    %206 = tpu.matmul %202, %204, %cst_136 {dimension_numbers = #tpu.dot_dimension_numbers<[0], [1], [1], [0], [0, 1, 1, 0], [], []>} : vector<30x1xf32>, vector<8x30xf32>, vector<1x8xf32> -> vector<1x8xf32>
    %207 = vector.broadcast %205 : vector<8x1xf32> to vector<8x8xf32>
    %208 = vector.broadcast %206 : vector<1x8xf32> to vector<8x8xf32>
    %209 = arith.addf %207, %208 : vector<8x8xf32>
    %cst_137 = arith.constant 2.000000e-01 : f32
    %210 = vector.broadcast %cst_137 : f32 to vector<8x8xf32>
    %211 = arith.mulf %210, %209 : vector<8x8xf32>
    %212 = arith.maximumf %209, %211 : vector<8x8xf32>
    %cst_138 = arith.constant dense<0xFF800000> : vector<8xf32>
    %213 = vector.multi_reduction <maximumf>, %212, %cst_138 [1] : vector<8x8xf32> to vector<8xf32>
    %214 = vector.shape_cast %213 : vector<8xf32> to vector<8x1xf32>
    %215 = vector.broadcast %214 : vector<8x1xf32> to vector<8x8xf32>
    %216 = arith.subf %212, %215 : vector<8x8xf32>
    %217 = math.exp %216 : vector<8x8xf32>
    %218 = arith.mulf %217, %199 : vector<8x8xf32>
    %cst_139 = arith.constant dense<0.000000e+00> : vector<8xf32>
    %219 = vector.multi_reduction <add>, %218, %cst_139 [1] : vector<8x8xf32> to vector<8xf32>
    %220 = vector.shape_cast %219 : vector<8xf32> to vector<8x1xf32>
    %cst_140 = arith.constant 1.000000e-30 : f32
    %221 = vector.broadcast %cst_140 : f32 to vector<8x1xf32>
    %222 = arith.maximumf %220, %221 : vector<8x1xf32>
    %223 = tpu.reciprocal %222 : vector<8x1xf32> -> vector<8x1xf32>
    %224 = vector.broadcast %223 : vector<8x1xf32> to vector<8x8xf32>
    %225 = arith.mulf %218, %224 : vector<8x8xf32>
    %cst_141 = arith.constant dense<0.000000e+00> : vector<8x30xf32>
    %226 = tpu.matmul %225, %204, %cst_141 {dimension_numbers = #tpu.dot_dimension_numbers<[1], [0], [0], [1], [0, 0, 1, 1], [], []>} : vector<8x8xf32>, vector<8x30xf32>, vector<8x30xf32> -> vector<8x30xf32>
    %227 = vector.broadcast %203 : vector<1x30xf32> to vector<8x30xf32>
    %228 = arith.addf %226, %227 : vector<8x30xf32>
    %cst_142 = arith.constant 0.00999999977 : f32
    %229 = vector.broadcast %cst_142 : f32 to vector<8x30xf32>
    %230 = arith.mulf %229, %228 : vector<8x30xf32>
    %231 = arith.maximumf %228, %230 : vector<8x30xf32>
    %c0_143 = arith.constant 0 : index
    %c0_144 = arith.constant 0 : index
    %232 = vector.load %arg32[%c0_143, %c0_144] : memref<8x8xf32, #tpu.memory_space<vmem>>, vector<8x8xf32>
    %cst_145 = arith.constant dense<0.000000e+00> : vector<8xf32>
    %233 = vector.multi_reduction <add>, %231, %cst_145 [1] : vector<8x30xf32> to vector<8xf32>
    %234 = vector.shape_cast %233 : vector<8xf32> to vector<8x1xf32>
    %cst_146 = arith.constant 3.000000e+01 : f32
    %235 = vector.broadcast %cst_146 : f32 to vector<8x1xf32>
    %236 = arith.divf %234, %235 : vector<8x1xf32>
    %cst_147 = arith.constant dense<0.000000e+00> : vector<8x1xf32>
    %237 = tpu.matmul %232, %236, %cst_147 {dimension_numbers = #tpu.dot_dimension_numbers<[1], [0], [0], [1], [0, 0, 1, 1], [], []>} : vector<8x8xf32>, vector<8x1xf32>, vector<8x1xf32> -> vector<8x1xf32>
    %238 = vector.broadcast %237 : vector<8x1xf32> to vector<8x30xf32>
    %239 = arith.subf %231, %238 : vector<8x30xf32>
    %240 = arith.mulf %239, %239 : vector<8x30xf32>
    %cst_148 = arith.constant dense<0.000000e+00> : vector<8xf32>
    %241 = vector.multi_reduction <add>, %240, %cst_148 [1] : vector<8x30xf32> to vector<8xf32>
    %242 = vector.shape_cast %241 : vector<8xf32> to vector<8x1xf32>
    %cst_149 = arith.constant 3.000000e+01 : f32
    %243 = vector.broadcast %cst_149 : f32 to vector<8x1xf32>
    %244 = arith.divf %242, %243 : vector<8x1xf32>
    %cst_150 = arith.constant dense<0.000000e+00> : vector<8x1xf32>
    %245 = tpu.matmul %232, %244, %cst_150 {dimension_numbers = #tpu.dot_dimension_numbers<[1], [0], [0], [1], [0, 0, 1, 1], [], []>} : vector<8x8xf32>, vector<8x1xf32>, vector<8x1xf32> -> vector<8x1xf32>
    %cst_151 = arith.constant 9.99999974E-6 : f32
    %246 = vector.broadcast %cst_151 : f32 to vector<8x1xf32>
    %247 = arith.addf %245, %246 : vector<8x1xf32>
    %248 = math.rsqrt %247 : vector<8x1xf32>
    %249 = vector.broadcast %248 : vector<8x1xf32> to vector<8x30xf32>
    %250 = arith.mulf %239, %249 : vector<8x30xf32>
    %c0_152 = arith.constant 0 : index
    %c0_153 = arith.constant 0 : index
    %251 = vector.load %arg33[%c0_152, %c0_153] : memref<30x1xf32, #tpu.memory_space<vmem>>, vector<30x1xf32>
    %c0_154 = arith.constant 0 : index
    %c0_155 = arith.constant 0 : index
    %252 = vector.load %arg34[%c0_154, %c0_155] : memref<8x8xf32, #tpu.memory_space<vmem>>, vector<8x8xf32>
    %c0_156 = arith.constant 0 : index
    %c0_157 = arith.constant 0 : index
    %253 = vector.load %arg35[%c0_156, %c0_157] : memref<8x8xf32, #tpu.memory_space<vmem>>, vector<8x8xf32>
    %c0_158 = arith.constant 0 : index
    %c0_159 = arith.constant 0 : index
    %254 = vector.load %arg36[%c0_158, %c0_159] : memref<4x8xf32, #tpu.memory_space<vmem>>, vector<4x8xf32>
    %cst_160 = arith.constant dense<0.000000e+00> : vector<8x1xf32>
    %255 = tpu.matmul %250, %251, %cst_160 {dimension_numbers = #tpu.dot_dimension_numbers<[1], [0], [0], [1], [0, 0, 1, 1], [], []>} : vector<8x30xf32>, vector<30x1xf32>, vector<8x1xf32> -> vector<8x1xf32>
    %256 = math.tanh %255 : vector<8x1xf32>
    %cst_161 = arith.constant dense<0.000000e+00> : vector<1x8xf32>
    %257 = tpu.matmul %251, %250, %cst_161 {dimension_numbers = #tpu.dot_dimension_numbers<[0], [1], [1], [0], [0, 1, 1, 0], [], []>} : vector<30x1xf32>, vector<8x30xf32>, vector<1x8xf32> -> vector<1x8xf32>
    %258 = math.tanh %257 : vector<1x8xf32>
    %259 = vector.broadcast %256 : vector<8x1xf32> to vector<8x8xf32>
    %260 = vector.broadcast %258 : vector<1x8xf32> to vector<8x8xf32>
    %261 = arith.cmpf ogt, %259, %260 : vector<8x8xf32>
    %cst_162 = arith.constant 0.000000e+00 : f32
    %262 = vector.broadcast %cst_162 : f32 to vector<8x8xf32>
    %263 = arith.select %261, %252, %262 : vector<8x8xi1>, vector<8x8xf32>
    %264 = vector.broadcast %256 : vector<8x1xf32> to vector<8x8xf32>
    %265 = vector.broadcast %258 : vector<1x8xf32> to vector<8x8xf32>
    %266 = arith.cmpf oeq, %264, %265 : vector<8x8xf32>
    %cst_163 = arith.constant 0.000000e+00 : f32
    %267 = vector.broadcast %cst_163 : f32 to vector<8x8xf32>
    %268 = arith.select %266, %253, %267 : vector<8x8xi1>, vector<8x8xf32>
    %269 = arith.addf %263, %268 : vector<8x8xf32>
    %cst_164 = arith.constant 1.000000e+00 : f32
    %270 = vector.broadcast %cst_164 : f32 to vector<1x8xf32>
    %cst_165 = arith.constant dense<0.000000e+00> : vector<1x8xf32>
    %271 = tpu.matmul %270, %269, %cst_165 {dimension_numbers = #tpu.dot_dimension_numbers<[1], [0], [0], [1], [0, 0, 1, 1], [], []>} : vector<1x8xf32>, vector<8x8xf32>, vector<1x8xf32> -> vector<1x8xf32>
    %272 = vector.broadcast %271 : vector<1x8xf32> to vector<4x8xf32>
    %273 = arith.cmpf oeq, %272, %254 : vector<4x8xf32>
    %cst_166 = arith.constant 1.000000e+00 : f32
    %cst_167 = arith.constant 0.000000e+00 : f32
    %274 = vector.broadcast %cst_166 : f32 to vector<4x8xf32>
    %275 = vector.broadcast %cst_167 : f32 to vector<4x8xf32>
    %276 = arith.select %273, %274, %275 : vector<4x8xi1>, vector<4x8xf32>
    %cst_168 = arith.constant dense<0.000000e+00> : vector<4x1xf32>
    %277 = tpu.matmul %276, %256, %cst_168 {dimension_numbers = #tpu.dot_dimension_numbers<[1], [0], [0], [1], [0, 0, 1, 1], [], []>} : vector<4x8xf32>, vector<8x1xf32>, vector<4x1xf32> -> vector<4x1xf32>
    %cst_169 = arith.constant dense<0.000000e+00> : vector<4x30xf32>
    %278 = tpu.matmul %276, %250, %cst_169 {dimension_numbers = #tpu.dot_dimension_numbers<[1], [0], [0], [1], [0, 0, 1, 1], [], []>} : vector<4x8xf32>, vector<8x30xf32>, vector<4x30xf32> -> vector<4x30xf32>
    %279 = vector.broadcast %277 : vector<4x1xf32> to vector<4x30xf32>
    %280 = arith.mulf %278, %279 : vector<4x30xf32>
    %c0_170 = arith.constant 0 : index
    %c0_171 = arith.constant 0 : index
    %281 = vector.load %arg38[%c0_170, %c0_171] : memref<4x4xf32, #tpu.memory_space<vmem>>, vector<4x4xf32>
    %c0_172 = arith.constant 0 : index
    %c0_173 = arith.constant 0 : index
    %282 = vector.load %arg39[%c0_172, %c0_173] : memref<2x4xf32, #tpu.memory_space<vmem>>, vector<2x4xf32>
    %c0_174 = arith.constant 0 : index
    %c0_175 = arith.constant 0 : index
    %283 = vector.load %arg40[%c0_174, %c0_175] : memref<30x60xf32, #tpu.memory_space<vmem>>, vector<30x60xf32>
    %c0_176 = arith.constant 0 : index
    %c0_177 = arith.constant 0 : index
    %284 = vector.load %arg41[%c0_176, %c0_177] : memref<4x60xf32, #tpu.memory_space<vmem>>, vector<4x60xf32>
    %c0_178 = arith.constant 0 : index
    %c0_179 = arith.constant 0 : index
    %285 = vector.load %arg42[%c0_178, %c0_179] : memref<60x32xf32, #tpu.memory_space<vmem>>, vector<60x32xf32>
    %c0_180 = arith.constant 0 : index
    %c0_181 = arith.constant 0 : index
    %286 = vector.load %arg43[%c0_180, %c0_181] : memref<1x32xf32, #tpu.memory_space<vmem>>, vector<1x32xf32>
    %c0_182 = arith.constant 0 : index
    %c0_183 = arith.constant 0 : index
    %287 = vector.load %arg44[%c0_182, %c0_183] : memref<32x3xf32, #tpu.memory_space<vmem>>, vector<32x3xf32>
    %c0_184 = arith.constant 0 : index
    %c0_185 = arith.constant 0 : index
    %288 = vector.load %arg45[%c0_184, %c0_185] : memref<1x3xf32, #tpu.memory_space<vmem>>, vector<1x3xf32>
    %cst_186 = arith.constant dense<0.000000e+00> : vector<4xf32>
    %289 = vector.multi_reduction <add>, %280, %cst_186 [1] : vector<4x30xf32> to vector<4xf32>
    %290 = vector.shape_cast %289 : vector<4xf32> to vector<4x1xf32>
    %cst_187 = arith.constant 3.000000e+01 : f32
    %291 = vector.broadcast %cst_187 : f32 to vector<4x1xf32>
    %292 = arith.divf %290, %291 : vector<4x1xf32>
    %cst_188 = arith.constant dense<0.000000e+00> : vector<4x1xf32>
    %293 = tpu.matmul %281, %292, %cst_188 {dimension_numbers = #tpu.dot_dimension_numbers<[1], [0], [0], [1], [0, 0, 1, 1], [], []>} : vector<4x4xf32>, vector<4x1xf32>, vector<4x1xf32> -> vector<4x1xf32>
    %cst_189 = arith.constant 5.000000e-01 : f32
    %294 = vector.broadcast %cst_189 : f32 to vector<4x1xf32>
    %295 = arith.mulf %293, %294 : vector<4x1xf32>
    %296 = vector.broadcast %295 : vector<4x1xf32> to vector<4x30xf32>
    %297 = arith.subf %280, %296 : vector<4x30xf32>
    %298 = arith.mulf %297, %297 : vector<4x30xf32>
    %cst_190 = arith.constant dense<0.000000e+00> : vector<4xf32>
    %299 = vector.multi_reduction <add>, %298, %cst_190 [1] : vector<4x30xf32> to vector<4xf32>
    %300 = vector.shape_cast %299 : vector<4xf32> to vector<4x1xf32>
    %cst_191 = arith.constant dense<0.000000e+00> : vector<4x1xf32>
    %301 = tpu.matmul %281, %300, %cst_191 {dimension_numbers = #tpu.dot_dimension_numbers<[1], [0], [0], [1], [0, 0, 1, 1], [], []>} : vector<4x4xf32>, vector<4x1xf32>, vector<4x1xf32> -> vector<4x1xf32>
    %cst_192 = arith.constant 0.0169491526 : f32
    %302 = vector.broadcast %cst_192 : f32 to vector<4x1xf32>
    %303 = arith.mulf %301, %302 : vector<4x1xf32>
    %cst_193 = arith.constant 1.000000e-10 : f32
    %304 = vector.broadcast %cst_193 : f32 to vector<4x1xf32>
    %305 = arith.addf %303, %304 : vector<4x1xf32>
    %306 = vector.broadcast %305 : vector<4x1xf32> to vector<4x30xf32>
    %307 = arith.divf %297, %306 : vector<4x30xf32>
    %cst_194 = arith.constant dense<0.000000e+00> : vector<4x60xf32>
    %308 = tpu.matmul %307, %283, %cst_194 {dimension_numbers = #tpu.dot_dimension_numbers<[1], [0], [0], [1], [0, 0, 1, 1], [], []>} : vector<4x30xf32>, vector<30x60xf32>, vector<4x60xf32> -> vector<4x60xf32>
    %309 = arith.mulf %308, %284 : vector<4x60xf32>
    %cst_195 = arith.constant dense<0.000000e+00> : vector<4x32xf32>
    %310 = tpu.matmul %309, %285, %cst_195 {dimension_numbers = #tpu.dot_dimension_numbers<[1], [0], [0], [1], [0, 0, 1, 1], [], []>} : vector<4x60xf32>, vector<60x32xf32>, vector<4x32xf32> -> vector<4x32xf32>
    %cst_196 = arith.constant dense<0.000000e+00> : vector<2x32xf32>
    %311 = tpu.matmul %282, %310, %cst_196 {dimension_numbers = #tpu.dot_dimension_numbers<[1], [0], [0], [1], [0, 0, 1, 1], [], []>} : vector<2x4xf32>, vector<4x32xf32>, vector<2x32xf32> -> vector<2x32xf32>
    %312 = vector.broadcast %286 : vector<1x32xf32> to vector<2x32xf32>
    %313 = arith.addf %311, %312 : vector<2x32xf32>
    %cst_197 = arith.constant 0.00999999977 : f32
    %314 = vector.broadcast %cst_197 : f32 to vector<2x32xf32>
    %315 = arith.mulf %314, %313 : vector<2x32xf32>
    %316 = arith.maximumf %313, %315 : vector<2x32xf32>
    %cst_198 = arith.constant dense<0.000000e+00> : vector<2x3xf32>
    %317 = tpu.matmul %316, %287, %cst_198 {dimension_numbers = #tpu.dot_dimension_numbers<[1], [0], [0], [1], [0, 0, 1, 1], [], []>} : vector<2x32xf32>, vector<32x3xf32>, vector<2x3xf32> -> vector<2x3xf32>
    %318 = vector.broadcast %288 : vector<1x3xf32> to vector<2x3xf32>
    %319 = arith.addf %317, %318 : vector<2x3xf32>
    %c0_199 = arith.constant 0 : index
    %c0_200 = arith.constant 0 : index
    %320 = vector.load %arg46[%c0_199, %c0_200] : memref<2x3xf32, #tpu.memory_space<vmem>>, vector<2x3xf32>
    tpu.vector_store %arg46[%c0_199, %c0_200], %319 {strides = array<i32>} : memref<2x3xf32, #tpu.memory_space<vmem>>, vector<2x3xf32>,
    return
  }
}

</mosaic_0001>

<bundles_post_ra>
// kernel: mul.20
= control target key start
LH: loop header
LB: loop body
LE: loop exit
PB: predicated region body
PF: predicated region fallthrough
CT: control target
= control target key end

     0   :  { %s43_s10 = smov 40   ;;  %s44_s11 = smov 20   ;;  %vm3_vm0 = vcmask 80896   ;;  %vm9_vm1 = vcmask 408896   ;;  %vm15_vm2 = vcmask 326896   ;;  %vm21_vm3 = vcmask 244896   ;;  %s75_s0 = inlined_call_operand.vmem [shape: f32[5,10], index: 0, kind: input, shape index: {}]   ;;  %s76_s1 = inlined_call_operand.vmem [shape: f32[50], index: 1, kind: output, shape index: {}]  }
   0x1   :  { %v35_v0 = vld [vmem:[%s75_s0 + $0x4] sm:$0x1]   ;;  %v37_v1 = vld [vmem:[%s75_s0 + $0x2] sm:$0x1]   ;;  %v36_v2 = vld [vmem:[%s75_s0 + $0x3] sm:$0x1]  }
   0x2   :  { %7 = vrot.lane.b32.xlu0 %v35_v0, %s43_s10  ;;  %19 = vrot.lane.b32.xlu1 %v37_v1, %s44_s11  ;;  %v38_v3 = vld [vmem:[%s75_s0 + $0x1] sm:$0x1]   ;;  %v2_v4 = vld [vmem:[%s75_s0] sm:$0x1]   ;;  %s45_s0 = smov 30   ;;  %s46_s18 = smov 10  }
   0x3   :  { %4 = vst.msk [vmem:[#allocation0] sm:$0x1] %vm3_vm0, %v2_v4   ;;  %vm27_vm4 = vcmask 162896  }
   0x6   :  { %13 = vrot.lane.b32.xlu0 %v36_v2, %s45_s0  ;;  %25 = vrot.lane.b32.xlu1 %v38_v3, %s46_s18 }
  0x74   :  { %v8_v5 = vpop.permute.xlu0 %7   ;;  %v20_v6 = vpop.permute.xlu1 %19  }
  0x75   :  { %10 = vst.msk [vmem:[#allocation0] sm:$0x1] %vm9_vm1, %v8_v5  }
  0x78   :  { %v14_v7 = vpop.permute.xlu0 %13   ;;  %v26_v8 = vpop.permute.xlu1 %25  }
  0x79   :  { %16 = vst.msk [vmem:[#allocation0] sm:$0x1] %vm15_vm2, %v14_v7  }
  0x7a   :  { %22 = vst.msk [vmem:[#allocation0] sm:$0x1] %vm21_vm3, %v20_v6  }
  0x7b   :  { %28 = vst.msk [vmem:[#allocation0] sm:$0x1] %vm27_vm4, %v26_v8  }
  0x82   :  { %v32_v9 = vld [vmem:[#allocation0] sm:$0x1] }
  0x83   :  { %34 = vst [vmem:[%s76_s1] sm:$0x1] %v32_v9 }

// kernel: gatnet_sf_forward.1
= control target key start
LH: loop header
LB: loop body
LE: loop exit
PB: predicated region body
PF: predicated region fallthrough
CT: control target
= control target key end

     0   :  { %s6941_s6 = smov 1   ;;  %s6942_s10 = smov 2   ;;  %s7967_s0 = inlined_call_operand.smem [shape: u32[47], index: -1, kind: input, shape index: {}] }
   0x1   :  { %s7007_s5 = sld [smem:[%s7967_s0]]   ;;  %s6943_s14 = smov 3  }
   0x2   :  { %s7012_s9 = sld [smem:[%s7967_s0 + %s6941_s6]]   ;;  %s6944_s18 = smov 4  }
   0x3   :  { %s7017_s13 = sld [smem:[%s7967_s0 + %s6942_s10]]   ;;  %s6945_s22 = smov 5  }
   0x4   :  { %s7022_s17 = sld [smem:[%s7967_s0 + %s6943_s14]]   ;;  %s6946_s26 = smov 6  }
   0x5   :  { %s7027_s21 = sld [smem:[%s7967_s0 + %s6944_s18]]   ;;  %s6947_s30 = smov 7  }
   0x6   :  { %s7032_s25 = sld [smem:[%s7967_s0 + %s6945_s22]]   ;;  %s6948_s4 = smov 8  }
   0x7   :  { %s7037_s29 = sld [smem:[%s7967_s0 + %s6946_s26]]   ;;  %s6949_s10 = smov 9  }
   0x8   :  { %s7042_s3 = sld [smem:[%s7967_s0 + %s6947_s30]]   ;;  %s6950_s15 = smov 10  }
   0x9   :  { %s7047_s8 = sld [smem:[%s7967_s0 + %s6948_s4]]   ;;  %s6951_s20 = smov 11  }
   0xa   :  { %s7052_s14 = sld [smem:[%s7967_s0 + %s6949_s10]]   ;;  %s6952_s26 = smov 12  }
   0xb   :  { %s7057_s19 = sld [smem:[%s7967_s0 + %s6950_s15]]   ;;  %s6953_s1 = smov 13  }
   0xc   :  { %s7062_s24 = sld [smem:[%s7967_s0 + %s6951_s20]]   ;;  %s6954_s7 = smov 14  }
   0xd   :  { %s7067_s30 = sld [smem:[%s7967_s0 + %s6952_s26]]   ;;  %s6955_s15 = smov 15  }
   0xe   :  { %s7072_s6 = sld [smem:[%s7967_s0 + %s6953_s1]]   ;;  %s6956_s22 = smov 16  }
   0xf   :  { %s7077_s12 = sld [smem:[%s7967_s0 + %s6954_s7]]   ;;  %s6957_s28 = smov 17  }
  0x10   :  { %s7082_s20 = sld [smem:[%s7967_s0 + %s6955_s15]]   ;;  %s6958_s7 = smov 18  }
  0x11   :  { %s7087_s27 = sld [smem:[%s7967_s0 + %s6956_s22]]   ;;  %s6959_s15 = smov 19  }
  0x12   :  { %s7092_s4 = sld [smem:[%s7967_s0 + %s6957_s28]]   ;;  %s6960_s22 = smov 20  }
  0x13   :  { %7988 = sst [smem:[#allocation16_spill]] %s7067_s30  ;;  %s6961_s28 = smov 21  }
  0x14   :  { %7989 = sst [smem:[#allocation17_spill]] %s7072_s6 }
  0x15   :  { %7990 = sst [smem:[#allocation18_spill]] %s7077_s12 }
  0x16   :  { %7991 = sst [smem:[#allocation19_spill]] %s7082_s20 }
  0x17   :  { %7992 = sst [smem:[#allocation20_spill]] %s7087_s27 }
  0x18   :  { %7993 = sst [smem:[#allocation21_spill]] %s7092_s4 }
  0x19   :  { %s7097_s12 = sld [smem:[%s7967_s0 + %s6958_s7]]   ;;  %s6962_s7 = smov 22  }
  0x1a   :  { %s7102_s20 = sld [smem:[%s7967_s0 + %s6959_s15]]   ;;  %s6963_s15 = smov 23  }
  0x1b   :  { %s7107_s27 = sld [smem:[%s7967_s0 + %s6960_s22]]   ;;  %s6964_s22 = smov 24  }
  0x1c   :  { %s7112_s4 = sld [smem:[%s7967_s0 + %s6961_s28]]   ;;  %s6965_s28 = smov 25  }
  0x1d   :  { %s7132_s6 = sld [smem:[%s7967_s0 + %s6965_s28]]   ;;  %s6969_s28 = smov 29  }
  0x1f   :  { %7994 = sst [smem:[#allocation22_spill]] %s7097_s12 }
  0x20   :  { %7995 = sst [smem:[#allocation23_spill]] %s7102_s20 }
  0x21   :  { %7996 = sst [smem:[#allocation24_spill]] %s7107_s27 }
  0x22   :  { %s7117_s12 = sld [smem:[%s7967_s0 + %s6962_s7]]   ;;  %s6966_s7 = smov 26  }
  0x23   :  { %s7122_s20 = sld [smem:[%s7967_s0 + %s6963_s15]]   ;;  %s6967_s15 = smov 27  }
  0x24   :  { %s7127_s27 = sld [smem:[%s7967_s0 + %s6964_s22]]   ;;  %s6968_s22 = smov 28  }
  0x25   :  { %8000 = sst [smem:[#allocation28_spill]] %s7132_s6 }
  0x26   :  { %s7152_s6 = sld [smem:[%s7967_s0 + %s6969_s28]]   ;;  %s6973_s28 = smov 33  }
  0x28   :  { %7997 = sst [smem:[#allocation25_spill]] %s7117_s12 }
  0x29   :  { %7998 = sst [smem:[#allocation26_spill]] %s7122_s20 }
  0x2a   :  { %7999 = sst [smem:[#allocation27_spill]] %s7127_s27 }
  0x2b   :  { %s7137_s12 = sld [smem:[%s7967_s0 + %s6966_s7]]   ;;  %s6970_s7 = smov 30  }
  0x2c   :  { %s7142_s20 = sld [smem:[%s7967_s0 + %s6967_s15]]   ;;  %s6971_s15 = smov 31  }
  0x2d   :  { %s7147_s27 = sld [smem:[%s7967_s0 + %s6968_s22]]   ;;  %s6972_s22 = smov 32  }
  0x2e   :  { %8004 = sst [smem:[#allocation32_spill]] %s7152_s6 }
  0x2f   :  { %s7172_s6 = sld [smem:[%s7967_s0 + %s6973_s28]]   ;;  %s6977_s28 = smov 38  }
  0x31   :  { %8001 = sst [smem:[#allocation29_spill]] %s7137_s12 }
  0x32   :  { %8002 = sst [smem:[#allocation30_spill]] %s7142_s20 }
  0x33   :  { %8003 = sst [smem:[#allocation31_spill]] %s7147_s27 }
  0x34   :  { %s7157_s12 = sld [smem:[%s7967_s0 + %s6970_s7]]   ;;  %s6974_s7 = smov 34  }
  0x35   :  { %s7162_s20 = sld [smem:[%s7967_s0 + %s6971_s15]]   ;;  %s6975_s15 = smov 35  }
  0x36   :  { %s7167_s27 = sld [smem:[%s7967_s0 + %s6972_s22]]   ;;  %s6976_s22 = smov 36  }
  0x37   :  { %8007 = sst [smem:[#allocation35_spill]] %s7172_s6 }
  0x38   :  { %s7182_s30 = sld [smem:[%s7967_s0 + %s6975_s15]]   ;;  %s6979_s15 = smov 40  }
  0x39   :  { %s7192_s6 = sld [smem:[%s7967_s0 + %s6977_s28]]   ;;  %s6981_s28 = smov 42  }
  0x3a   :  { %8005 = sst [smem:[#allocation33_spill]] %s7157_s12 }
  0x3b   :  { %s7177_s12 = sld [smem:[%s7967_s0 + %s6974_s7]]   ;;  %s6978_s7 = smov 39  }
  0x3c   :  { %8006 = sst [smem:[#allocation34_spill]] %s7167_s27 }
  0x3d   :  { %s7187_s27 = sld [smem:[%s7967_s0 + %s6976_s22]]   ;;  %s6980_s22 = smov 41  }
  0x3e   :  { %8009 = sst [smem:[#allocation37_spill]] %s7182_s30 }
  0x3f   :  { %8011 = sst [smem:[#allocation39_spill]] %s7192_s6 }
  0x40   :  { %s7202_s30 = sld [smem:[%s7967_s0 + %s6979_s15]]   ;;  %s6983_s15 = smov 44  }
  0x41   :  { %8008 = sst [smem:[#allocation36_spill]] %s7177_s12 }
  0x42   :  { %s7197_s12 = sld [smem:[%s7967_s0 + %s6978_s7]]   ;;  %s6982_s7 = smov 43  }
  0x43   :  { %8010 = sst [smem:[#allocation38_spill]] %s7187_s27 }
  0x44   :  { %s7207_s27 = sld [smem:[%s7967_s0 + %s6980_s22]]   ;;  %s6984_s22 = smov 45  }
  0x45   :  { %s7212_s6 = sld [smem:[%s7967_s0 + %s6981_s28]]   ;;  %s6985_s28 = smov 46  }
  0x46   :  { %8013 = sst [smem:[#allocation41_spill]] %s7202_s30 }
  0x47   :  { %s7222_s30 = sld [smem:[%s7967_s0 + %s6983_s15]]  }
  0x48   :  { %8012 = sst [smem:[#allocation40_spill]] %s7197_s12 }
  0x49   :  { %s7217_s12 = sld [smem:[%s7967_s0 + %s6982_s7]]  }
  0x4a   :  { %8014 = sst [smem:[#allocation42_spill]] %s7207_s27 }
  0x4b   :  { %8015 = sst [smem:[#allocation43_spill]] %s7212_s6 }
  0x4c   :  { %s7227_s27 = sld [smem:[%s7967_s0 + %s6984_s22]]  }
  0x4d   :  { %s7232_s6 = sld [smem:[%s7967_s0 + %s6985_s28]]  }
  0x4e   :  { %98 = vsyncpa [#allocation3], 0 }
  0x4f   :  { %99 = vsyncpa [#allocation6], 0 }
  0x50   :  { %100 = vsyncpa [#allocation9], 0 }
  0x51   :  { %101 = vsyncpa [#allocation4], 0  ;;  %s6986_s7 = smov [#allocation5]   ;;  %s6987_s11 = smov [#allocation8]  }
  0x52   :  { %s158_s10 = sshll.u32 %s6986_s7, 4  ;;  %s218_s15 = sshll.u32 %s6987_s11, 4  ;;  %s159_s10 = int_to_ptr.vmem [resolvable:$true] %s158_s10  ;;  %s219_s15 = int_to_ptr.vmem [resolvable:$true] %s218_s15 }
  0x53   :  { %s6801_s16 = scalar_lea.hbm %s7112_s4, 16 }
  0x54   :  { %p6802_p0 = scmp.ne.s32.totalorder %s7112_s4, %s6801_s16  ;;  %p6805_p1 = scmp.lt.u32.totalorder %s6801_s16, %s7112_s4 }
  0x56   :  { %p6807_p2 = pnand %p6805_p1, %p6802_p0 }
  0x58   :  { %6810 = shalt.err (!%p6807_p2)
}
  0x59   :  { %s6811_s0 = scalar_lea.vmem %s159_s10, 16  ;;  %s6815_s18 = scalar_lea.vmem %s159_s10, 32 }
  0x5a   :  { %p6812_p3 = scmp.ne.s32.totalorder %s159_s10, %s6811_s0  ;;  %p6816_p4 = scmp.lt.s32.totalorder %s159_s10, %s159_s10 }
  0x5b   :  { %p6817_p5 = scmp.lt.s32.totalorder %s6815_s18, %s6811_s0 }
  0x5d   :  { %p6818_p6 = por %p6817_p5, %p6816_p4 }
  0x5f   :  { %p6819_p7 = pnand %p6818_p6, %p6812_p3 }
  0x61   :  { %6822 = shalt.err (!%p6819_p7)
}
  0x62   :  { %161 = dma.hbm_to_vmem [thread:$0]  %s7112_s4, 16, %s159_s10, [#allocation6]  }
  0x63   :  { %s6823_s22 = scalar_lea.hbm %s7217_s12, 16 }
  0x64   :  { %p6824_p8 = scmp.ne.s32.totalorder %s7217_s12, %s6823_s22  ;;  %p6827_p9 = scmp.lt.u32.totalorder %s6823_s22, %s7217_s12 }
  0x66   :  { %p6829_p10 = pnand %p6827_p9, %p6824_p8 }
  0x68   :  { %6832 = shalt.err (!%p6829_p10)
}
  0x69   :  { %s6833_s23 = scalar_lea.vmem %s219_s15, 16  ;;  %s6837_s26 = scalar_lea.vmem %s219_s15, 32 }
  0x6a   :  { %p6834_p11 = scmp.ne.s32.totalorder %s219_s15, %s6833_s23  ;;  %p6838_p12 = scmp.lt.s32.totalorder %s219_s15, %s219_s15 }
  0x6b   :  { %p6839_p13 = scmp.lt.s32.totalorder %s6837_s26, %s6833_s23 }
  0x6d   :  { %p6840_p0 = por %p6839_p13, %p6838_p12 }
  0x6f   :  { %p6841_p1 = pnand %p6840_p0, %p6834_p11 }
  0x71   :  { %6844 = shalt.err (!%p6841_p1)
}
  0x72   :  { %221 = dma.hbm_to_vmem [thread:$0]  %s7217_s12, 16, %s219_s15, [#allocation9]  }
  0x73   :  { %s6988_s28 = smov [#allocation2]   ;;  %s6989_s1 = smov [#allocation7]  }
  0x74   :  { %s120_s4 = sshll.u32 %s6988_s28, 4  ;;  %s186_s2 = sshll.u32 %s6989_s1, 4  ;;  %s121_s4 = int_to_ptr.vmem [resolvable:$true] %s120_s4  ;;  %s187_s2 = int_to_ptr.vmem [resolvable:$true] %s186_s2 }
  0x75   :  { %s6845_s7 = scalar_lea.hbm %s7037_s29, 16 }
  0x76   :  { %p6846_p2 = scmp.ne.s32.totalorder %s7037_s29, %s6845_s7  ;;  %p6849_p3 = scmp.lt.u32.totalorder %s6845_s7, %s7037_s29 }
  0x78   :  { %p6851_p4 = pnand %p6849_p3, %p6846_p2 }
  0x7a   :  { %6854 = shalt.err (!%p6851_p4)
}
  0x7b   :  { %s6855_s10 = scalar_lea.vmem %s121_s4, 16  ;;  %s6859_s11 = scalar_lea.vmem %s121_s4, 32 }
  0x7c   :  { %p6856_p5 = scmp.ne.s32.totalorder %s121_s4, %s6855_s10  ;;  %p6860_p6 = scmp.lt.s32.totalorder %s121_s4, %s121_s4 }
  0x7d   :  { %p6861_p7 = scmp.lt.s32.totalorder %s6859_s11, %s6855_s10 }
  0x7f   :  { %p6862_p8 = por %p6861_p7, %p6860_p6 }
  0x81   :  { %p6863_p9 = pnand %p6862_p8, %p6856_p5 }
  0x83   :  { %6866 = shalt.err (!%p6863_p9)
}
  0x84   :  { %123 = dma.hbm_to_vmem [thread:$0]  %s7037_s29, 16, %s121_s4, [#allocation3]  }
  0x85   :  { %s6867_s12 = scalar_lea.hbm %s7162_s20, 16 }
  0x86   :  { %p6868_p10 = scmp.ne.s32.totalorder %s7162_s20, %s6867_s12  ;;  %p6871_p11 = scmp.lt.u32.totalorder %s6867_s12, %s7162_s20 }
  0x88   :  { %p6873_p12 = pnand %p6871_p11, %p6868_p10 }
  0x8a   :  { %6876 = shalt.err (!%p6873_p12)
}
  0x8b   :  { %s6877_s15 = scalar_lea.vmem %s187_s2, 16  ;;  %s6881_s16 = scalar_lea.vmem %s187_s2, 32 }
  0x8c   :  { %p6878_p13 = scmp.ne.s32.totalorder %s187_s2, %s6877_s15  ;;  %p6882_p0 = scmp.lt.s32.totalorder %s187_s2, %s187_s2 }
  0x8d   :  { %p6883_p1 = scmp.lt.s32.totalorder %s6881_s16, %s6877_s15 }
  0x8f   :  { %p6884_p2 = por %p6883_p1, %p6882_p0 }
  0x91   :  { %p6885_p3 = pnand %p6884_p2, %p6878_p13 }
  0x93   :  { %6888 = shalt.err (!%p6885_p3)
}
  0x94   :  { %189 = dma.hbm_to_vmem [thread:$0]  %s7162_s20, 16, %s187_s2, [#allocation6]  }
  0x95   :  { %s6990_s0 = smov [#allocation10]   ;;  %s6889_s18 = scalar_lea.hbm %s7227_s27, 16 }
  0x96   :  { %s230_s29 = sshll.u32 %s6990_s0, 4  ;;  %p6890_p4 = scmp.ne.s32.totalorder %s7227_s27, %s6889_s18  ;;  %s231_s29 = int_to_ptr.vmem [resolvable:$true] %s230_s29 }
  0x97   :  { %p6893_p5 = scmp.lt.u32.totalorder %s6889_s18, %s7227_s27 }
  0x99   :  { %p6895_p6 = pnand %p6893_p5, %p6890_p4 }
  0x9b   :  { %6898 = shalt.err (!%p6895_p6)
}
  0x9c   :  { %s6899_s22 = scalar_lea.vmem %s231_s29, 16  ;;  %s6903_s23 = scalar_lea.vmem %s231_s29, 32 }
  0x9d   :  { %p6900_p7 = scmp.ne.s32.totalorder %s231_s29, %s6899_s22  ;;  %p6904_p8 = scmp.lt.s32.totalorder %s231_s29, %s231_s29 }
  0x9e   :  { %p6905_p9 = scmp.lt.s32.totalorder %s6903_s23, %s6899_s22 }
  0xa0   :  { %p6906_p10 = por %p6905_p9, %p6904_p8 }
  0xa2   :  { %p6907_p11 = pnand %p6906_p10, %p6900_p7 }
  0xa4   :  { %6910 = shalt.err (!%p6907_p11)
}
  0xa5   :  { %233 = dma.hbm_to_vmem [thread:$0]  %s7227_s27, 16, %s231_s29, [#allocation9]  }
  0xa6   :  { %6933 = dma.done.wait [#allocation3], 16  }
  0xa7   :  { %6934 = vsyncadd [#allocation3], 4294967280 }
  0xa8   :  { %6935 = dma.done.wait [#allocation6], 32  }
  0xa9   :  { %6936 = vsyncadd [#allocation6], 4294967264 }
  0xaa   :  { %6937 = dma.done.wait [#allocation9], 32  }
  0xab   :  { %6938 = vsyncadd [#allocation9], 4294967264  ;;  %vm374_vm0 = vcmask 1043456   ;;  %vm361_vm1 = vcmask 31744   ;;  %v261_v0 = vld [vmem:[%s7022_s17] sm:$0xf] }
  0xac   :  { %v253_v1 = vld [vmem:[%s7007_s5] sm:$0xff]  ;;  %v254_v2 = vld [vmem:[%s7007_s5 + $0x8] sm:$0xff]  ;;  %5936 = vmatprep.subr.msk.mxu0 %vm374_vm0, %v261_v0  ;;  %v255_v3 = vld [vmem:[%s7007_s5 + $0x10] sm:$0xff]  ;;  %vm476_vm2 = vcmask 1041408   ;;  %v6991_v25 = vmov 0.0   ;;  %vm463_vm3 = vcmask 408576  }
  0xad   :  { %5938 = vmatprep.mubr.msk.f32.mxu0 %vm361_vm1, %v253_v1  ;;  %v277_v4 = vld [vmem:[%s7032_s25 + $0x8] sm:$0xff]  ;;  %5937 = vmatpush3.msk.msra.mxu0 %vm374_vm0, %v261_v0  ;;  %v256_v5 = vld [vmem:[%s7007_s5 + $0x18] sm:$0xff]  ;;  %v276_v7 = vld [vmem:[%s7032_s25] sm:$0xff]  ;;  %vm580_vm4 = vcmask 261120   ;;  %vm1041_vm5 = vcmask 1044480   ;;  %vm1028_vm6 = vcmask 39936  }
  0xae   :  { %v279_v6 = vld [vmem:[%s7032_s25 + $0x18] sm:$0xff]  ;;  %v278_v8 = vld [vmem:[%s7032_s25 + $0x10] sm:$0xff]  ;;  %5939 = vmatmul.mubr.msk.f32.vlgmr.msra.gmra.mrb[0].mxu0 %vm361_vm1, %v254_v2  ;;  %v281_v11 = vld [vmem:[%s7032_s25 + $0x28] sm:$0xff]  ;;  %547 = vmatprep.mubr.f32.mxu1 %v6991_v25  ;;  %s8016_s5 = sld [smem:[#allocation16_spill]]  ;;  %vm6995_vm7 = vmmov 0   ;;  %s8018_s17 = sld [smem:[#allocation18_spill]] }
  0xaf   :  { %v6355_v9 = vpack.c.bf16 %v279_v6, %v277_v4  ;;  %v6357_v10 = vpack.c.bf16 %v278_v8, %v276_v7  ;;  %v283_v12 = vld [vmem:[%s7032_s25 + $0x38] sm:$0xff]  ;;  %v280_v13 = vld [vmem:[%s7032_s25 + $0x20] sm:$0xff]  ;;  %5941 = vmatprep.mubr.msk.f32.mxu0 %vm361_vm1, %v255_v3  ;;  %v282_v15 = vld [vmem:[%s7032_s25 + $0x30] sm:$0xff]  ;;  %s8031_s20 = sld [smem:[#allocation27_spill]]  ;;  %s8032_s27 = sld [smem:[#allocation28_spill]] }
  0xb0   :  { %v6359_v14 = vpack.c.bf16 %v283_v12, %v281_v11  ;;  %v285_v16 = vld [vmem:[%s7032_s25 + $0x48] sm:$0xff]  ;;  %v287_v17 = vld [vmem:[%s7032_s25 + $0x58] sm:$0xff]  ;;  %v6361_v18 = vpack.c.bf16 %v282_v15, %v280_v13  ;;  %v284_v20 = vld [vmem:[%s7032_s25 + $0x40] sm:$0xff]  ;;  %s8033_s26 = sld [smem:[#allocation29_spill]]  ;;  %s8034_s28 = sld [smem:[#allocation31_spill]] }
  0xb1   :  { %6356 = vmatprep.subr.bf16.mxu1 %v6355_v9  ;;  %v6363_v19 = vpack.c.bf16 %v287_v17, %v285_v16  ;;  %v286_v21 = vld [vmem:[%s7032_s25 + $0x50] sm:$0xff]  ;;  %v289_v23 = vld [vmem:[%s7032_s25 + $0x68] sm:$0x3]  ;;  %v288_v24 = vld [vmem:[%s7032_s25 + $0x60] sm:$0x3]  ;;  %v6992_v17 = vmov 1.0  }
  0xb2   :  { %6358 = vmatpush1.bf16.msra.mxu1 %v6357_v10  ;;  %5942 = vmatmul.mubr.msk.f32.gmra.mrb[2].mxu0 %vm361_vm1, %v256_v5  ;;  %v6365_v22 = vpack.c.bf16 %v286_v21, %v284_v20  ;;  %v291_v32 = vld [vmem:[%s7042_s3] sm:$0xff]  ;;  %v293_v33 = vld [vmem:[%s7042_s3 + $0x10] sm:$0xff]  ;;  %v292_v34 = vld [vmem:[%s7042_s3 + $0x8] sm:$0xff]  ;;  %s8020_s25 = sld [smem:[#allocation20_spill]]  ;;  %s8035_s4 = sld [smem:[#allocation33_spill]] }
  0xb3   :  { %6360 = vmatprep.subr.bf16.mxu1 %v6359_v14  ;;  %648 = vmatprep.mubr.f32.mxu0 %v6991_v25  ;;  %v7314_v35 = vpack.c.bf16 %v293_v33, %v291_v32  ;;  %v294_v36 = vld [vmem:[%s7042_s3 + $0x18] sm:$0xff]  ;;  %v295_v38 = vld [vmem:[%s7042_s3 + $0x20] sm:$0xff]  ;;  %v297_v39 = vld [vmem:[%s7042_s3 + $0x30] sm:$0xff]  ;;  %s8036_s1 = sld [smem:[#allocation30_spill]]  ;;  %s8037_s2 = sld [smem:[#allocation32_spill]] }
  0xb4   :  { %v7317_v37 = vpack.c.bf16 %v294_v36, %v292_v34  ;;  %v296_v40 = vld [vmem:[%s7042_s3 + $0x28] sm:$0xff]  ;;  %v7324_v41 = vpack.c.bf16 %v297_v39, %v295_v38  ;;  %v298_v42 = vld [vmem:[%s7042_s3 + $0x38] sm:$0xff]  ;;  %v249_v44 = vld [vmem:[%s7012_s9] sm:$0xff]  ;;  %s8021_s3 = sld [smem:[#allocation22_spill]]  ;;  %s8038_s7 = sld [smem:[#allocation34_spill]] }
  0xb5   :  { %v7327_v43 = vpack.c.bf16 %v298_v42, %v296_v40  ;;  %v250_v45 = vld [vmem:[%s7012_s9 + $0x8] sm:$0xff]  ;;  %v251_v46 = vld [vmem:[%s7012_s9 + $0x10] sm:$0xff]  ;;  %v252_v47 = vld [vmem:[%s7012_s9 + $0x18] sm:$0xff]  ;;  %s8039_s10 = sld [smem:[#allocation35_spill]]  ;;  %s8040_s11 = sld [smem:[#allocation36_spill]] }
  0xb6   :  { %6362 = vmatpush1.bf16.msra.mxu1 %v6361_v18  ;;  %v263_v0 = vld [vmem:[%s7027_s21 + $0x8] sm:$0xff]  ;;  %v265_v1 = vld [vmem:[%s7027_s21 + $0x18] sm:$0xff]  ;;  %v262_v7 = vld [vmem:[%s7027_s21] sm:$0xff]  ;;  %s8041_s12 = sld [smem:[#allocation37_spill]]  ;;  %s8042_s15 = sld [smem:[#allocation38_spill]] }
  0xb7   :  { %6364 = vmatprep.subr.bf16.mxu1 %v6363_v19  ;;  %v6375_v6 = vpack.c.bf16 %v265_v1, %v263_v0  ;;  %v264_v8 = vld [vmem:[%s7027_s21 + $0x10] sm:$0xff]  ;;  %v267_v9 = vld [vmem:[%s7027_s21 + $0x28] sm:$0xff]  ;;  %v269_v10 = vld [vmem:[%s7027_s21 + $0x38] sm:$0xff]  ;;  %s8043_s16 = sld [smem:[#allocation39_spill]]  ;;  %s8044_s0 = sld [smem:[#allocation41_spill]] }
  0xb8   :  { %v6377_v11 = vpack.c.bf16 %v264_v8, %v262_v7  ;;  %v6379_v12 = vpack.c.bf16 %v269_v10, %v267_v9  ;;  %v266_v13 = vld [vmem:[%s7027_s21 + $0x20] sm:$0xff]  ;;  %v268_v14 = vld [vmem:[%s7027_s21 + $0x30] sm:$0xff]  ;;  %v271_v15 = vld [vmem:[%s7027_s21 + $0x48] sm:$0xff]  ;;  %s8045_s29 = sld [smem:[#allocation43_spill]]  ;;  %s8046_s18 = sld [smem:[#allocation42_spill]] }
  0xb9   :  { %v273_v16 = vld [vmem:[%s7027_s21 + $0x58] sm:$0xff]  ;;  %v6381_v18 = vpack.c.bf16 %v268_v14, %v266_v13  ;;  %v270_v20 = vld [vmem:[%s7027_s21 + $0x40] sm:$0xff]  ;;  %v272_v21 = vld [vmem:[%s7027_s21 + $0x50] sm:$0xff]  ;;  %s8047_s22 = sld [smem:[#allocation40_spill]]  ;;  %s6998_s23 = smov [#allocation11]  }
  0xba   :  { %6366 = vmatpush1.bf16.msra.mxu1 %v6365_v22  ;;  %v6383_v19 = vpack.c.bf16 %v273_v16, %v271_v15  ;;  %v6385_v22 = vpack.c.bf16 %v272_v21, %v270_v20  ;;  %vm6501_vm8 = vmpackc.low %vm463_vm3, %vm463_vm3 }
  0xbb   :  { %5572 = vmatprep.subr.msk.mxu1 %vm476_vm2, %v289_v23  ;;  %v275_v23 = vld [vmem:[%s7027_s21 + $0x68] sm:$0x3] }
  0xbe   :  { %5573 = vmatpush1.msk.msra.mxu1 %vm476_vm2, %v288_v24  ;;  %v274_v24 = vld [vmem:[%s7027_s21 + $0x60] sm:$0x3]  ;;  %s8019_s21 = sld [smem:[#allocation19_spill]] }
  0xbf   :  { %6388 = vmatprep.subr.bf16.mxu1 %v7317_v37 }
 0x181   :  { %v7283_v26 = vpop.f32.mrb[0].mxu0 }
 0x182   :  { %v7285_v27 = vpop.f32.mrb[1].mxu0 }
 0x183   :  { %v7289_v28 = vpack.c.bf16 %v7283_v26, %v7285_v27  ;;  %5574 = vmatmul.mubr.msk.f32.vlgmr.msra.gmra.mrb[0].mxu1 %vm463_vm3, %v7285_v27 }
 0x184   :  { %553 = vmatprep.mubr.f32.mxu1 %v6991_v25  ;;  %6390 = vmatpush1.bf16.msra.mxu1 %v7314_v35 }
 0x185   :  { %v7294_v29 = vpop.f32.mrb[2].mxu0  ;;  %6392 = vmatprep.subr.bf16.mxu1 %v7327_v43 }
 0x186   :  { %v7296_v30 = vpop.f32.mrb[3].mxu0 }
 0x187   :  { %5575 = vmatmul.mubr.msk.f32.gmra.mrb[2].mxu1 %vm463_vm3, %v7283_v26  ;;  %v7302_v31 = vpack.c.bf16 %v7294_v29, %v7296_v30 }
 0x188   :  { %559 = vmatprep.mubr.f32.mxu1 %v6991_v25  ;;  %6394 = vmatpush1.bf16.msra.mxu1 %v7324_v41 }
 0x18b   :  { %5576 = vmatmul.mubr.msk.f32.gmra.mrb[4].mxu1 %vm463_vm3, %v7296_v30 }
 0x18c   :  { %565 = vmatprep.mubr.f32.mxu1 %v6991_v25 }
 0x18f   :  { %5577 = vmatmul.mubr.msk.f32.gmra.mrb[6].mxu1 %vm463_vm3, %v7294_v29 }
 0x190   :  { %866 = vmatprep.mubr.f32.mxu1 %v6991_v25 }
 0x193   :  { %5585 = vmatmul.mubr.msk.f32.vlgmr.msra.gmra.mrb[8].mxu1 %vm580_vm4, %v249_v44 }
 0x194   :  { %872 = vmatprep.mubr.f32.mxu1 %v6991_v25 }
 0x197   :  { %5586 = vmatmul.mubr.msk.f32.gmra.mrb[10].mxu1 %vm580_vm4, %v250_v45  ;;  %v307_v45 = vld [vmem:[%s7047_s8 + $0x40] sm:$0xff] }
 0x198   :  { %878 = vmatprep.mubr.f32.mxu1 %v6991_v25 }
 0x19b   :  { %5587 = vmatmul.mubr.msk.f32.gmra.mrb[12].mxu1 %vm580_vm4, %v251_v46  ;;  %v308_v46 = vld [vmem:[%s7047_s8 + $0x48] sm:$0xff] }
 0x19c   :  { %884 = vmatprep.mubr.f32.mxu1 %v6991_v25 }
 0x19f   :  { %5588 = vmatmul.mubr.msk.f32.gmra.mrb[14].mxu1 %vm580_vm4, %v252_v47  ;;  %v6408_v47 = vpack.c.bf16 %v308_v46, %v307_v45  ;;  %v313_v46 = vld [vmem:[%s7047_s8 + $0x70] sm:$0xff] }
 0x1a0   :  { %1112 = vmatprep.mubr.f32.mxu1 %v6991_v25 }
 0x256   :  { %v549_v48 = vpop.f32.mrb[0].mxu1 }
 0x257   :  { %v551_v49 = vpop.f32.mrb[1].mxu1  ;;  %v572_v51 = vmul.f32 %v549_v48, %v291_v32  ;;  %v299_v32 = vld [vmem:[%s7047_s8] sm:$0xff]  ;;  %v309_v48 = vld [vmem:[%s7047_s8 + $0x50] sm:$0xff] }
 0x258   :  { %v573_v54 = vmul.f32 %v551_v49, %v292_v34  ;;  %v6993_v34 = vmov 0.0|0.0   ;;  %v310_v49 = vld [vmem:[%s7047_s8 + $0x58] sm:$0xff] }
 0x25a   :  { %v555_v50 = vpop.f32.mrb[2].mxu1 }
 0x25b   :  { %v574_v52 = vmul.f32 %v555_v50, %v293_v33  ;;  %v557_v53 = vpop.f32.mrb[3].mxu1  ;;  %v301_v33 = vld [vmem:[%s7047_s8 + $0x10] sm:$0xff]  ;;  %v6411_v50 = vpack.c.bf16 %v310_v49, %v309_v48  ;;  %v315_v49 = vld [vmem:[%s7047_s8 + $0x80] sm:$0xff] }
 0x25c   :  { %v575_v55 = vmul.f32 %v557_v53, %v294_v36  ;;  %v302_v36 = vld [vmem:[%s7047_s8 + $0x18] sm:$0xff] }
 0x25d   :  { %v6369_v56 = vpack.c.bf16 %v574_v52, %v572_v51  ;;  %v655_v52 = vlaneseq }
 0x25e   :  { %v6367_v57 = vpack.c.bf16 %v575_v55, %v573_v54  ;;  %v561_v58 = vpop.f32.mrb[4].mxu1 }
 0x25f   :  { %v563_v59 = vpop.f32.mrb[5].mxu1  ;;  %v576_v61 = vmul.f32 %v561_v58, %v295_v38  ;;  %v6399_v38 = vpack.c.bf16 %v302_v36, %v301_v33  ;;  %v656_v54 = vshrl.u32 %v655_v52, 7 }
 0x260   :  { %6368 = vmatprep.subr.bf16.mxu0 %v6367_v57  ;;  %v577_v2 = vmul.f32 %v563_v59, %v296_v40  ;;  %v305_v40 = vld [vmem:[%s7047_s8 + $0x30] sm:$0xff] }
 0x261   :  { %6370 = vmatpush1.bf16.msra.mxu0 %v6369_v56  ;;  %v7392_v55 = vsub.s32 0, %v656_v54  ;;  %v318_v54 = vld [vmem:[%s7047_s8 + $0x98] sm:$0xff] }
 0x262   :  { %v567_v60 = vpop.f32.mrb[6].mxu1 }
 0x263   :  { %v578_v62 = vmul.f32 %v567_v60, %v297_v39  ;;  %v569_v63 = vpop.f32.mrb[7].mxu1 }
 0x264   :  { %v579_v3 = vmul.f32 %v569_v63, %v298_v42  ;;  %v306_v42 = vld [vmem:[%s7047_s8 + $0x38] sm:$0xff] }
 0x265   :  { %v6373_v4 = vpack.c.bf16 %v578_v62, %v576_v61  ;;  %v6405_v44 = vpack.c.bf16 %v306_v42, %v305_v40  ;;  %v311_v42 = vld [vmem:[%s7047_s8 + $0x60] sm:$0xff] }
 0x266   :  { %v6371_v5 = vpack.c.bf16 %v579_v3, %v577_v2  ;;  %v868_v52 = vpop.f32.mrb[8].mxu1 }
 0x268   :  { %6372 = vmatprep.subr.bf16.mxu0 %v6371_v5 }
 0x269   :  { %6374 = vmatpush1.bf16.msra.mxu0 %v6373_v4 }
 0x26a   :  { %6376 = vmatprep.subr.bf16.mxu0 %v6375_v6 }
 0x26c   :  { %5578 = vmatmul.mubr.msk.f32.vlgmr.msra.gmra.mrb[4].mxu0 %vm580_vm4, %v6992_v17 }
 0x26d   :  { %6378 = vmatpush1.bf16.msra.mxu0 %v6377_v11  ;;  %733 = vmatprep.mubr.f32.mxu0 %v6991_v25 }
 0x26e   :  { %6380 = vmatprep.subr.bf16.mxu0 %v6379_v12 }
 0x271   :  { %6382 = vmatpush1.bf16.msra.mxu0 %v6381_v18 }
 0x272   :  { %6384 = vmatprep.subr.bf16.mxu0 %v6383_v19 }
 0x275   :  { %6386 = vmatpush1.bf16.msra.mxu0 %v6385_v22 }
 0x276   :  { %5579 = vmatprep.subr.msk.mxu0 %vm476_vm2, %v275_v23 }
 0x279   :  { %5580 = vmatpush1.msk.msra.mxu0 %vm476_vm2, %v274_v24 }
 0x27a   :  { %5581 = vmatmul.mubr.msk.f32.vlgmr.msra.gmra.mrb[6].mxu0 %vm463_vm3, %v7285_v27  ;;  %v300_v27 = vld [vmem:[%s7047_s8 + $0x8] sm:$0xff]  ;;  %6395 = vmatprep.subr.bf16.mxu0 %v6993_v34 }
 0x27b   :  { %739 = vmatprep.mubr.f32.mxu0 %v6991_v25 }
 0x27e   :  { %5582 = vmatmul.mubr.msk.f32.gmra.mrb[8].mxu0 %vm463_vm3, %v7283_v26  ;;  %v6396_v26 = vpack.c.bf16 %v300_v27, %v299_v32 }
 0x27f   :  { %745 = vmatprep.mubr.f32.mxu0 %v6991_v25 }
 0x280   :  { %6397 = vmatpush1.bf16.msra.mxu0 %v6396_v26 }
 0x281   :  { %6398 = vmatprep.subr.bf16.mxu0 %v6993_v34 }
 0x282   :  { %5583 = vmatmul.mubr.msk.f32.gmra.mrb[10].mxu0 %vm463_vm3, %v7296_v30  ;;  %v303_v30 = vld [vmem:[%s7047_s8 + $0x20] sm:$0xff] }
 0x283   :  { %751 = vmatprep.mubr.f32.mxu0 %v6991_v25 }
 0x284   :  { %6400 = vmatpush1.bf16.msra.mxu0 %v6399_v38 }
 0x285   :  { %6401 = vmatprep.subr.bf16.mxu0 %v6993_v34 }
 0x286   :  { %5584 = vmatmul.mubr.msk.f32.gmra.mrb[12].mxu0 %vm463_vm3, %v7294_v29  ;;  %v304_v29 = vld [vmem:[%s7047_s8 + $0x28] sm:$0xff] }
 0x287   :  { %v6402_v39 = vpack.c.bf16 %v304_v29, %v303_v30 }
 0x289   :  { %6403 = vmatpush1.bf16.msra.mxu0 %v6402_v39 }
 0x28a   :  { %6404 = vmatprep.subr.bf16.mxu0 %v6993_v34 }
 0x28d   :  { %6406 = vmatpush1.bf16.msra.mxu0 %v6405_v44  ;;  %v312_v44 = vld [vmem:[%s7047_s8 + $0x68] sm:$0xff] }
 0x28e   :  { %6407 = vmatprep.subr.bf16.mxu0 %v6993_v34  ;;  %v6414_v45 = vpack.c.bf16 %v312_v44, %v311_v42 }
 0x291   :  { %6409 = vmatpush1.bf16.msra.mxu0 %v6408_v47  ;;  %v314_v47 = vld [vmem:[%s7047_s8 + $0x78] sm:$0xff] }
 0x292   :  { %6410 = vmatprep.subr.bf16.mxu0 %v6993_v34  ;;  %v6417_v48 = vpack.c.bf16 %v314_v47, %v313_v46  ;;  %v319_v46 = vld [vmem:[%s7052_s14] sm:$0x1f] }
 0x295   :  { %6412 = vmatpush1.bf16.msra.mxu0 %v6411_v50  ;;  %v316_v50 = vld [vmem:[%s7047_s8 + $0x88] sm:$0xff] }
 0x296   :  { %6413 = vmatprep.subr.bf16.mxu0 %v6993_v34 }
 0x299   :  { %6415 = vmatpush1.bf16.msra.mxu0 %v6414_v45  ;;  %v320_v45 = vld [vmem:[%s7052_s14 + $0x8] sm:$0x1f]  ;;  %s8024_s14 = sld [smem:[#allocation24_spill]] }
 0x29a   :  { %6416 = vmatprep.subr.bf16.mxu0 %v6993_v34  ;;  %5593 = vmatprep.subr.msk.mxu1 %vm1041_vm5, %v320_v45 }
 0x29b   :  { %5594 = vmatpush1.msk.msra.mxu1 %vm1041_vm5, %v319_v46 }
 0x29c   :  { %6426 = vmatprep.subr.bf16.mxu1 %v7317_v37 }
 0x29d   :  { %6418 = vmatpush1.bf16.msra.mxu0 %v6417_v48 }
 0x29e   :  { %6419 = vmatprep.subr.bf16.mxu0 %v6993_v34 }
 0x33f   :  { %v650_v51 = vpop.f32.mrb[4].mxu0 }
 0x340   :  { %v652_v53 = vpop.f32.mrb[5].mxu0  ;;  %v658_v56 = vrot.slane %v650_v51, %v7392_v55  ;;  %v6420_v51 = vpack.c.bf16 %v316_v50, %v315_v49 }
 0x341   :  { %v662_v57 = vrot.slane %v652_v53, %v7392_v55  ;;  %v317_v53 = vld [vmem:[%s7047_s8 + $0x90] sm:$0xff]  ;;  %s8023_s8 = sld [smem:[#allocation23_spill]] }
 0x342   :  { %6421 = vmatpush1.bf16.msra.mxu0 %v6420_v51 }
 0x343   :  { %6422 = vmatprep.subr.bf16.mxu0 %v6993_v34 }
 0x34d   :  { %v735_v58 = vpop.f32.mrb[6].mxu0 }
 0x34e   :  { %v736_v59 = vadd.f32 %v735_v58, %v658_v56  ;;  %v737_v60 = vpop.f32.mrb[7].mxu0 }
 0x34f   :  { %v738_v61 = vadd.f32 %v737_v60, %v662_v57 }
 0x350   :  { %v758_v62 = vmul.f32 0.2, %v736_v59 }
 0x351   :  { %v759_v63 = vmul.f32 0.2, %v738_v61  ;;  %v741_v0 = vpop.f32.mrb[8].mxu0 }
 0x352   :  { %v742_v1 = vadd.f32 %v741_v0, %v658_v56  ;;  %v743_v2 = vpop.f32.mrb[9].mxu0  ;;  %v7398_v6 = vmax.f32 %v736_v59, %v758_v62 }
 0x353   :  { %v7396_v3 = vmax.f32 %v738_v61, %v759_v63  ;;  %v744_v4 = vadd.f32 %v743_v2, %v662_v57 }
 0x354   :  { %v760_v5 = vmul.f32 0.2, %v742_v1 }
 0x355   :  { %v761_v7 = vmul.f32 0.2, %v744_v4  ;;  %v747_v8 = vpop.f32.mrb[10].mxu0  ;;  %v774_v9 = vsel %vm580_vm4, %v7396_v3, -inf }
 0x356   :  { %v748_v10 = vadd.f32 %v747_v8, %v658_v56  ;;  %v749_v11 = vpop.f32.mrb[11].mxu0  ;;  %v775_v12 = vmax.f32 %v7398_v6, %v774_v9  ;;  %v768_v15 = vmax.f32 %v742_v1, %v760_v5 }
 0x357   :  { %v7403_v13 = vmax.f32 %v744_v4, %v761_v7  ;;  %v750_v14 = vadd.f32 %v749_v11, %v662_v57 }
 0x358   :  { %v762_v16 = vmul.f32 0.2, %v748_v10  ;;  %776 = vmax.xlane.f32.xlu0 %v775_v12 }
 0x359   :  { %v763_v18 = vmul.f32 0.2, %v750_v14  ;;  %v753_v19 = vpop.f32.mrb[12].mxu0  ;;  %v778_v20 = vsel %vm580_vm4, %v7403_v13, -inf }
 0x35a   :  { %v754_v21 = vadd.f32 %v753_v19, %v658_v56  ;;  %v755_v22 = vpop.f32.mrb[13].mxu0  ;;  %v779_v23 = vmax.f32 %v768_v15, %v778_v20  ;;  %v770_v33 = vmax.f32 %v748_v10, %v762_v16  ;;  %v870_v56 = vpop.f32.mrb[9].mxu1 }
 0x35b   :  { %v771_v24 = vmax.f32 %v750_v14, %v763_v18  ;;  %v756_v32 = vadd.f32 %v755_v22, %v662_v57  ;;  %v6423_v57 = vpack.c.bf16 %v318_v54, %v317_v53  ;;  %v874_v58 = vpop.f32.mrb[10].mxu1 }
 0x35c   :  { %v764_v27 = vmul.f32 0.2, %v754_v21  ;;  %780 = vmax.xlane.f32.xlu0 %v779_v23  ;;  %v876_v59 = vpop.f32.mrb[11].mxu1 }
 0x35d   :  { %v765_v26 = vmul.f32 0.2, %v756_v32  ;;  %v782_v36 = vsel %vm580_vm4, %v771_v24, -inf  ;;  %6424 = vmatpush1.bf16.msra.mxu0 %v6423_v57  ;;  %v880_v60 = vpop.f32.mrb[12].mxu1 }
 0x35e   :  { %v783_v38 = vmax.f32 %v770_v33, %v782_v36  ;;  %v772_v29 = vmax.f32 %v754_v21, %v764_v27  ;;  %6441 = vmatprep.subr.bf16.mxu0 %v6993_v34  ;;  %v882_v61 = vpop.f32.mrb[13].mxu1 }
 0x35f   :  { %v773_v30 = vmax.f32 %v756_v32, %v765_v26  ;;  %v886_v62 = vpop.f32.mrb[14].mxu1 }
 0x360   :  { %784 = vmax.xlane.f32.xlu1 %v783_v38  ;;  %v888_v63 = vpop.f32.mrb[15].mxu1 }
 0x361   :  { %v786_v39 = vsel %vm580_vm4, %v773_v30, -inf }
 0x362   :  { %v787_v40 = vmax.f32 %v772_v29, %v786_v39 }
 0x364   :  { %788 = vmax.xlane.f32.xlu1 %v787_v40 }
 0x3e5   :  { %v777_v0 = vpop.xlane.xlu0 %776 }
 0x3e6   :  { %v891_v1 = vsub.f32 %v7398_v6, %v777_v0  ;;  %v892_v2 = vsub.f32 %v7396_v3, %v777_v0  ;;  %v322_v0 = vld [vmem:[%s7057_s19 + $0x8] sm:$0xff] }
 0x3e8   :  { %v899_v4 = vmul.f32 1.442695, %v891_v1  ;;  %v901_v5 = vmul.f32 1.442695, %v892_v2  ;;  %v324_v1 = vld [vmem:[%s7057_s19 + $0x18] sm:$0xff]  ;;  %v325_v2 = vld [vmem:[%s7057_s19 + $0x20] sm:$0xff] }
 0x3e9   :  { %v781_v7 = vpop.xlane.xlu0 %780 }
 0x3ea   :  { %6725 = vpow2.f32 %v899_v4  ;;  %v893_v8 = vsub.f32 %v768_v15, %v781_v7  ;;  %v894_v9 = vsub.f32 %v7403_v13, %v781_v7  ;;  %v326_v4 = vld [vmem:[%s7057_s19 + $0x28] sm:$0xff]  ;;  %v328_v7 = vld [vmem:[%s7057_s19 + $0x38] sm:$0xff] }
 0x3eb   :  { %6727 = vpow2.f32 %v901_v5  ;;  %v327_v5 = vld [vmem:[%s7057_s19 + $0x30] sm:$0xff] }
 0x3ec   :  { %v903_v10 = vmul.f32 1.442695, %v893_v8  ;;  %v905_v11 = vmul.f32 1.442695, %v894_v9  ;;  %v329_v8 = vld [vmem:[%s7057_s19 + $0x40] sm:$0xff]  ;;  %v330_v9 = vld [vmem:[%s7057_s19 + $0x48] sm:$0xff] }
 0x3ed   :  { %v785_v12 = vpop.xlane.xlu1 %784 }
 0x3ee   :  { %6729 = vpow2.f32 %v903_v10  ;;  %v895_v14 = vsub.f32 %v770_v33, %v785_v12  ;;  %v896_v16 = vsub.f32 %v771_v24, %v785_v12  ;;  %v331_v10 = vld [vmem:[%s7057_s19 + $0x50] sm:$0xff]  ;;  %v333_v12 = vld [vmem:[%s7057_s19 + $0x60] sm:$0xff] }
 0x3ef   :  { %6731 = vpow2.f32 %v905_v11  ;;  %v332_v11 = vld [vmem:[%s7057_s19 + $0x58] sm:$0xff] }
 0x3f0   :  { %v907_v18 = vmul.f32 1.442695, %v895_v14  ;;  %v909_v19 = vmul.f32 1.442695, %v896_v16  ;;  %v334_v14 = vld [vmem:[%s7057_s19 + $0x68] sm:$0xff]  ;;  %v335_v16 = vld [vmem:[%s7057_s19 + $0x70] sm:$0xff] }
 0x3f1   :  { %v789_v6 = vpop.xlane.xlu1 %788 }
 0x3f2   :  { %6733 = vpow2.f32 %v907_v18  ;;  %v897_v3 = vsub.f32 %v772_v29, %v789_v6  ;;  %v898_v20 = vsub.f32 %v773_v30, %v789_v6  ;;  %v336_v18 = vld [vmem:[%s7057_s19 + $0x78] sm:$0xff]  ;;  %v338_v6 = vld [vmem:[%s7057_s19 + $0x88] sm:$0xff] }
 0x3f3   :  { %6735 = vpow2.f32 %v909_v19  ;;  %v337_v19 = vld [vmem:[%s7057_s19 + $0x80] sm:$0xff] }
 0x3f4   :  { %v6726_v21 = vpop.eup %6725  ;;  %v911_v22 = vmul.f32 1.442695, %v897_v3  ;;  %v913_v15 = vmul.f32 1.442695, %v898_v20  ;;  %v339_v3 = vld [vmem:[%s7057_s19 + $0x90] sm:$0xff]  ;;  %v340_v20 = vld [vmem:[%s7057_s19 + $0x98] sm:$0xff] }
 0x3f5   :  { %v6728_v23 = vpop.eup %6727  ;;  %v7424_v13 = vmul.f32 %v6726_v21, %v868_v52 }
 0x3f6   :  { %6737 = vpow2.f32 %v911_v22  ;;  %v7426_v32 = vmul.f32 %v6728_v23, %v870_v56 }
 0x3f7   :  { %6739 = vpow2.f32 %v913_v15 }
 0x3f8   :  { %v6730_v27 = vpop.eup %6729  ;;  %5589 = vmatprep.mubr.msk.f32.mxu0 %vm580_vm4, %v7426_v32 }
 0x3f9   :  { %v6732_v24 = vpop.eup %6731  ;;  %v7430_v33 = vmul.f32 %v6730_v27, %v874_v58  ;;  %1000 = vmatmul.mubr.f32.vlgmr.msra.gmra.mrb[14].mxu0 %v7424_v13 }
 0x3fa   :  { %v7433_v26 = vmul.f32 %v6732_v24, %v876_v59 }
 0x3fc   :  { %v6734_v36 = vpop.eup %6733  ;;  %5590 = vmatprep.mubr.msk.f32.mxu0 %vm580_vm4, %v7433_v26 }
 0x3fd   :  { %v6736_v38 = vpop.eup %6735  ;;  %v7437_v30 = vmul.f32 %v6734_v36, %v880_v60  ;;  %1005 = vmatmul.mubr.f32.gmra.mrb[16].mxu0 %v7430_v33 }
 0x3fe   :  { %v7440_v29 = vmul.f32 %v6736_v38, %v882_v61 }
 0x400   :  { %v6738_v39 = vpop.eup %6737  ;;  %5591 = vmatprep.mubr.msk.f32.mxu0 %vm580_vm4, %v7440_v29 }
 0x401   :  { %v6740_v40 = vpop.eup %6739  ;;  %v7444_v42 = vmul.f32 %v6738_v39, %v886_v62  ;;  %1010 = vmatmul.mubr.f32.gmra.mrb[18].mxu0 %v7437_v30  ;;  %v259_v62 = vld [vmem:[%s7017_s13 + $0x10] sm:$0xff] }
 0x402   :  { %v7447_v44 = vmul.f32 %v6740_v40, %v888_v63  ;;  %v321_v63 = vld [vmem:[%s7057_s19] sm:$0xff] }
 0x404   :  { %5592 = vmatprep.mubr.msk.f32.mxu0 %vm580_vm4, %v7447_v44 }
 0x405   :  { %1015 = vmatmul.mubr.f32.gmra.mrb[20].mxu0 %v7444_v42 }
 0x4cc   :  { %v1001_v47 = vpop.f32.mrb[14].mxu0 }
 0x4cd   :  { %v1020_v48 = vmax.f32 %v1001_v47, 1e-30  ;;  %v1003_v49 = vpop.f32.mrb[15].mxu0 }
 0x4cf   :  { %6741 = vrcp.f32 %v1020_v48 }
 0x4d0   :  { %v1006_v50 = vpop.f32.mrb[16].mxu0 }
 0x4d1   :  { %v1021_v51 = vmax.f32 %v1006_v50, 1e-30  ;;  %v1008_v52 = vpop.f32.mrb[17].mxu0 }
 0x4d3   :  { %6743 = vrcp.f32 %v1021_v51 }
 0x4d4   :  { %v1011_v53 = vpop.f32.mrb[18].mxu0 }
 0x4d5   :  { %v1022_v54 = vmax.f32 %v1011_v53, 1e-30  ;;  %v1013_v56 = vpop.f32.mrb[19].mxu0 }
 0x4d7   :  { %6745 = vrcp.f32 %v1022_v54 }
 0x4d8   :  { %v1016_v57 = vpop.f32.mrb[20].mxu0 }
 0x4d9   :  { %v6742_v58 = vpop.eup %6741  ;;  %v1023_v59 = vmax.f32 %v1016_v57, 1e-30  ;;  %v1018_v60 = vpop.f32.mrb[21].mxu0 }
 0x4da   :  { %5595 = vmatmul.mubr.msk.f32.vlgmr.msra.gmra.mrb[16].mxu1 %vm1028_vm6, %v6742_v58 }
 0x4db   :  { %6747 = vrcp.f32 %v1023_v59  ;;  %6428 = vmatpush1.bf16.msra.mxu1 %v7314_v35  ;;  %1118 = vmatprep.mubr.f32.mxu1 %v6991_v25 }
 0x4dc   :  { %6430 = vmatprep.subr.bf16.mxu1 %v7327_v43  ;;  %v257_v43 = vld [vmem:[%s7017_s13] sm:$0xff] }
 0x4dd   :  { %v6744_v37 = vpop.eup %6743 }
 0x4de   :  { %5596 = vmatmul.mubr.msk.f32.gmra.mrb[18].mxu1 %vm1028_vm6, %v6744_v37 }
 0x4df   :  { %6432 = vmatpush1.bf16.msra.mxu1 %v7324_v41  ;;  %1124 = vmatprep.mubr.f32.mxu1 %v6991_v25  ;;  %v258_v41 = vld [vmem:[%s7017_s13 + $0x8] sm:$0xff] }
 0x4e0   :  { %6434 = vmatprep.subr.bf16.mxu1 %v7289_v28 }
 0x4e1   :  { %v6746_v61 = vpop.eup %6745 }
 0x4e2   :  { %5597 = vmatmul.mubr.msk.f32.gmra.mrb[20].mxu1 %vm1028_vm6, %v6746_v61 }
 0x4e3   :  { %1130 = vmatprep.mubr.f32.mxu1 %v6991_v25 }
 0x4e5   :  { %v6748_v35 = vpop.eup %6747 }
 0x4e6   :  { %5598 = vmatmul.mubr.msk.f32.gmra.mrb[22].mxu1 %vm1028_vm6, %v6748_v35  ;;  %v341_v35 = vld [vmem:[%s7062_s24] sm:$0xff] }
 0x4e7   :  { %1213 = vmatprep.mubr.f32.mxu1 %v6991_v25 }
 0x4ea   :  { %5599 = vmatmul.mubr.msk.f32.vlgmr.msra.gmra.mrb[24].mxu1 %vm580_vm4, %v257_v43 }
 0x4eb   :  { %6436 = vmatpush3.bf16.msra.mxu1 %v7289_v28  ;;  %1219 = vmatprep.mubr.f32.mxu1 %v6991_v25  ;;  %v260_v28 = vld [vmem:[%s7017_s13 + $0x18] sm:$0xff]  ;;  %s8017_s13 = sld [smem:[#allocation17_spill]] }
 0x4ec   :  { %6438 = vmatprep.subr.bf16.mxu1 %v7302_v31 }
 0x4ee   :  { %5600 = vmatmul.mubr.msk.f32.gmra.mrb[26].mxu1 %vm580_vm4, %v258_v41 }
 0x4ef   :  { %6440 = vmatpush3.bf16.msra.mxu1 %v7302_v31  ;;  %1225 = vmatprep.mubr.f32.mxu1 %v6991_v25  ;;  %v323_v31 = vld [vmem:[%s7057_s19 + $0x10] sm:$0xff]  ;;  %s8029_s19 = sld [smem:[#allocation25_spill]] }
 0x4f2   :  { %5601 = vmatmul.mubr.msk.f32.gmra.mrb[28].mxu1 %vm580_vm4, %v259_v62 }
 0x4f3   :  { %1231 = vmatprep.mubr.f32.mxu1 %v6991_v25 }
 0x4f6   :  { %5602 = vmatmul.mubr.msk.f32.gmra.mrb[30].mxu1 %vm580_vm4, %v260_v28 }
 0x4f7   :  { %5952 = vmatprep.mubr.msk.f32.mxu1 %vm580_vm4, %v321_v63  ;;  %v344_v63 = vld [vmem:[%s7062_s24 + $0x18] sm:$0xff] }
 0x4fa   :  { %5953 = vmatmul.mubr.msk.f32.vlgmr.msra.gmra.mrb[32].mxu1 %vm580_vm4, %v322_v0  ;;  %v343_v0 = vld [vmem:[%s7062_s24 + $0x10] sm:$0xff] }
 0x4fb   :  { %5955 = vmatprep.mubr.msk.f32.mxu1 %vm580_vm4, %v323_v31 }
 0x4fe   :  { %5956 = vmatmul.mubr.msk.f32.gmra.mrb[34].mxu1 %vm580_vm4, %v324_v1 }
 0x4ff   :  { %5958 = vmatprep.mubr.msk.f32.mxu1 %vm580_vm4, %v325_v2 }
 0x502   :  { %5959 = vmatmul.mubr.msk.f32.gmra.mrb[36].mxu1 %vm580_vm4, %v326_v4  ;;  %v346_v4 = vld [vmem:[%s7062_s24 + $0x28] sm:$0xff] }
 0x503   :  { %5961 = vmatprep.mubr.msk.f32.mxu1 %vm580_vm4, %v327_v5  ;;  %v345_v5 = vld [vmem:[%s7062_s24 + $0x20] sm:$0xff] }
 0x506   :  { %5962 = vmatmul.mubr.msk.f32.gmra.mrb[38].mxu1 %vm580_vm4, %v328_v7 }
 0x507   :  { %5964 = vmatprep.mubr.msk.f32.mxu1 %vm580_vm4, %v329_v8 }
 0x50a   :  { %5965 = vmatmul.mubr.msk.f32.gmra.mrb[40].mxu1 %vm580_vm4, %v330_v9 }
 0x50b   :  { %5967 = vmatprep.mubr.msk.f32.mxu1 %vm580_vm4, %v331_v10 }
 0x50e   :  { %5968 = vmatmul.mubr.msk.f32.gmra.mrb[42].mxu1 %vm580_vm4, %v332_v11 }
 0x50f   :  { %5970 = vmatprep.mubr.msk.f32.mxu1 %vm580_vm4, %v333_v12  ;;  %v348_v12 = vld [vmem:[%s7062_s24 + $0x38] sm:$0xff] }
 0x512   :  { %5971 = vmatmul.mubr.msk.f32.gmra.mrb[44].mxu1 %vm580_vm4, %v334_v14  ;;  %v347_v14 = vld [vmem:[%s7062_s24 + $0x30] sm:$0xff] }
 0x513   :  { %5973 = vmatprep.mubr.msk.f32.mxu1 %vm580_vm4, %v335_v16 }
 0x516   :  { %5974 = vmatmul.mubr.msk.f32.gmra.mrb[46].mxu1 %vm580_vm4, %v336_v18 }
 0x517   :  { %5976 = vmatprep.mubr.msk.f32.mxu1 %vm580_vm4, %v337_v19 }
 0x51a   :  { %5977 = vmatmul.mubr.msk.f32.gmra.mrb[48].mxu1 %vm580_vm4, %v338_v6 }
 0x51b   :  { %5979 = vmatprep.mubr.msk.f32.mxu1 %vm580_vm4, %v339_v3 }
 0x51e   :  { %5980 = vmatmul.mubr.msk.f32.gmra.mrb[50].mxu1 %vm580_vm4, %v340_v20  ;;  %v350_v20 = vld [vmem:[%s7062_s24 + $0x48] sm:$0xff] }
 0x5ad   :  { %v1114_v21 = vpop.f32.mrb[16].mxu1 }
 0x5ae   :  { %v1116_v22 = vpop.f32.mrb[17].mxu1  ;;  %v1238_v39 = vmul.f32 %v1114_v21, %v7424_v13  ;;  %v349_v21 = vld [vmem:[%s7062_s24 + $0x40] sm:$0xff] }
 0x5af   :  { %v1239_v40 = vmul.f32 %v1116_v22, %v7426_v32 }
 0x5b1   :  { %v1120_v15 = vpop.f32.mrb[18].mxu1 }
 0x5b2   :  { %v1122_v23 = vpop.f32.mrb[19].mxu1  ;;  %v1240_v49 = vmul.f32 %v1120_v15, %v7430_v33 }
 0x5b3   :  { %v1241_v50 = vmul.f32 %v1122_v23, %v7433_v26 }
 0x5b5   :  { %v1126_v27 = vpop.f32.mrb[20].mxu1 }
 0x5b6   :  { %v1128_v24 = vpop.f32.mrb[21].mxu1  ;;  %v1242_v32 = vmul.f32 %v1126_v27, %v7437_v30 }
 0x5b7   :  { %v1243_v54 = vmul.f32 %v1128_v24, %v7440_v29  ;;  %v342_v29 = vld [vmem:[%s7062_s24 + $0x8] sm:$0xff] }
 0x5b9   :  { %v1132_v36 = vpop.f32.mrb[22].mxu1 }
 0x5ba   :  { %v1134_v38 = vpop.f32.mrb[23].mxu1  ;;  %v1244_v58 = vmul.f32 %v1132_v36, %v7444_v42  ;;  %v352_v36 = vld [vmem:[%s7062_s24 + $0x58] sm:$0xff] }
 0x5bb   :  { %v1245_v59 = vmul.f32 %v1134_v38, %v7447_v44  ;;  %v351_v38 = vld [vmem:[%s7062_s24 + $0x50] sm:$0xff] }
 0x5bd   :  { %v1215_v45 = vpop.f32.mrb[24].mxu1 }
 0x5be   :  { %v7523_v46 = vmul.f32 %v1238_v39, %v1215_v45  ;;  %v1217_v47 = vpop.f32.mrb[25].mxu1 }
 0x5bf   :  { %v1247_v48 = vmul.f32 %v1239_v40, %v1217_v47 }
 0x5c1   :  { %v1221_v51 = vpop.f32.mrb[26].mxu1  ;;  %5624 = vmatprep.mubr.msk.f32.mxu0 %vm580_vm4, %v1247_v48 }
 0x5c2   :  { %v7528_v52 = vmul.f32 %v1240_v49, %v1221_v51  ;;  %v1223_v53 = vpop.f32.mrb[27].mxu1  ;;  %v354_v49 = vld [vmem:[%s7062_s24 + $0x68] sm:$0xff] }
 0x5c3   :  { %v7530_v13 = vmul.f32 %v1241_v50, %v1223_v53  ;;  %v353_v50 = vld [vmem:[%s7062_s24 + $0x60] sm:$0xff] }
 0x5c5   :  { %v1227_v56 = vpop.f32.mrb[28].mxu1 }
 0x5c6   :  { %v7534_v57 = vmul.f32 %v1242_v32, %v1227_v56  ;;  %v1229_v33 = vpop.f32.mrb[29].mxu1 }
 0x5c7   :  { %v7536_v26 = vmul.f32 %v1243_v54, %v1229_v33  ;;  %v356_v33 = vld [vmem:[%s7062_s24 + $0x78] sm:$0xff] }
 0x5c9   :  { %v1233_v60 = vpop.f32.mrb[30].mxu1 }
 0x5ca   :  { %v7540_v37 = vmul.f32 %v1244_v58, %v1233_v60  ;;  %v1235_v61 = vpop.f32.mrb[31].mxu1  ;;  %v355_v58 = vld [vmem:[%s7062_s24 + $0x70] sm:$0xff] }
 0x5cb   :  { %v7542_v30 = vmul.f32 %v1245_v59, %v1235_v61 }
 0x5cd   :  { %v5954_v43 = vpop.f32.mrb[32].mxu1 }
 0x5ce   :  { %v1480_v41 = vmul.f32 %v5954_v43, %v342_v29  ;;  %v1380_v62 = vpop.f32.mrb[33].mxu1  ;;  %v358_v43 = vld [vmem:[%s7062_s24 + $0x88] sm:$0xff] }
 0x5cf   :  { %v1479_v28 = vmul.f32 %v1380_v62, %v341_v35 }
 0x5d1   :  { %v6442_v42 = vpack.c.bf16 %v1480_v41, %v1479_v28  ;;  %v5957_v44 = vpop.f32.mrb[34].mxu1  ;;  %v357_v41 = vld [vmem:[%s7062_s24 + $0x80] sm:$0xff] }
 0x5d2   :  { %v1482_v31 = vmul.f32 %v5957_v44, %v344_v63  ;;  %v1390_v1 = vpop.f32.mrb[35].mxu1  ;;  %v360_v44 = vld [vmem:[%s7062_s24 + $0x98] sm:$0xff] }
 0x5d3   :  { %v1481_v2 = vmul.f32 %v1390_v1, %v343_v0  ;;  %6443 = vmatpush1.bf16.msra.mxu0 %v6442_v42 }
 0x5d4   :  { %6444 = vmatprep.subr.bf16.mxu0 %v6993_v34 }
 0x5d5   :  { %v6445_v7 = vpack.c.bf16 %v1482_v31, %v1481_v2  ;;  %v5960_v8 = vpop.f32.mrb[36].mxu1  ;;  %v359_v31 = vld [vmem:[%s7062_s24 + $0x90] sm:$0xff]  ;;  %s8030_s24 = sld [smem:[#allocation26_spill]] }
 0x5d6   :  { %v1484_v9 = vmul.f32 %v5960_v8, %v346_v4  ;;  %v1400_v10 = vpop.f32.mrb[37].mxu1 }
 0x5d7   :  { %v1483_v11 = vmul.f32 %v1400_v10, %v345_v5  ;;  %6446 = vmatpush1.bf16.msra.mxu0 %v6445_v7 }
 0x5d8   :  { %6447 = vmatprep.subr.bf16.mxu0 %v6993_v34 }
 0x5d9   :  { %v6448_v16 = vpack.c.bf16 %v1484_v9, %v1483_v11  ;;  %v5963_v18 = vpop.f32.mrb[38].mxu1  ;;  %v5623_v9 = vld [vmem:[#allocation2] ss:$0 sm:$0xff] }
 0x5da   :  { %v1486_v19 = vmul.f32 %v5963_v18, %v348_v12  ;;  %v1410_v6 = vpop.f32.mrb[39].mxu1 }
 0x5db   :  { %v1485_v3 = vmul.f32 %v1410_v6, %v347_v14  ;;  %6449 = vmatpush1.bf16.msra.mxu0 %v6448_v16 }
 0x5dc   :  { %6450 = vmatprep.subr.bf16.mxu0 %v6993_v34 }
 0x5dd   :  { %v6451_v22 = vpack.c.bf16 %v1486_v19, %v1485_v3  ;;  %v5966_v15 = vpop.f32.mrb[40].mxu1 }
 0x5de   :  { %v1488_v23 = vmul.f32 %v5966_v15, %v350_v20  ;;  %v1420_v27 = vpop.f32.mrb[41].mxu1 }
 0x5df   :  { %v1487_v24 = vmul.f32 %v1420_v27, %v349_v21  ;;  %6452 = vmatpush1.bf16.msra.mxu0 %v6451_v22 }
 0x5e0   :  { %6453 = vmatprep.subr.bf16.mxu0 %v6993_v34 }
 0x5e1   :  { %v6454_v39 = vpack.c.bf16 %v1488_v23, %v1487_v24  ;;  %v5969_v40 = vpop.f32.mrb[42].mxu1 }
 0x5e2   :  { %v1490_v45 = vmul.f32 %v5969_v40, %v352_v36  ;;  %v1430_v47 = vpop.f32.mrb[43].mxu1 }
 0x5e3   :  { %v1489_v48 = vmul.f32 %v1430_v47, %v351_v38  ;;  %6455 = vmatpush1.bf16.msra.mxu0 %v6454_v39  ;;  %v1610_v38 = vld [vmem:[%s8016_s5] sm:$0xff]  ;;  %v6994_v39 = vmov 0  }
 0x5e4   :  { %6456 = vmatprep.subr.bf16.mxu0 %v6993_v34  ;;  %5990 = vmatprep.mubr.msk.f32.mxu1 %vm580_vm4, %v1610_v38 }
 0x5e5   :  { %v6457_v51 = vpack.c.bf16 %v1490_v45, %v1489_v48  ;;  %v5972_v53 = vpop.f32.mrb[44].mxu1  ;;  %6724 = vset.pattern.permute.xlu1 %v6994_v39  ;;  %6723 = vset.pattern.permute.xlu0 %v6994_v39 }
 0x5e6   :  { %v1492_v32 = vmul.f32 %v5972_v53, %v354_v49  ;;  %v1440_v54 = vpop.f32.mrb[45].mxu1 }
 0x5e7   :  { %v1491_v56 = vmul.f32 %v1440_v54, %v353_v50  ;;  %6458 = vmatpush1.bf16.msra.mxu0 %v6457_v51 }
 0x5e8   :  { %6459 = vmatprep.subr.bf16.mxu0 %v6993_v34 }
 0x5e9   :  { %v6460_v59 = vpack.c.bf16 %v1492_v32, %v1491_v56  ;;  %v5975_v60 = vpop.f32.mrb[46].mxu1  ;;  %v1611_v56 = vld [vmem:[%s8016_s5 + $0x8] sm:$0xff] }
 0x5ea   :  { %v1494_v61 = vmul.f32 %v5975_v60, %v356_v33  ;;  %v1450_v29 = vpop.f32.mrb[47].mxu1  ;;  %v1612_v33 = vld [vmem:[%s8016_s5 + $0x10] sm:$0xff] }
 0x5eb   :  { %v1493_v35 = vmul.f32 %v1450_v29, %v355_v58  ;;  %6461 = vmatpush1.bf16.msra.mxu0 %v6460_v59  ;;  %v1613_v58 = vld [vmem:[%s8016_s5 + $0x18] sm:$0xff]  ;;  %s5511_s5 = sshll.u32 %s6998_s23, 4  ;;  %s5512_s5 = int_to_ptr.vmem [resolvable:$true] %s5511_s5 }
 0x5ec   :  { %6462 = vmatprep.subr.bf16.mxu0 %v6993_v34  ;;  %p6916_p13 = scmp.lt.s32.totalorder %s5512_s5, %s5512_s5 }
 0x5ed   :  { %v6463_v62 = vpack.c.bf16 %v1494_v61, %v1493_v35  ;;  %v5978_v28 = vpop.f32.mrb[48].mxu1 }
 0x5ee   :  { %v1496_v63 = vmul.f32 %v5978_v28, %v358_v43  ;;  %v1460_v0 = vpop.f32.mrb[49].mxu1 }
 0x5ef   :  { %v1495_v42 = vmul.f32 %v1460_v0, %v357_v41  ;;  %6464 = vmatpush1.bf16.msra.mxu0 %v6463_v62 }
 0x5f0   :  { %6465 = vmatprep.subr.bf16.mxu0 %v6993_v34 }
 0x5f1   :  { %v6466_v1 = vpack.c.bf16 %v1496_v63, %v1495_v42  ;;  %v5981_v2 = vpop.f32.mrb[50].mxu1 }
 0x5f2   :  { %v1498_v4 = vmul.f32 %v5981_v2, %v360_v44  ;;  %v1470_v5 = vpop.f32.mrb[51].mxu1 }
 0x5f3   :  { %v1497_v7 = vmul.f32 %v1470_v5, %v359_v31  ;;  %6467 = vmatpush1.bf16.msra.mxu0 %v6466_v1 }
 0x5f4   :  { %6468 = vmatprep.subr.bf16.mxu0 %v6993_v34 }
 0x5f5   :  { %v6469_v8 = vpack.c.bf16 %v1498_v4, %v1497_v7 }
 0x5f7   :  { %6470 = vmatpush1.bf16.msra.mxu0 %v6469_v8 }
 0x5fa   :  { %1582 = vmatmul.mubr.f32.vlgmr.msra.gmra.mrb[22].mxu0 %v7523_v46 }
 0x5fb   :  { %5625 = vmatprep.mubr.msk.f32.mxu0 %vm580_vm4, %v7530_v13 }
 0x5fe   :  { %1587 = vmatmul.mubr.f32.gmra.mrb[24].mxu0 %v7528_v52 }
 0x5ff   :  { %5626 = vmatprep.mubr.msk.f32.mxu0 %vm580_vm4, %v7536_v26 }
 0x602   :  { %1592 = vmatmul.mubr.f32.gmra.mrb[26].mxu0 %v7534_v57 }
 0x603   :  { %5627 = vmatprep.mubr.msk.f32.mxu0 %vm580_vm4, %v7542_v30 }
 0x606   :  { %1597 = vmatmul.mubr.f32.gmra.mrb[28].mxu0 %v7540_v37 }
 0x607   :  { %6004 = vmatprep.mubr.msk.f32.mxu0 %vm580_vm4, %v1610_v38 }
 0x6cd   :  { %v1583_v10 = vpop.f32.mrb[22].mxu0 }
 0x6ce   :  { %v1584_v11 = vadd.f32 %v5623_v9, %v1583_v10  ;;  %v1585_v12 = vpop.f32.mrb[23].mxu0 }
 0x6d0   :  { %v1602_v46 = vmul.f32 0.01, %v1584_v11 }
 0x6d1   :  { %v1588_v14 = vpop.f32.mrb[24].mxu0 }
 0x6d2   :  { %v1589_v16 = vadd.f32 %v5623_v9, %v1588_v14  ;;  %v1590_v13 = vpop.f32.mrb[25].mxu0  ;;  %v1606_v18 = vmax.f32 %v1584_v11, %v1602_v46 }
 0x6d4   :  { %v1603_v52 = vmul.f32 0.01, %v1589_v16  ;;  %v1614_v19 = vsel %vm463_vm3, %v1606_v18, 0.0 }
 0x6d5   :  { %v1593_v26 = vpop.f32.mrb[26].mxu0  ;;  %1615 = vadd.xlane.f32.xlu0 %v1614_v19  ;;  %v1885_v19 = vld [vmem:[%s8017_s13] sm:$0xff] }
 0x6d6   :  { %v1594_v57 = vadd.f32 %v5623_v9, %v1593_v26  ;;  %v1595_v6 = vpop.f32.mrb[27].mxu0  ;;  %v1607_v30 = vmax.f32 %v1589_v16, %v1603_v52  ;;  %v1886_v26 = vld [vmem:[%s8017_s13 + $0x8] sm:$0xff] }
 0x6d7   :  { %v1887_v6 = vld [vmem:[%s8017_s13 + $0x10] sm:$0xff] }
 0x6d8   :  { %v1604_v3 = vmul.f32 0.01, %v1594_v57  ;;  %v1617_v37 = vsel %vm463_vm3, %v1607_v30, 0.0 }
 0x6d9   :  { %v1598_v20 = vpop.f32.mrb[28].mxu0  ;;  %1618 = vadd.xlane.f32.xlu1 %v1617_v37  ;;  %v1890_v37 = vld [vmem:[%s8017_s13 + $0x28] sm:$0xff] }
 0x6da   :  { %v1599_v21 = vadd.f32 %v5623_v9, %v1598_v20  ;;  %v1600_v22 = vpop.f32.mrb[29].mxu0  ;;  %v1608_v15 = vmax.f32 %v1594_v57, %v1604_v3  ;;  %v6487_v57 = vpack.c.bf16 %v1886_v26, %v1885_v19  ;;  %v1889_v3 = vld [vmem:[%s8017_s13 + $0x20] sm:$0xff] }
 0x6db   :  { %v1891_v22 = vld [vmem:[%s8017_s13 + $0x30] sm:$0x3] }
 0x6dc   :  { %v1605_v23 = vmul.f32 0.01, %v1599_v21  ;;  %v1620_v27 = vsel %vm463_vm3, %v1608_v15, 0.0 }
 0x6dd   :  { %1621 = vadd.xlane.f32.xlu0 %v1620_v27 }
 0x6de   :  { %v1609_v24 = vmax.f32 %v1599_v21, %v1605_v23  ;;  %v6495_v21 = vpack.c.bf16 %v1890_v37, %v1889_v3 }
 0x6e0   :  { %v1623_v36 = vsel %vm463_vm3, %v1609_v24, 0.0 }
 0x6e1   :  { %1624 = vadd.xlane.f32.xlu1 %v1623_v36 }
 0x762   :  { %v1616_v40 = vpop.xlane.xlu0 %1615 }
 0x763   :  { %v1627_v47 = vmul.f32 0.02, %v1616_v40 }
 0x766   :  { %v1619_v45 = vpop.xlane.xlu1 %1618 }
 0x767   :  { %v1628_v48 = vmul.f32 0.02, %v1619_v45 }
 0x769   :  { %v6471_v49 = vpack.c.bf16 %v1628_v48, %v1627_v47 }
 0x76a   :  { %v1622_v50 = vpop.xlane.xlu0 %1621 }
 0x76b   :  { %6472 = vmatprep.subr.bf16.mxu1 %v6471_v49  ;;  %v1629_v53 = vmul.f32 0.02, %v1622_v50 }
 0x76c   :  { %6474 = vmatpush3.bf16.msra.mxu1 %v6471_v49 }
 0x76e   :  { %v1625_v51 = vpop.xlane.xlu1 %1624 }
 0x76f   :  { %v1630_v32 = vmul.f32 0.02, %v1625_v51 }
 0x771   :  { %v6475_v54 = vpack.c.bf16 %v1630_v32, %v1629_v53 }
 0x773   :  { %6476 = vmatprep.subr.bf16.mxu1 %v6475_v54 }
 0x774   :  { %6478 = vmatpush3.bf16.msra.mxu1 %v6475_v54 }
 0x775   :  { %6488 = vmatprep.subr.bf16.mxu1 %v6487_v57 }
 0x777   :  { %5991 = vmatmul.mubr.msk.f32.vlgmr.msra.gmra.mrb[52].mxu1 %vm580_vm4, %v1611_v56 }
 0x778   :  { %5993 = vmatprep.mubr.msk.f32.mxu1 %vm580_vm4, %v1612_v33  ;;  %6490 = vmatpush3.bf16.msra.mxu1 %v6487_v57 }
 0x77b   :  { %5994 = vmatmul.mubr.msk.f32.gmra.mrb[54].mxu1 %vm580_vm4, %v1613_v58 }
 0x84a   :  { %v5992_v59 = vpop.f32.mrb[52].mxu1 }
 0x84b   :  { %1735 = vperm.xlu1 %6724, %v5992_v59   ;;  %v1709_v60 = vpop.f32.mrb[53].mxu1 }
 0x84c   :  { %1730 = vperm.xlu0 %6723, %v1709_v60  }
 0x84e   :  { %v5995_v61 = vpop.f32.mrb[54].mxu1 }
 0x84f   :  { %v1719_v29 = vpop.f32.mrb[55].mxu1 }
 0x850   :  { %1740 = vperm.xlu1 %6724, %v1719_v29  }
 0x854   :  { %1745 = vperm.xlu1 %6724, %v5995_v61   ;;  %v6996_v61 = vmov 1.0|1.0  }
 0x8ca   :  { %v1736_v35 = vpop.permute.xlu1 %1735 }
 0x8cb   :  { %v7596_v43 = vsub.f32 %v1607_v30, %v1736_v35  ;;  %v1731_v41 = vpop.permute.xlu0 %1730  ;;  %v1888_v30 = vld [vmem:[%s8017_s13 + $0x18] sm:$0xff] }
 0x8cc   :  { %v7598_v62 = vsub.f32 %v1606_v18, %v1731_v41  ;;  %v6491_v20 = vpack.c.bf16 %v1888_v30, %v1887_v6 }
 0x8cd   :  { %v1753_v28 = vmul.f32 %v7596_v43, %v7596_v43 }
 0x8ce   :  { %v1752_v63 = vmul.f32 %v7598_v62, %v7598_v62  ;;  %6492 = vmatprep.subr.bf16.mxu1 %v6491_v20 }
 0x8cf   :  { %v1741_v0 = vpop.permute.xlu1 %1740  ;;  %v1759_v42 = vsel %vm463_vm3, %v1753_v28, 0.0  ;;  %6494 = vmatpush3.bf16.msra.mxu1 %v6491_v20  ;;  %v1895_v20 = vld [vmem:[%s8018_s17 + $0x18] sm:$0xff] }
 0x8d0   :  { %v7605_v44 = vsub.f32 %v1608_v15, %v1741_v0  ;;  %1760 = vadd.xlane.f32.xlu0 %v1759_v42  ;;  %v1756_v31 = vsel %vm463_vm3, %v1752_v63, 0.0  ;;  %6496 = vmatprep.subr.bf16.mxu1 %v6495_v21 }
 0x8d1   :  { %1757 = vadd.xlane.f32.xlu1 %v1756_v31 }
 0x8d2   :  { %v1754_v1 = vmul.f32 %v7605_v44, %v7605_v44 }
 0x8d3   :  { %v1746_v2 = vpop.permute.xlu1 %1745  ;;  %6498 = vmatpush3.bf16.msra.mxu1 %v6495_v21  ;;  %v1899_v21 = vld [vmem:[%s8019_s21 + $0x18] sm:$0xff] }
 0x8d4   :  { %v7610_v4 = vsub.f32 %v1609_v24, %v1746_v2  ;;  %v1762_v5 = vsel %vm463_vm3, %v1754_v1, 0.0  ;;  %6022 = vmatprep.subr.msk.mxu1 %vm476_vm2, %v1891_v22 }
 0x8d5   :  { %1763 = vadd.xlane.f32.xlu1 %v1762_v5 }
 0x8d6   :  { %v1755_v7 = vmul.f32 %v7610_v4, %v7610_v4 }
 0x8d7   :  { %6023 = vmatpush3.msk.msra.mxu1 %vm476_vm2, %v1891_v22 }
 0x8d8   :  { %v1765_v8 = vsel %vm463_vm3, %v1755_v7, 0.0  ;;  %6507 = vmatprep.subr.bf16.mxu1 %v6993_v34 }
 0x8d9   :  { %1766 = vadd.xlane.f32.xlu1 %v1765_v8  ;;  %v1893_v8 = vld [vmem:[%s8018_s17 + $0x8] sm:$0xff] }
 0x95d   :  { %v1761_v9 = vpop.xlane.xlu0 %1760 }
 0x95e   :  { %v1769_v10 = vmul.f32 0.02, %v1761_v9  ;;  %v1758_v11 = vpop.xlane.xlu1 %1757  ;;  %v1897_v9 = vld [vmem:[%s8019_s21 + $0x8] sm:$0xff] }
 0x95f   :  { %v1768_v12 = vmul.f32 0.02, %v1758_v11  ;;  %v1896_v11 = vld [vmem:[%s8019_s21] sm:$0xff] }
 0x961   :  { %v6479_v46 = vpack.c.bf16 %v1769_v10, %v1768_v12  ;;  %v1892_v10 = vld [vmem:[%s8018_s17] sm:$0xff] }
 0x962   :  { %v1764_v14 = vpop.xlane.xlu1 %1763 }
 0x963   :  { %6480 = vmatprep.subr.bf16.mxu0 %v6479_v46  ;;  %v1770_v13 = vmul.f32 0.02, %v1764_v14 }
 0x964   :  { %6482 = vmatpush3.bf16.msra.mxu0 %v6479_v46 }
 0x966   :  { %v1767_v16 = vpop.xlane.xlu1 %1766 }
 0x967   :  { %v1771_v18 = vmul.f32 0.02, %v1767_v16 }
 0x969   :  { %v6483_v52 = vpack.c.bf16 %v1771_v18, %v1770_v13 }
 0x96b   :  { %6484 = vmatprep.subr.bf16.mxu0 %v6483_v52 }
 0x96c   :  { %6486 = vmatpush3.bf16.msra.mxu0 %v6483_v52 }
 0x96d   :  { %6499 = vmatprep.subr.bf16.mxu0 %v6993_v34 }
 0x96f   :  { %6005 = vmatmul.mubr.msk.f32.vlgmr.msra.gmra.mrb[30].mxu0 %vm580_vm4, %v1611_v56 }
 0x970   :  { %6007 = vmatprep.mubr.msk.f32.mxu0 %vm580_vm4, %v1612_v33 }
 0x973   :  { %6008 = vmatmul.mubr.msk.f32.gmra.mrb[32].mxu0 %vm580_vm4, %v1613_v58 }
 0x974   :  { %6038 = vmatprep.mubr.msk.f32.mxu0 %vm6995_vm7, %v6991_v25 }
 0xa42   :  { %v6006_v15 = vpop.f32.mrb[30].mxu0 }
 0xa43   :  { %v1844_v23 = vadd.f32 1e-05, %v6006_v15  ;;  %v1838_v27 = vpop.f32.mrb[31].mxu0 }
 0xa44   :  { %v1839_v24 = vadd.f32 1e-05, %v1838_v27 }
 0xa45   :  { %6749 = vrsqrt.f32 %v1844_v23 }
 0xa46   :  { %6751 = vrsqrt.f32 %v1839_v24  ;;  %v6009_v36 = vpop.f32.mrb[32].mxu0 }
 0xa47   :  { %v1848_v38 = vpop.f32.mrb[33].mxu0  ;;  %v1854_v40 = vadd.f32 1e-05, %v6009_v36  ;;  %v6797_v36 = vld [vmem:[%s7012_s9] sm:$0xff] }
 0xa48   :  { %v1849_v39 = vadd.f32 1e-05, %v1848_v38  ;;  %v6798_v38 = vld [vmem:[%s7012_s9 + $0x8] sm:$0xff] }
 0xa4a   :  { %6753 = vrsqrt.f32 %v1849_v39  ;;  %v6533_v39 = vpack.c.bf16 %v6798_v38, %v6797_v36  ;;  %v2705_v36 = vld [vmem:[%s8024_s14 + $0x18] sm:$0x3f] }
 0xa4b   :  { %6755 = vrsqrt.f32 %v1854_v40 }
 0xa4f   :  { %v6750_v45 = vpop.eup %6749 }
 0xa50   :  { %v6752_v47 = vpop.eup %6751  ;;  %1868 = vperm.xlu0 %6723, %v6750_v45  }
 0xa51   :  { %1863 = vperm.xlu1 %6724, %v6752_v47  }
 0xa54   :  { %v6754_v48 = vpop.eup %6753 }
 0xa55   :  { %1873 = vperm.xlu1 %6724, %v6754_v48   ;;  %v6756_v49 = vpop.eup %6755 }
 0xa59   :  { %1878 = vperm.xlu1 %6724, %v6756_v49   ;;  %v1900_v49 = vld [vmem:[%s8020_s25] sm:$0xff] }
 0xa82   :  { %2010 = vxpose.xlu1.b32.start [1/7] (short) (narrow) %v1885_v19, 8  ;;  %v1894_v19 = vld [vmem:[%s8018_s17 + $0x10] sm:$0xff] }
 0xa86   :  { %2011 = vxpose.xlu1.b32.cont [2/7] (short) (narrow) %v1886_v26, 8  ;;  %v1898_v26 = vld [vmem:[%s8019_s21 + $0x10] sm:$0xff] }
 0xa8a   :  { %2012 = vxpose.xlu1.b32.cont [3/7] (short) (narrow) %v1887_v6, 8 }
 0xa8e   :  { %2013 = vxpose.xlu1.b32.cont [4/7] (short) (narrow) %v1888_v30, 8 }
 0xa92   :  { %2014 = vxpose.xlu1.b32.cont [5/7] (short) (narrow) %v1889_v3, 8 }
 0xa96   :  { %2015 = vxpose.xlu1.b32.cont [6/7] (short) (narrow) %v1890_v37, 8 }
 0xa9a   :  { %2016 = vxpose.xlu1.b32.end [7/7] (short) (narrow) %v1891_v22, 8 }
 0xacf   :  { %v1869_v50 = vpop.permute.xlu0 %1868 }
 0xad0   :  { %v1882_v51 = vmul.f32 %v1869_v50, %v7596_v43  ;;  %v1864_v53 = vpop.permute.xlu1 %1863  ;;  %v1901_v50 = vld [vmem:[%s8020_s25 + $0x8] sm:$0xff] }
 0xad1   :  { %v1881_v32 = vmul.f32 %v1864_v53, %v7598_v62 }
 0xad3   :  { %v7636_v54 = vpack.c.bf16 %v1882_v51, %v1881_v32  ;;  %6024 = vmatprep.mubr.msk.f32.mxu1 %vm463_vm3, %v1881_v32 }
 0xad4   :  { %6025 = vmatmul.mubr.msk.f32.vlgmr.msra.gmra.mrb[56].mxu1 %vm463_vm3, %v1882_v51  ;;  %v1874_v56 = vpop.permute.xlu1 %1873 }
 0xad5   :  { %v1883_v33 = vmul.f32 %v1874_v56, %v7605_v44  ;;  %6502 = vmatpush3.bf16.xpose.msk.msra.mxu0 %vm6501_vm8, %v7636_v54 }
 0xad6   :  { %6503 = vmatprep.subr.bf16.mxu0 %v6993_v34 }
 0xad7   :  { %6027 = vmatprep.mubr.msk.f32.mxu1 %vm463_vm3, %v1883_v33 }
 0xad8   :  { %v1879_v58 = vpop.permute.xlu1 %1878 }
 0xad9   :  { %v1884_v59 = vmul.f32 %v1879_v58, %v7610_v4  ;;  %v6800_v58 = vld [vmem:[%s7012_s9 + $0x18] sm:$0xff] }
 0xadb   :  { %v7645_v60 = vpack.c.bf16 %v1884_v59, %v1883_v33  ;;  %6028 = vmatmul.mubr.msk.f32.gmra.mrb[58].mxu1 %vm463_vm3, %v1884_v59  ;;  %v6799_v33 = vld [vmem:[%s7012_s9 + $0x10] sm:$0xff]  ;;  %s8022_s9 = sld [smem:[#allocation21_spill]] }
 0xadc   :  { %6049 = vmatprep.mubr.msk.f32.mxu1 %vm6995_vm7, %v6991_v25  ;;  %v6537_v59 = vpack.c.bf16 %v6800_v58, %v6799_v33 }
 0xadd   :  { %6506 = vmatpush3.bf16.xpose.msk.msra.mxu0 %vm6501_vm8, %v7645_v60 }
 0xade   :  { %6513 = vmatprep.subr.bf16.mxu0 %v6996_v61 }
 0xb02   :  { %v2026_v29 = vpop.trf.xlu1 }
 0xb03   :  { %6039 = vmatmul.mubr.msk.f32.vlgmr.msra.gmra.mrb[34].mxu0 %vm463_vm3, %v2026_v29  ;;  %v2692_v29 = vld [vmem:[%s8021_s3 + $0x8] sm:$0xff] }
 0xb04   :  { %6514 = vmatpush3.bf16.msra.mxu0 %v6996_v61 }
 0xb05   :  { %6515 = vmatprep.subr.bf16.mxu0 %v6996_v61 }
 0xb08   :  { %6516 = vmatpush3.bf16.msra.mxu0 %v6996_v61 }
 0xb09   :  { %6526 = vmatprep.subr.bf16.mxu0 %v7636_v54 }
 0xba7   :  { %v6026_v35 = vpop.f32.mrb[56].mxu1 }
 0xba8   :  { %6757 = vtanh.f32 %v6026_v35  ;;  %v1987_v43 = vpop.f32.mrb[57].mxu1  ;;  %v2693_v35 = vld [vmem:[%s8021_s3 + $0x10] sm:$0xff] }
 0xba9   :  { %6759 = vtanh.f32 %v1987_v43 }
 0xbae   :  { %v6029_v41 = vpop.f32.mrb[58].mxu1 }
 0xbaf   :  { %6761 = vtanh.f32 %v6029_v41  ;;  %v1997_v62 = vpop.f32.mrb[59].mxu1  ;;  %v2694_v41 = vld [vmem:[%s8021_s3 + $0x18] sm:$0xff] }
 0xbb0   :  { %6763 = vtanh.f32 %v1997_v62  ;;  %v6553_v62 = vpack.c.bf16 %v2694_v41, %v2693_v35 }
 0xbb2   :  { %v6758_v28 = vpop.eup %6757 }
 0xbb3   :  { %v6760_v63 = vpop.eup %6759  ;;  %2123 = vperm.xlu0 %6723, %v6758_v28  }
 0xbb4   :  { %v6517_v0 = vpack.c.bf16 %v6758_v28, %v6760_v63 }
 0xbb7   :  { %2118 = vperm.xlu0 %6723, %v6760_v63  }
 0xbb9   :  { %v6762_v42 = vpop.eup %6761 }
 0xbba   :  { %v6764_v44 = vpop.eup %6763 }
 0xbbb   :  { %2128 = vperm.xlu0 %6723, %v6764_v44   ;;  %v6521_v31 = vpack.c.bf16 %v6762_v42, %v6764_v44 }
 0xbbf   :  { %2133 = vperm.xlu0 %6723, %v6762_v42   ;;  %v2696_v42 = vld [vmem:[%s8021_s3 + $0x28] sm:$0xff] }
 0xbd6   :  { %v2111_v1 = vpop.f32.mrb[34].mxu0 }
 0xbd7   :  { %v6040_v2 = vpop.f32.mrb[35].mxu0  ;;  %6765 = vtanh.f32 %v2111_v1 }
 0xbd8   :  { %v2697_v2 = vld [vmem:[%s8021_s3 + $0x30] sm:$0x3] }
 0xbe1   :  { %v6766_v4 = vpop.eup %6765 }
 0xbe2   :  { %v2139_v5 = vrot.slane %v6766_v4, %v7392_v55 }
 0xc32   :  { %v2124_v7 = vpop.permute.xlu0 %2123 }
 0xc33   :  { %vm2141_vm9 = vcmp.gt.f32.partialorder %v2124_v7, %v2139_v5  ;;  %vm2149_vm10 = vcmp.eq.f32.partialorder %v2124_v7, %v2139_v5 }
 0xc34   :  { %v2145_v12 = vsel %vm2141_vm9, %v1893_v8, 0.0  ;;  %v2153_v46 = vsel %vm2149_vm10, %v1897_v9, 0.0 }
 0xc35   :  { %v2157_v18 = vadd.f32 %v2153_v46, %v2145_v12 }
 0xc36   :  { %v2119_v14 = vpop.permute.xlu0 %2118 }
 0xc37   :  { %vm2140_vm11 = vcmp.gt.f32.partialorder %v2119_v14, %v2139_v5  ;;  %vm2148_vm12 = vcmp.eq.f32.partialorder %v2119_v14, %v2139_v5 }
 0xc38   :  { %v2144_v16 = vsel %vm2140_vm11, %v1892_v10, 0.0  ;;  %v2152_v13 = vsel %vm2148_vm12, %v1896_v11, 0.0 }
 0xc39   :  { %v2156_v52 = vadd.f32 %v2152_v13, %v2144_v16  ;;  %v1902_v13 = vld [vmem:[%s8022_s9] sm:$0xff] }
 0xc3a   :  { %v2129_v57 = vpop.permute.xlu0 %2128 }
 0xc3b   :  { %v6508_v6 = vpack.c.bf16 %v2157_v18, %v2156_v52  ;;  %vm2142_vm13 = vcmp.gt.f32.partialorder %v2129_v57, %v2139_v5  ;;  %vm2150_vm14 = vcmp.eq.f32.partialorder %v2129_v57, %v2139_v5  ;;  %6060 = vmatprep.mubr.msk.f32.mxu0 %vm580_vm4, %v2156_v52  ;;  %v1905_v57 = vld [vmem:[%s8022_s9 + $0x18] sm:$0xff] }
 0xc3c   :  { %v2146_v30 = vsel %vm2142_vm13, %v1894_v19, 0.0  ;;  %v2154_v3 = vsel %vm2150_vm14, %v1898_v26, 0.0  ;;  %6061 = vmatmul.mubr.msk.f32.vlgmr.msra.gmra.mrb[36].mxu0 %vm580_vm4, %v2157_v18  ;;  %v1903_v18 = vld [vmem:[%s8022_s9 + $0x8] sm:$0xff]  ;;  %v1904_v26 = vld [vmem:[%s8022_s9 + $0x10] sm:$0xff]  ;;  %vm2798_vm13 = vcmask 1045504   ;;  %vm6997_vm14 = vmmov 1  }
 0xc3d   :  { %v2158_v37 = vadd.f32 %v2154_v3, %v2146_v30  ;;  %6528 = vmatpush3.bf16.msra.mxu0 %v7636_v54  ;;  %6509 = vmatpush3.bf16.msra.mxu1 %v6508_v6  ;;  %v2698_v6 = vld [vmem:[%s8023_s8] sm:$0xff]  ;;  %v2699_v30 = vld [vmem:[%s8023_s8 + $0x8] sm:$0xff] }
 0xc3e   :  { %6530 = vmatprep.subr.bf16.mxu0 %v7645_v60  ;;  %v2134_v22 = vpop.permute.xlu0 %2133  ;;  %6510 = vmatprep.subr.bf16.mxu1 %v6993_v34 }
 0xc3f   :  { %vm2143_vm15 = vcmp.gt.f32.partialorder %v2134_v22, %v2139_v5  ;;  %vm2151_vm5 = vcmp.eq.f32.partialorder %v2134_v22, %v2139_v5  ;;  %6063 = vmatprep.mubr.msk.f32.mxu0 %vm580_vm4, %v2158_v37 }
 0xc40   :  { %v2147_v15 = vsel %vm2143_vm15, %v1895_v20, 0.0  ;;  %v2155_v23 = vsel %vm2151_vm5, %v1899_v21, 0.0  ;;  %v2700_v20 = vld [vmem:[%s8023_s8 + $0x10] sm:$0xff]  ;;  %v2701_v21 = vld [vmem:[%s8023_s8 + $0x18] sm:$0x3f]  ;;  %vm7716_vm15 = vmpackc.low %vm2798_vm13, %vm6997_vm14  ;;  %vm2791_vm5 = vcmask 244736  }
 0xc41   :  { %v2159_v27 = vadd.f32 %v2155_v23, %v2147_v15  ;;  %6532 = vmatpush3.bf16.msra.mxu0 %v7645_v60  ;;  %v2691_v60 = vld [vmem:[%s8021_s3] sm:$0xff]  ;;  %v6565_v22 = vpack.c.bf16 %v2701_v21, %v2700_v20 }
 0xc42   :  { %v6549_v43 = vpack.c.bf16 %v2692_v29, %v2691_v60  ;;  %v2702_v23 = vld [vmem:[%s8024_s14] sm:$0xff] }
 0xc43   :  { %v6511_v24 = vpack.c.bf16 %v2159_v27, %v2158_v37  ;;  %6064 = vmatmul.mubr.msk.f32.gmra.mrb[38].mxu0 %vm580_vm4, %v2159_v27  ;;  %v6561_v37 = vpack.c.bf16 %v2699_v30, %v2698_v6  ;;  %v2703_v27 = vld [vmem:[%s8024_s14 + $0x8] sm:$0xff] }
 0xc45   :  { %6512 = vmatpush3.bf16.msra.mxu1 %v6511_v24  ;;  %v2704_v24 = vld [vmem:[%s8024_s14 + $0x10] sm:$0xff] }
 0xc46   :  { %6518 = vmatprep.subr.bf16.mxu1 %v6517_v0 }
 0xc48   :  { %6050 = vmatmul.mubr.msk.f32.vlgmr.msra.gmra.mrb[60].mxu1 %vm580_vm4, %v6992_v17 }
 0xc49   :  { %6520 = vmatpush3.bf16.msra.mxu1 %v6517_v0  ;;  %v2695_v0 = vld [vmem:[%s8021_s3 + $0x20] sm:$0xff] }
 0xc4a   :  { %6522 = vmatprep.subr.bf16.mxu1 %v6521_v31  ;;  %v6557_v1 = vpack.c.bf16 %v2696_v42, %v2695_v0 }
 0xc4d   :  { %6524 = vmatpush3.bf16.msra.mxu1 %v6521_v31 }
 0xc4e   :  { %6534 = vmatprep.subr.bf16.mxu1 %v6533_v39 }
 0xd0f   :  { %v6062_v40 = vpop.f32.mrb[36].mxu0 }
 0xd10   :  { %v2308_v45 = vpop.f32.mrb[37].mxu0  ;;  %v2328_v8 = vsub.f32 15.0, %v6062_v40 }
 0xd11   :  { %v2327_v4 = vsub.f32 15.0, %v2308_v45 }
 0xd16   :  { %v6065_v47 = vpop.f32.mrb[38].mxu0 }
 0xd17   :  { %v2318_v48 = vpop.f32.mrb[39].mxu0  ;;  %v2330_v10 = vsub.f32 15.0, %v6065_v47 }
 0xd18   :  { %v2329_v9 = vsub.f32 15.0, %v2318_v48 }
 0xd1b   :  { %v2226_v51 = vpop.f32.mrb[60].mxu1 }
 0xd1c   :  { %v2334_v53 = vrot.slane %v2226_v51, %v7392_v55  ;;  %v6051_v32 = vpop.f32.mrb[61].mxu1 }
 0xd1e   :  { %vm2335_vm6 = vcmp.eq.f32.partialorder %v2334_v53, %v1900_v49  ;;  %vm2336_vm8 = vcmp.eq.f32.partialorder %v2334_v53, %v1901_v50 }
 0xd1f   :  { %v2338_v54 = vsel %vm2336_vm8, 1.0, %v6991_v25  ;;  %v2337_v56 = vsel %vm2335_vm6, 1.0, %v6991_v25  ;;  %vm7732_vm6 = vmpackc.low %vm2791_vm5, %vm2791_vm5  ;;  %vm3002_vm8 = vcmask 130048  }
 0xd20   :  { %6074 = vmatprep.mubr.msk.f32.mxu1 %vm580_vm4, %v2337_v56  ;;  %6085 = vmatprep.mubr.msk.f32.mxu0 %vm580_vm4, %v2337_v56 }
 0xd21   :  { %6075 = vmatmul.mubr.msk.f32.vlgmr.msra.gmra.mrb[62].mxu1 %vm580_vm4, %v2338_v54  ;;  %6086 = vmatmul.mubr.msk.f32.vlgmr.msra.gmra.mrb[40].mxu0 %vm580_vm4, %v2338_v54 }
 0xd22   :  { %6536 = vmatpush3.bf16.msra.mxu1 %v6533_v39  ;;  %6096 = vmatprep.mubr.msk.f32.mxu1 %vm580_vm4, %v2337_v56 }
 0xd23   :  { %6538 = vmatprep.subr.bf16.mxu1 %v6537_v59 }
 0xd26   :  { %6540 = vmatpush3.bf16.msra.mxu1 %v6537_v59 }
 0xd27   :  { %6550 = vmatprep.subr.bf16.mxu1 %v6549_v43 }
 0xd29   :  { %6097 = vmatmul.mubr.msk.f32.vlgmr.msra.gmra.mrb[64].mxu1 %vm580_vm4, %v2338_v54 }
 0xd2a   :  { %6552 = vmatpush3.bf16.msra.mxu1 %v6549_v43 }
 0xd2b   :  { %6554 = vmatprep.subr.bf16.mxu1 %v6553_v62 }
 0xd2e   :  { %6556 = vmatpush3.bf16.msra.mxu1 %v6553_v62 }
 0xd2f   :  { %6558 = vmatprep.subr.bf16.mxu1 %v6557_v1 }
 0xd32   :  { %6560 = vmatpush3.bf16.msra.mxu1 %v6557_v1 }
 0xd33   :  { %6122 = vmatprep.subr.msk.mxu1 %vm476_vm2, %v2697_v2 }
 0xd36   :  { %6123 = vmatpush3.msk.msra.mxu1 %vm476_vm2, %v2697_v2 }
 0xdf4   :  { %v6076_v28 = vpop.f32.mrb[62].mxu1  ;;  %v6087_v63 = vpop.f32.mrb[40].mxu0 }
 0xdf5   :  { %v2439_v44 = vpop.f32.mrb[63].mxu1  ;;  %v2514_v31 = vpop.f32.mrb[41].mxu0 }
 0xdf6   :  { %2525 = vperm.xlu0 %6723, %v2439_v44  }
 0xdfa   :  { %2530 = vperm.xlu0 %6723, %v6076_v28  }
 0xdfc   :  { %v6098_v5 = vpop.f32.mrb[64].mxu1 }
 0xdfd   :  { %v2601_v7 = vpop.f32.mrb[65].mxu1 }
 0xdfe   :  { %2341 = vperm.xlu0 %6723, %v2327_v4   ;;  %6107 = vmatprep.mubr.msk.f32.mxu0 %vm580_vm4, %v2601_v7 }
 0xe02   :  { %2346 = vperm.xlu0 %6723, %v2328_v8  }
 0xe06   :  { %2351 = vperm.xlu0 %6723, %v2329_v9  }
 0xe0a   :  { %2356 = vperm.xlu0 %6723, %v2330_v10  }
 0xe28   :  { %2877 = vxpose.xlu0.b32.start [1/4] (short) (narrow) %v2702_v23, 8  ;;  %v3120_v23 = vld [vmem:[%s8029_s19] sm:$0xff] }
 0xe2c   :  { %2878 = vxpose.xlu0.b32.cont [2/4] (short) (narrow) %v2703_v27, 8 }
 0xe30   :  { %2879 = vxpose.xlu0.b32.cont [3/4] (short) (narrow) %v2704_v24, 8 }
 0xe34   :  { %2880 = vxpose.xlu0.b32.end [4/4] (short) (narrow) %v2705_v36, 8 }
 0xe75   :  { %v2526_v11 = vpop.permute.xlu0 %2525 }
 0xe76   :  { %v2533_v12 = vmul.f32 %v2526_v11, %v2514_v31 }
 0xe78   :  { %6124 = vmatprep.mubr.msk.f32.mxu1 %vm463_vm3, %v2533_v12 }
 0xe79   :  { %v2531_v46 = vpop.permute.xlu0 %2530 }
 0xe7a   :  { %v2534_v14 = vmul.f32 %v6087_v63, %v2531_v46 }
 0xe7c   :  { %6125 = vmatmul.mubr.msk.f32.vlgmr.msra.gmra.mrb[66].mxu1 %vm463_vm3, %v2534_v14 }
 0xe7d   :  { %v2342_v16 = vpop.permute.xlu0 %2341 }
 0xe7e   :  { %vm2359_vm2 = vcmp.eq.f32.partialorder %v2342_v16, %v1902_v13 }
 0xe81   :  { %v2347_v52 = vpop.permute.xlu0 %2346 }
 0xe82   :  { %vm2360_vm9 = vcmp.eq.f32.partialorder %v2347_v52, %v1903_v18  ;;  %v5672_v52 = vld [vmem:[#allocation5] ss:$0 sm:$0xff] }
 0xe83   :  { %vm6541_vm10 = vmpackc.low %vm2360_vm9, %vm2359_vm2 }
 0xe84   :  { %6542 = vmatprep.subr.msk.bf16.mxu0 %vm6541_vm10, %v6996_v61 }
 0xe85   :  { %6544 = vmatpush3.bf16.msk.msra.mxu0 %vm6541_vm10, %v6996_v61  ;;  %v2352_v19 = vpop.permute.xlu0 %2351 }
 0xe86   :  { %vm2361_vm3 = vcmp.eq.f32.partialorder %v2352_v19, %v1904_v26 }
 0xe89   :  { %v2357_v3 = vpop.permute.xlu0 %2356 }
 0xe8a   :  { %vm2362_vm11 = vcmp.eq.f32.partialorder %v2357_v3, %v1905_v57 }
 0xe8b   :  { %vm6545_vm12 = vmpackc.low %vm2362_vm11, %vm2361_vm3 }
 0xe8c   :  { %6546 = vmatprep.subr.msk.bf16.mxu0 %vm6545_vm12, %v6996_v61 }
 0xe8d   :  { %6548 = vmatpush3.bf16.msk.msra.mxu0 %vm6545_vm12, %v6996_v61 }
 0xe8e   :  { %6562 = vmatprep.subr.bf16.mxu0 %v6561_v37 }
 0xe90   :  { %6108 = vmatmul.mubr.msk.f32.vlgmr.msra.gmra.mrb[42].mxu0 %vm580_vm4, %v6098_v5 }
 0xe91   :  { %6564 = vmatpush3.bf16.msra.mxu0 %v6561_v37 }
 0xe92   :  { %6567 = vmatprep.subr.msk.bf16.mxu0 %vm7716_vm15, %v6565_v22 }
 0xe95   :  { %6570 = vmatpush3.bf16.msk.msra.mxu0 %vm7716_vm15, %v6565_v22 }
 0xe96   :  { %6571 = vmatprep.subr.bf16.mxu0 %v6993_v34 }
 0xea8   :  { %v2893_v47 = vpop.trf.xlu0 }
 0xf4f   :  { %v6126_v38 = vpop.f32.mrb[66].mxu1 }
 0xf50   :  { %v2782_v39 = vpop.f32.mrb[67].mxu1 }
 0xf51   :  { %v6572_v45 = vpack.c.bf16 %v6126_v38, %v2782_v39  ;;  %6135 = vmatprep.mubr.msk.f32.mxu0 %vm2791_vm5, %v2782_v39 }
 0xf52   :  { %6136 = vmatmul.mubr.msk.f32.vlgmr.msra.gmra.mrb[44].mxu0 %vm2791_vm5, %v6126_v38 }
 0xf53   :  { %6576 = vmatprep.subr.bf16.mxu1 %v6572_v45  ;;  %6574 = vmatpush3.bf16.xpose.msk.msra.mxu0 %vm7732_vm6, %v6572_v45 }
 0xf54   :  { %6578 = vmatpush3.bf16.msra.mxu1 %v6572_v45  ;;  %6142 = vmatprep.mubr.msk.f32.mxu0 %vm6995_vm7, %v6991_v25  ;;  %v3121_v45 = vld [vmem:[%s8029_s19 + $0x8] sm:$0xff] }
 0xf5a   :  { %6143 = vmatmul.mubr.msk.f32.vlgmr.msra.gmra.mrb[46].mxu0 %vm2791_vm5, %v2893_v47 }
 0xf5b   :  { %6163 = vmatprep.mubr.msk.f32.mxu0 %vm3002_vm8, %v3120_v23 }
 0xf63   :  { %v7743_v48 = vpop.f32.mrb[42].mxu0 }
 0xf64   :  { %v7745_v49 = vpop.f32.mrb[43].mxu0 }
 0xf65   :  { %v6613_v50 = vpack.c.bf16 %v7743_v48, %v7745_v49 }
0x1025   :  { %v6137_v51 = vpop.f32.mrb[44].mxu0 }
0x1026   :  { %2989 = vperm.xlu0 %6723, %v6137_v51   ;;  %v2868_v53 = vpop.f32.mrb[45].mxu0 }
0x1027   :  { %2984 = vperm.xlu1 %6724, %v2868_v53  }
0x102d   :  { %v2978_v32 = vpop.f32.mrb[46].mxu0 }
0x102e   :  { %v6144_v54 = vpop.f32.mrb[47].mxu0  ;;  %v2995_v56 = vrot.slane %v2978_v32, %v7392_v55 }
0x10a5   :  { %v2990_v33 = vpop.permute.xlu0 %2989 }
0x10a6   :  { %v2997_v58 = vadd.f32 %v2995_v56, %v2990_v33  ;;  %v2985_v59 = vpop.permute.xlu1 %2984 }
0x10a7   :  { %v2996_v60 = vadd.f32 %v2995_v56, %v2985_v59 }
0x10a8   :  { %v2999_v29 = vmul.f32 0.2, %v2997_v58 }
0x10a9   :  { %v2998_v35 = vmul.f32 0.2, %v2996_v60 }
0x10aa   :  { %v3001_v43 = vmax.f32 %v2997_v58, %v2999_v29 }
0x10ab   :  { %v3000_v41 = vmax.f32 %v2996_v60, %v2998_v35 }
0x10ac   :  { %v3006_v62 = vsel %vm3002_vm8, %v3001_v43, -inf }
0x10ad   :  { %3007 = vmax.xlane.f32.xlu0 %v3006_v62  ;;  %v3003_v28 = vsel %vm3002_vm8, %v3000_v41, -inf }
0x10ae   :  { %3004 = vmax.xlane.f32.xlu1 %v3003_v28  ;;  %v3323_v28 = vld [vmem:[%s8030_s24] sm:$0xff] }
0x113a   :  { %v3008_v63 = vpop.xlane.xlu0 %3007 }
0x113b   :  { %v3010_v0 = vsub.f32 %v3001_v43, %v3008_v63  ;;  %v3005_v42 = vpop.xlane.xlu1 %3004  ;;  %v3324_v63 = vld [vmem:[%s8030_s24 + $0x8] sm:$0xff] }
0x113c   :  { %v3009_v44 = vsub.f32 %v3000_v41, %v3005_v42 }
0x113d   :  { %v3013_v31 = vmul.f32 1.442695, %v3010_v0  ;;  %v6587_v0 = vpack.c.bf16 %v3324_v63, %v3323_v28 }
0x113e   :  { %v3011_v1 = vmul.f32 1.442695, %v3009_v44 }
0x113f   :  { %6767 = vpow2.f32 %v3013_v31 }
0x1140   :  { %6769 = vpow2.f32 %v3011_v1 }
0x1149   :  { %v6768_v2 = vpop.eup %6767 }
0x114a   :  { %v6770_v4 = vpop.eup %6769  ;;  %v3016_v8 = vmul.f32 %v6768_v2, %v7743_v48  ;;  %v3325_v2 = vld [vmem:[%s8030_s24 + $0x10] sm:$0xff] }
0x114b   :  { %v3015_v5 = vmul.f32 %v6770_v4, %v7745_v49  ;;  %v3326_v4 = vld [vmem:[%s8030_s24 + $0x18] sm:$0x3f] }
0x114c   :  { %v3020_v9 = vsel %vm3002_vm8, %v3016_v8, 0.0 }
0x114d   :  { %v3017_v7 = vsel %vm3002_vm8, %v3015_v5, 0.0 }
0x114e   :  { %3018 = vadd.xlane.f32.xlu1 %v3017_v7  ;;  %v6591_v7 = vpack.c.bf16 %v3326_v4, %v3325_v2 }
0x1152   :  { %3021 = vadd.xlane.f32.xlu1 %v3020_v9 }
0x11db   :  { %v3019_v10 = vpop.xlane.xlu1 %3018 }
0x11dc   :  { %v3023_v11 = vmax.f32 %v3019_v10, 1e-30 }
0x11de   :  { %6771 = vrcp.f32 %v3023_v11 }
0x11df   :  { %v3022_v12 = vpop.xlane.xlu1 %3021 }
0x11e0   :  { %v3024_v46 = vmax.f32 %v3022_v12, 1e-30 }
0x11e2   :  { %6773 = vrcp.f32 %v3024_v46 }
0x11e8   :  { %v6772_v14 = vpop.eup %6771 }
0x11e9   :  { %v3027_v16 = vmul.f32 %v6772_v14, %v3015_v5 }
0x11eb   :  { %6149 = vmatprep.mubr.msk.f32.mxu1 %vm3002_vm8, %v3027_v16 }
0x11ec   :  { %v6774_v13 = vpop.eup %6773 }
0x11ed   :  { %v3028_v18 = vmul.f32 %v6774_v13, %v3016_v8 }
0x11ef   :  { %6150 = vmatmul.mubr.msk.f32.vlgmr.msra.gmra.mrb[68].mxu1 %vm3002_vm8, %v3028_v18 }
0x11f0   :  { %6156 = vmatprep.mubr.msk.f32.mxu1 %vm3002_vm8, %v3120_v23  ;;  %v3328_v23 = vld [vmem:[%s8031_s20 + $0x8] sm:$0xff] }
0x12c2   :  { %v6151_v19 = vpop.f32.mrb[68].mxu1 }
0x12c3   :  { %v3113_v26 = vadd.f32 %v6151_v19, %v5672_v52  ;;  %v3107_v57 = vpop.f32.mrb[69].mxu1 }
0x12c4   :  { %v3108_v6 = vadd.f32 %v5672_v52, %v3107_v57 }
0x12c5   :  { %v3117_v30 = vmul.f32 0.01, %v3113_v26 }
0x12c6   :  { %v3116_v3 = vmul.f32 0.01, %v3108_v6 }
0x12c7   :  { %v3119_v21 = vmax.f32 %v3113_v26, %v3117_v30  ;;  %v3327_v30 = vld [vmem:[%s8031_s20] sm:$0xff] }
0x12c8   :  { %v3118_v37 = vmax.f32 %v3108_v6, %v3116_v3  ;;  %v3329_v3 = vld [vmem:[%s8032_s27] sm:$0xff] }
0x12c9   :  { %v3125_v22 = vsel %vm2791_vm5, %v3119_v21, 0.0 }
0x12ca   :  { %v3122_v20 = vsel %vm2791_vm5, %v3118_v37, 0.0 }
0x12cb   :  { %3123 = vadd.xlane.f32.xlu1 %v3122_v20 }
0x12cf   :  { %3126 = vadd.xlane.f32.xlu1 %v3125_v22 }
0x1358   :  { %v3124_v27 = vpop.xlane.xlu1 %3123 }
0x1359   :  { %v3129_v36 = vmul.f32 0.033333335, %v3124_v27  ;;  %v3330_v27 = vld [vmem:[%s8032_s27 + $0x8] sm:$0xff] }
0x135c   :  { %v3127_v24 = vpop.xlane.xlu1 %3126 }
0x135d   :  { %v3130_v38 = vmul.f32 0.033333335, %v3127_v24 }
0x135f   :  { %v6579_v39 = vpack.c.bf16 %v3130_v38, %v3129_v36 }
0x1361   :  { %6580 = vmatprep.subr.bf16.mxu1 %v6579_v39 }
0x1362   :  { %6582 = vmatpush3.bf16.msra.mxu1 %v6579_v39 }
0x1363   :  { %6588 = vmatprep.subr.bf16.mxu1 %v6587_v0 }
0x1365   :  { %6157 = vmatmul.mubr.msk.f32.vlgmr.msra.gmra.mrb[70].mxu1 %vm3002_vm8, %v3121_v45 }
0x1366   :  { %6590 = vmatpush3.bf16.msra.mxu1 %v6587_v0 }
0x1367   :  { %6593 = vmatprep.subr.msk.bf16.mxu1 %vm7716_vm15, %v6591_v7 }
0x136a   :  { %6596 = vmatpush3.bf16.msk.msra.mxu1 %vm7716_vm15, %v6591_v7  ;;  %v4021_v7 = vld [vmem:[%s8037_s2] sm:$0xff] }
0x136b   :  { %6601 = vmatprep.subr.bf16.mxu1 %v6993_v34 }
0x1438   :  { %v6158_v47 = vpop.f32.mrb[70].mxu1 }
0x1439   :  { %3219 = vperm.xlu0 %6723, %v6158_v47   ;;  %v3203_v51 = vpop.f32.mrb[71].mxu1 }
0x143a   :  { %3214 = vperm.xlu1 %6724, %v3203_v51  }
0x14b8   :  { %v3220_v53 = vpop.permute.xlu0 %3219 }
0x14b9   :  { %v3223_v32 = vsub.f32 %v3119_v21, %v3220_v53  ;;  %v3215_v54 = vpop.permute.xlu1 %3214  ;;  %v3331_v53 = vld [vmem:[%s8033_s26] sm:$0xff] }
0x14ba   :  { %v3222_v56 = vsub.f32 %v3118_v37, %v3215_v54 }
0x14bb   :  { %v3225_v33 = vmul.f32 %v3223_v32, %v3223_v32 }
0x14bc   :  { %v3224_v58 = vmul.f32 %v3222_v56, %v3222_v56 }
0x14bd   :  { %v3229_v59 = vsel %vm2791_vm5, %v3225_v33, 0.0 }
0x14be   :  { %3230 = vadd.xlane.f32.xlu0 %v3229_v59  ;;  %v3226_v60 = vsel %vm2791_vm5, %v3224_v58, 0.0  ;;  %v4017_v58 = vld [vmem:[%s8034_s28] sm:$0xff]  ;;  %v4018_v59 = vld [vmem:[%s8034_s28 + $0x8] sm:$0xff] }
0x14bf   :  { %3227 = vadd.xlane.f32.xlu1 %v3226_v60  ;;  %v4019_v60 = vld [vmem:[%s8034_s28 + $0x10] sm:$0xff] }
0x154b   :  { %v3231_v29 = vpop.xlane.xlu0 %3230 }
0x154c   :  { %v3233_v35 = vmul.f32 0.033333335, %v3231_v29  ;;  %v3228_v43 = vpop.xlane.xlu1 %3227  ;;  %v6619_v29 = vpack.c.bf16 %v4018_v59, %v4017_v58 }
0x154d   :  { %v3232_v41 = vmul.f32 0.033333335, %v3228_v43 }
0x154f   :  { %v6583_v62 = vpack.c.bf16 %v3233_v35, %v3232_v41  ;;  %v4020_v35 = vld [vmem:[%s8034_s28 + $0x18] sm:$0x3f] }
0x1550   :  { %v6622_v48 = vpack.c.bf16 %v4020_v35, %v4019_v60 }
0x1551   :  { %6584 = vmatprep.subr.bf16.mxu0 %v6583_v62 }
0x1552   :  { %6586 = vmatpush3.bf16.msra.mxu0 %v6583_v62 }
0x1553   :  { %6597 = vmatprep.subr.bf16.mxu0 %v6993_v34 }
0x1555   :  { %6164 = vmatmul.mubr.msk.f32.vlgmr.msra.gmra.mrb[48].mxu0 %vm3002_vm8, %v3121_v45 }
0x1556   :  { %6181 = vmatprep.mubr.msk.f32.mxu0 %vm6995_vm7, %v6991_v25 }
0x1628   :  { %v6165_v42 = vpop.f32.mrb[48].mxu0 }
0x1629   :  { %v3306_v44 = vadd.f32 1e-05, %v6165_v42  ;;  %v3300_v31 = vpop.f32.mrb[49].mxu0  ;;  %v4025_v42 = vld [vmem:[%s8035_s4] sm:$0xff] }
0x162a   :  { %v3301_v1 = vadd.f32 1e-05, %v3300_v31 }
0x162b   :  { %6775 = vrsqrt.f32 %v3306_v44 }
0x162c   :  { %6777 = vrsqrt.f32 %v3301_v1 }
0x1635   :  { %v6776_v5 = vpop.eup %6775 }
0x1636   :  { %v6778_v8 = vpop.eup %6777  ;;  %3318 = vperm.xlu0 %6723, %v6776_v5  }
0x1637   :  { %3313 = vperm.xlu1 %6724, %v6778_v8   ;;  %v4022_v8 = vld [vmem:[%s8037_s2 + $0x8] sm:$0xff] }
0x1660   :  { %3420 = vxpose.xlu1.b32.start [1/4] (short) (narrow) %v3323_v28, 8 }
0x1664   :  { %3421 = vxpose.xlu1.b32.cont [2/4] (short) (narrow) %v3324_v63, 8 }
0x1668   :  { %3422 = vxpose.xlu1.b32.cont [3/4] (short) (narrow) %v3325_v2, 8  ;;  %v3332_v2 = vld [vmem:[%s8036_s1] sm:$0xff] }
0x166c   :  { %3423 = vxpose.xlu1.b32.end [4/4] (short) (narrow) %v3326_v4, 8  ;;  %v3333_v4 = vld [vmem:[%s8036_s1 + $0x8] sm:$0xff] }
0x16b5   :  { %v3319_v9 = vpop.permute.xlu0 %3318 }
0x16b6   :  { %v3322_v10 = vmul.f32 %v3319_v9, %v3223_v32  ;;  %v3314_v11 = vpop.permute.xlu1 %3313  ;;  %v6626_v9 = vpack.c.bf16 %v4022_v8, %v4021_v7 }
0x16b7   :  { %v3321_v12 = vmul.f32 %v3314_v11, %v3222_v56  ;;  %v4024_v11 = vld [vmem:[%s8037_s2 + $0x18] sm:$0x3f] }
0x16b9   :  { %v6598_v46 = vpack.c.bf16 %v3322_v10, %v3321_v12  ;;  %6174 = vmatprep.mubr.msk.f32.mxu1 %vm2791_vm5, %v3321_v12 }
0x16ba   :  { %6175 = vmatmul.mubr.msk.f32.vlgmr.msra.gmra.mrb[72].mxu1 %vm2791_vm5, %v3322_v10  ;;  %v4023_v10 = vld [vmem:[%s8037_s2 + $0x10] sm:$0xff] }
0x16bb   :  { %6600 = vmatpush3.bf16.xpose.msk.msra.mxu0 %vm7732_vm6, %v6598_v46  ;;  %6188 = vmatprep.mubr.msk.f32.mxu1 %vm6995_vm7, %v6991_v25  ;;  %v6629_v12 = vpack.c.bf16 %v4024_v11, %v4023_v10 }
0x16bc   :  { %6604 = vmatprep.subr.bf16.mxu0 %v6996_v61 }
0x16e0   :  { %v3436_v14 = vpop.trf.xlu1 }
0x16e1   :  { %6182 = vmatmul.mubr.msk.f32.vlgmr.msra.gmra.mrb[50].mxu0 %vm2791_vm5, %v3436_v14  ;;  %v4028_v14 = vld [vmem:[%s8035_s4 + $0x18] sm:$0x3f] }
0x16e2   :  { %6605 = vmatpush3.bf16.msra.mxu0 %v6996_v61 }
0x16e3   :  { %6609 = vmatprep.subr.bf16.mxu0 %v6993_v34 }
0x178d   :  { %v6176_v16 = vpop.f32.mrb[72].mxu1 }
0x178e   :  { %6779 = vtanh.f32 %v6176_v16  ;;  %v3409_v13 = vpop.f32.mrb[73].mxu1 }
0x178f   :  { %6781 = vtanh.f32 %v3409_v13 }
0x1798   :  { %v6780_v40 = vpop.eup %6779 }
0x1799   :  { %v6782_v18 = vpop.eup %6781 }
0x179a   :  { %3528 = vperm.xlu0 %6723, %v6782_v18   ;;  %v6607_v52 = vpack.c.bf16 %v6780_v40, %v6782_v18 }
0x179e   :  { %3533 = vperm.xlu0 %6723, %v6780_v40  }
0x17b4   :  { %v3521_v19 = vpop.f32.mrb[50].mxu0 }
0x17b5   :  { %v6183_v26 = vpop.f32.mrb[51].mxu0  ;;  %6783 = vtanh.f32 %v3521_v19 }
0x17bf   :  { %v6784_v57 = vpop.eup %6783 }
0x17c0   :  { %v3539_v6 = vrot.slane %v6784_v57, %v7392_v55 }
0x1819   :  { %v3529_v37 = vpop.permute.xlu0 %3528 }
0x181a   :  { %vm3540_vm2 = vcmp.gt.f32.partialorder %v3529_v37, %v3539_v6  ;;  %vm3544_vm9 = vcmp.eq.f32.partialorder %v3529_v37, %v3539_v6 }
0x181b   :  { %v3542_v20 = vsel %vm3540_vm2, %v3327_v30, 0.0  ;;  %v3546_v21 = vsel %vm3544_vm9, %v3329_v3, 0.0 }
0x181c   :  { %v3548_v22 = vadd.f32 %v3546_v21, %v3542_v20 }
0x181d   :  { %v3534_v24 = vpop.permute.xlu0 %3533 }
0x181e   :  { %vm3541_vm10 = vcmp.gt.f32.partialorder %v3534_v24, %v3539_v6  ;;  %vm3545_vm3 = vcmp.eq.f32.partialorder %v3534_v24, %v3539_v6  ;;  %6195 = vmatprep.mubr.msk.f32.mxu0 %vm3002_vm8, %v3548_v22 }
0x181f   :  { %v3543_v36 = vsel %vm3541_vm10, %v3328_v23, 0.0  ;;  %v3547_v38 = vsel %vm3545_vm3, %v3330_v27, 0.0  ;;  %vm5012_vm3 = vcmask 240640  }
0x1820   :  { %v3549_v39 = vadd.f32 %v3547_v38, %v3543_v36 }
0x1822   :  { %v6602_v45 = vpack.c.bf16 %v3549_v39, %v3548_v22  ;;  %6196 = vmatmul.mubr.msk.f32.vlgmr.msra.gmra.mrb[52].mxu0 %vm3002_vm8, %v3549_v39 }
0x1823   :  { %6611 = vmatpush3.bf16.msra.mxu0 %v6598_v46  ;;  %6209 = vmatprep.mubr.msk.f32.mxu0 %vm6995_vm7, %v6991_v25  ;;  %v4027_v46 = vld [vmem:[%s8035_s4 + $0x10] sm:$0xff] }
0x1824   :  { %6603 = vmatpush3.bf16.msra.mxu1 %v6602_v45  ;;  %6615 = vmatprep.subr.bf16.mxu0 %v6993_v34 }
0x1825   :  { %6606 = vmatprep.subr.bf16.mxu1 %v6993_v34 }
0x1827   :  { %6189 = vmatmul.mubr.msk.f32.vlgmr.msra.gmra.mrb[74].mxu1 %vm3002_vm8, %v6992_v17 }
0x1828   :  { %6608 = vmatpush3.bf16.msra.mxu1 %v6607_v52  ;;  %6202 = vmatprep.mubr.msk.f32.mxu1 %vm6995_vm7, %v6991_v25 }
0x1829   :  { %6612 = vmatprep.subr.bf16.mxu1 %v6993_v34 }
0x18f5   :  { %v6197_v47 = vpop.f32.mrb[52].mxu0 }
0x18f6   :  { %v3694_v51 = vpop.f32.mrb[53].mxu0  ;;  %v3704_v0 = vsub.f32 7.0, %v6197_v47 }
0x18f7   :  { %v3703_v62 = vsub.f32 7.0, %v3694_v51 }
0x18fa   :  { %v3618_v32 = vpop.f32.mrb[74].mxu1 }
0x18fb   :  { %v3708_v54 = vrot.slane %v3618_v32, %v7392_v55  ;;  %v6190_v56 = vpop.f32.mrb[75].mxu1  ;;  %v5700_v32 = vld [vmem:[#allocation7] ss:$0 sm:$0xff] }
0x18fd   :  { %vm3709_vm11 = vcmp.eq.f32.partialorder %v3708_v54, %v3331_v53 }
0x18fe   :  { %v3710_v33 = vsel %vm3709_vm11, 1.0, %v6991_v25  ;;  %vm5263_vm11 = vcmask 490496  }
0x18ff   :  { %6203 = vmatmul.mubr.msk.f32.vlgmr.msra.gmra.mrb[76].mxu1 %vm3002_vm8, %v3710_v33  ;;  %6210 = vmatmul.mubr.msk.f32.vlgmr.msra.gmra.mrb[54].mxu0 %vm3002_vm8, %v3710_v33 }
0x1900   :  { %6614 = vmatpush3.bf16.msra.mxu1 %v6613_v50  ;;  %6216 = vmatprep.mubr.msk.f32.mxu1 %vm6995_vm7, %v6991_v25 }
0x1901   :  { %6618 = vmatprep.subr.bf16.mxu1 %v6993_v34  ;;  %6223 = vmatprep.mubr.msk.f32.mxu0 %vm6995_vm7, %v6991_v25 }
0x1903   :  { %6217 = vmatmul.mubr.msk.f32.vlgmr.msra.gmra.mrb[78].mxu1 %vm3002_vm8, %v3710_v33 }
0x1904   :  { %6234 = vmatprep.mubr.msk.f32.mxu1 %vm6995_vm7, %v6991_v25  ;;  %6620 = vmatpush3.bf16.msra.mxu1 %v6619_v29 }
0x1905   :  { %6621 = vmatprep.subr.bf16.mxu1 %v6993_v34 }
0x1908   :  { %6624 = vmatpush3.bf16.msk.msra.mxu1 %vm7716_vm15, %v6622_v48  ;;  %v4394_v48 = vld [vmem:[%s8038_s7] sm:$0xff] }
0x1909   :  { %6248 = vmatprep.subr.mxu1 %v6991_v25 }
0x19d2   :  { %v3794_v49 = vpop.f32.mrb[76].mxu1  ;;  %v3864_v50 = vpop.f32.mrb[54].mxu0 }
0x19d3   :  { %3870 = vperm.xlu0 %6723, %v3794_v49   ;;  %v6204_v43 = vpop.f32.mrb[77].mxu1  ;;  %v6211_v41 = vpop.f32.mrb[55].mxu0 }
0x19d6   :  { %v3940_v28 = vpop.f32.mrb[78].mxu1 }
0x19d7   :  { %3713 = vperm.xlu0 %6723, %v3703_v62   ;;  %v6218_v63 = vpop.f32.mrb[79].mxu1 }
0x19db   :  { %3718 = vperm.xlu0 %6723, %v3704_v0  }
0x19f9   :  { %4182 = vxpose.xlu0.b32.start [1/4] (short) (narrow) %v4025_v42, 8  ;;  %v4560_v42 = vld [vmem:[%s8039_s10] sm:$0xff] }
0x1a52   :  { %v3871_v44 = vpop.permute.xlu0 %3870 }
0x1a53   :  { %v3873_v31 = vmul.f32 %v3871_v44, %v3864_v50  ;;  %v4561_v44 = vld [vmem:[%s8039_s10 + $0x8] sm:$0xff] }
0x1a55   :  { %6235 = vmatmul.mubr.msk.f32.vlgmr.msra.gmra.mrb[80].mxu1 %vm2791_vm5, %v3873_v31  ;;  %v4562_v31 = vld [vmem:[%s8039_s10 + $0x10] sm:$0xff] }
0x1a56   :  { %v3714_v1 = vpop.permute.xlu0 %3713  ;;  %6250 = vmatprep.mubr.msk.f32.mxu1 %vm6995_vm7, %v6991_v25 }
0x1a57   :  { %vm3721_vm12 = vcmp.eq.f32.partialorder %v3714_v1, %v3332_v2  ;;  %v6633_v1 = vpack.c.bf16 %v4561_v44, %v4560_v42  ;;  %v4563_v2 = vld [vmem:[%s8039_s10 + $0x18] sm:$0x3f] }
0x1a5a   :  { %v3719_v5 = vpop.permute.xlu0 %3718 }
0x1a5b   :  { %vm3722_vm13 = vcmp.eq.f32.partialorder %v3719_v5, %v3333_v4  ;;  %v6636_v4 = vpack.c.bf16 %v4563_v2, %v4562_v31 }
0x1a5c   :  { %vm6616_vm6 = vmpackc.low %vm3722_vm13, %vm3721_vm12 }
0x1a5d   :  { %6617 = vmatpush3.bf16.msk.msra.mxu0 %vm6616_vm6, %v6996_v61  ;;  %v4026_v61 = vld [vmem:[%s8035_s4 + $0x8] sm:$0xff] }
0x1a5e   :  { %6625 = vmatprep.subr.bf16.mxu0 %v6993_v34  ;;  %4183 = vxpose.xlu0.b32.cont [2/4] (short) (narrow) %v4026_v61, 8 }
0x1a60   :  { %6224 = vmatmul.mubr.msk.f32.vlgmr.msra.gmra.mrb[56].mxu0 %vm3002_vm8, %v3940_v28  ;;  %vm4299_vm8 = vcmask 64512  }
0x1a61   :  { %6627 = vmatpush3.bf16.msra.mxu0 %v6626_v9  ;;  %6245 = vmatprep.mubr.msk.f32.mxu0 %vm6995_vm7, %v6991_v25 }
0x1a62   :  { %6628 = vmatprep.subr.bf16.mxu0 %v6993_v34  ;;  %4184 = vxpose.xlu0.b32.cont [3/4] (short) (narrow) %v4027_v46, 8 }
0x1a65   :  { %6631 = vmatpush3.bf16.msk.msra.mxu0 %vm7716_vm15, %v6629_v12 }
0x1a66   :  { %6253 = vmatprep.subr.mxu0 %v6991_v25  ;;  %4185 = vxpose.xlu0.b32.end [4/4] (short) (narrow) %v4028_v14, 8 }
0x1ada   :  { %v4198_v40 = vpop.trf.xlu0 }
0x1b28   :  { %v4102_v16 = vpop.f32.mrb[80].mxu1 }
0x1b29   :  { %v6236_v13 = vpop.f32.mrb[81].mxu1  ;;  %6246 = vmatmul.mubr.msk.f32.vlgmr.msra.gmra.mrb[58].mxu0 %vm2791_vm5, %v4102_v16  ;;  %6249 = vmatpush3.xpose.msk.msra.mxu1 %vm2791_vm5, %v4102_v16 }
0x1b2a   :  { %6254 = vmatpush3.msra.mxu0 %v4102_v16  ;;  %6255 = vmatprep.mubr.msk.f32.mxu0 %vm6995_vm7, %v6991_v25 }
0x1b2b   :  { %6258 = vmatprep.subr.mxu1 %v6991_v25  ;;  %6263 = vmatprep.subr.mxu0 %v6991_v25 }
0x1b2c   :  { %6251 = vmatmul.mubr.msk.f32.vlgmr.msra.gmra.mrb[82].mxu1 %vm2791_vm5, %v4198_v40 }
0x1b2d   :  { %6260 = vmatprep.mubr.msk.f32.mxu1 %vm6995_vm7, %v6991_v25 }
0x1b33   :  { %v4013_v18 = vpop.f32.mrb[56].mxu0 }
0x1b34   :  { %v6225_v52 = vpop.f32.mrb[57].mxu0 }
0x1b35   :  { %v4564_v52 = vld [vmem:[%s8040_s11] sm:$0xff] }
0x1bfc   :  { %v4178_v19 = vpop.f32.mrb[58].mxu0 }
0x1bfd   :  { %4289 = vperm.xlu1 %6724, %v4178_v19   ;;  %v6247_v26 = vpop.f32.mrb[59].mxu0  ;;  %v4565_v19 = vld [vmem:[%s8041_s12] sm:$0xff] }
0x1bff   :  { %v4283_v57 = vpop.f32.mrb[82].mxu1 }
0x1c00   :  { %v6252_v6 = vpop.f32.mrb[83].mxu1  ;;  %v4295_v30 = vrot.slane %v4283_v57, %v7392_v55 }
0x1c7c   :  { %v4290_v3 = vpop.permute.xlu1 %4289 }
0x1c7d   :  { %v4296_v37 = vadd.f32 %v4295_v30, %v4290_v3  ;;  %v4566_v3 = vld [vmem:[%s8042_s15] sm:$0xf] }
0x1c7f   :  { %v4297_v20 = vmul.f32 0.2, %v4296_v37 }
0x1c81   :  { %v4298_v21 = vmax.f32 %v4296_v37, %v4297_v20 }
0x1c83   :  { %v4300_v22 = vsel %vm4299_vm8, %v4298_v21, -inf }
0x1c84   :  { %4301 = vmax.xlane.f32.xlu0 %v4300_v22 }
0x1d11   :  { %v4302_v23 = vpop.xlane.xlu0 %4301 }
0x1d12   :  { %v4303_v27 = vsub.f32 %v4298_v21, %v4302_v23 }
0x1d14   :  { %v4304_v24 = vmul.f32 1.442695, %v4303_v27 }
0x1d16   :  { %6785 = vpow2.f32 %v4304_v24 }
0x1d20   :  { %v6786_v36 = vpop.eup %6785 }
0x1d21   :  { %v4306_v38 = vmul.f32 %v6786_v36, %v4013_v18 }
0x1d23   :  { %v4307_v39 = vsel %vm4299_vm8, %v4306_v38, 0.0 }
0x1d24   :  { %4308 = vadd.xlane.f32.xlu1 %v4307_v39 }
0x1db1   :  { %v4309_v45 = vpop.xlane.xlu1 %4308 }
0x1db2   :  { %v4310_v47 = vmax.f32 %v4309_v45, 1e-30 }
0x1db4   :  { %6787 = vrcp.f32 %v4310_v47  ;;  %v4991_v47 = vld [vmem:[%s8043_s16] sm:$0xf] }
0x1dbe   :  { %v6788_v51 = vpop.eup %6787 }
0x1dbf   :  { %v4312_v53 = vmul.f32 %v6788_v51, %v4306_v38 }
0x1dc1   :  { %6256 = vmatmul.mubr.msk.f32.vlgmr.msra.gmra.mrb[60].mxu0 %vm4299_vm8, %v4312_v53 }
0x1dc2   :  { %6265 = vmatprep.mubr.msk.f32.mxu0 %vm6995_vm7, %v6991_v25 }
0x1e94   :  { %v4388_v54 = vpop.f32.mrb[60].mxu0 }
0x1e95   :  { %v4389_v56 = vadd.f32 %v5700_v32, %v4388_v54  ;;  %v6257_v33 = vpop.f32.mrb[61].mxu0 }
0x1e97   :  { %v4392_v58 = vmul.f32 0.01, %v4389_v56 }
0x1e99   :  { %v4393_v59 = vmax.f32 %v4389_v56, %v4392_v58 }
0x1e9b   :  { %v4395_v60 = vsel %vm2791_vm5, %v4393_v59, 0.0 }
0x1e9c   :  { %4396 = vadd.xlane.f32.xlu1 %v4395_v60 }
0x1f29   :  { %v4397_v29 = vpop.xlane.xlu1 %4396 }
0x1f2a   :  { %v4398_v35 = vmul.f32 0.033333335, %v4397_v29 }
0x1f2c   :  { %6259 = vmatpush3.msra.mxu1 %v4398_v35 }
0x1f2d   :  { %6261 = vmatmul.mubr.msk.f32.vlgmr.msra.gmra.mrb[84].mxu1 %vm4299_vm8, %v4394_v48  ;;  %6632 = vmatprep.subr.bf16.mxu1 %v6993_v34 }
0x1f2e   :  { %6276 = vmatprep.mubr.msk.f32.mxu1 %vm6995_vm7, %v6991_v25  ;;  %6634 = vmatpush3.bf16.msra.mxu1 %v6633_v1 }
0x1f2f   :  { %6635 = vmatprep.subr.bf16.mxu1 %v6993_v34 }
0x1f32   :  { %6638 = vmatpush3.bf16.msk.msra.mxu1 %vm7716_vm15, %v6636_v4  ;;  %v5003_v4 = vld [vmem:[%s8045_s29 + $0x28] sm:$0xff] }
0x1f33   :  { %6289 = vmatprep.subr.mxu1 %v6991_v25 }
0x2000   :  { %v4468_v49 = vpop.f32.mrb[84].mxu1 }
0x2001   :  { %4474 = vperm.xlu0 %6723, %v4468_v49   ;;  %v6262_v50 = vpop.f32.mrb[85].mxu1  ;;  %v4993_v49 = vld [vmem:[%s8044_s0] sm:$0xff] }
0x2002   :  { %v4994_v50 = vld [vmem:[%s8044_s0 + $0x8] sm:$0xff] }
0x201f   :  { %4644 = vxpose.xlu0.b32.start [1/4] (short) (narrow) %v4560_v42, 8  ;;  %v5000_v42 = vld [vmem:[%s8045_s29 + $0x10] sm:$0xff] }
0x2023   :  { %4645 = vxpose.xlu0.b32.cont [2/4] (short) (narrow) %v4561_v44, 8 }
0x2027   :  { %4646 = vxpose.xlu0.b32.cont [3/4] (short) (narrow) %v4562_v31, 8  ;;  %v5001_v31 = vld [vmem:[%s8045_s29 + $0x18] sm:$0xff] }
0x2028   :  { %v6650_v1 = vpack.c.bf16 %v5001_v31, %v5000_v42 }
0x202b   :  { %4647 = vxpose.xlu0.b32.end [4/4] (short) (narrow) %v4563_v2, 8  ;;  %v5002_v2 = vld [vmem:[%s8045_s29 + $0x20] sm:$0xff] }
0x2080   :  { %v4475_v43 = vpop.permute.xlu0 %4474 }
0x2081   :  { %v4477_v41 = vsub.f32 %v4393_v59, %v4475_v43  ;;  %v6640_v43 = vpack.c.bf16 %v4994_v50, %v4993_v49 }
0x2083   :  { %v4478_v62 = vmul.f32 %v4477_v41, %v4477_v41 }
0x2085   :  { %v4479_v28 = vsel %vm2791_vm5, %v4478_v62, 0.0  ;;  %v4996_v62 = vld [vmem:[%s8044_s0 + $0x18] sm:$0x3f] }
0x2086   :  { %4480 = vadd.xlane.f32.xlu1 %v4479_v28 }
0x209f   :  { %v4660_v12 = vpop.trf.xlu0 }
0x2113   :  { %v4481_v63 = vpop.xlane.xlu1 %4480 }
0x2114   :  { %v4482_v0 = vmul.f32 0.033333335, %v4481_v63  ;;  %v4998_v63 = vld [vmem:[%s8045_s29] sm:$0xff] }
0x2116   :  { %6264 = vmatpush3.msra.mxu0 %v4482_v0  ;;  %v4999_v0 = vld [vmem:[%s8045_s29 + $0x8] sm:$0xff] }
0x2117   :  { %6266 = vmatmul.mubr.msk.f32.vlgmr.msra.gmra.mrb[62].mxu0 %vm4299_vm8, %v4394_v48  ;;  %6279 = vmatprep.subr.mxu0 %v6991_v25  ;;  %v6647_v44 = vpack.c.bf16 %v4999_v0, %v4998_v63 }
0x2118   :  { %6281 = vmatprep.mubr.msk.f32.mxu0 %vm6995_vm7, %v6991_v25 }
0x21ea   :  { %v4549_v5 = vpop.f32.mrb[62].mxu0 }
0x21eb   :  { %v4550_v7 = vadd.f32 1e-05, %v4549_v5  ;;  %v6267_v8 = vpop.f32.mrb[63].mxu0  ;;  %v6653_v5 = vpack.c.bf16 %v5003_v4, %v5002_v2 }
0x21ed   :  { %6789 = vrsqrt.f32 %v4550_v7 }
0x21f7   :  { %v6790_v9 = vpop.eup %6789 }
0x21f8   :  { %4556 = vperm.xlu1 %6724, %v6790_v9   ;;  %v5004_v9 = vld [vmem:[%s8045_s29 + $0x30] sm:$0xff] }
0x2277   :  { %v4557_v10 = vpop.permute.xlu1 %4556 }
0x2278   :  { %v4559_v11 = vmul.f32 %v4557_v10, %v4477_v41  ;;  %v4995_v41 = vld [vmem:[%s8044_s0 + $0x10] sm:$0xff]  ;;  %v5005_v10 = vld [vmem:[%s8045_s29 + $0x38] sm:$0xf] }
0x2279   :  { %v6643_v28 = vpack.c.bf16 %v4996_v62, %v4995_v41 }
0x227a   :  { %6277 = vmatmul.mubr.msk.f32.vlgmr.msra.gmra.mrb[86].mxu1 %vm2791_vm5, %v4559_v11  ;;  %6280 = vmatpush3.xpose.msk.msra.mxu0 %vm2791_vm5, %v4559_v11 }
0x227b   :  { %6284 = vmatprep.subr.mxu0 %v6991_v25  ;;  %6291 = vmatprep.mubr.msk.f32.mxu1 %vm6995_vm7, %v6991_v25 }
0x227d   :  { %6282 = vmatmul.mubr.msk.f32.vlgmr.msra.gmra.mrb[64].mxu0 %vm2791_vm5, %v4660_v12  ;;  %v4997_v12 = vld [vmem:[%s8046_s18] sm:$0xf] }
0x227e   :  { %6286 = vmatprep.mubr.msk.f32.mxu0 %vm6995_vm7, %v6991_v25 }
0x234d   :  { %v4639_v61 = vpop.f32.mrb[86].mxu1 }
0x234e   :  { %6791 = vtanh.f32 %v4639_v61  ;;  %v6278_v46 = vpop.f32.mrb[87].mxu1 }
0x2350   :  { %v4745_v14 = vpop.f32.mrb[64].mxu0 }
0x2351   :  { %v6283_v16 = vpop.f32.mrb[65].mxu0  ;;  %6793 = vtanh.f32 %v4745_v14 }
0x2352   :  { %v4992_v16 = vld [vmem:[%s8047_s22] sm:$0x3] }
0x2358   :  { %v6792_v13 = vpop.eup %6791 }
0x2359   :  { %4752 = vperm.xlu1 %6724, %v6792_v13   ;;  %6290 = vmatpush3.msra.mxu1 %v6792_v13 }
0x235a   :  { %6299 = vmatprep.subr.mxu1 %v6991_v25 }
0x235b   :  { %v6794_v40 = vpop.eup %6793 }
0x235c   :  { %v4758_v18 = vrot.slane %v6794_v40, %v7392_v55 }
0x23d8   :  { %v4753_v26 = vpop.permute.xlu1 %4752 }
0x23d9   :  { %vm4759_vm2 = vcmp.gt.f32.partialorder %v4753_v26, %v4758_v18  ;;  %vm4761_vm9 = vcmp.eq.f32.partialorder %v4753_v26, %v4758_v18  ;;  %v5007_v18 = vld [vmem:[%s7222_s30] sm:$0xff]  ;;  %v5009_v26 = vld [vmem:[%s7222_s30 + $0x10] sm:$0xff] }
0x23da   :  { %v4760_v57 = vsel %vm4759_vm2, %v4564_v52, 0.0  ;;  %v4762_v6 = vsel %vm4761_vm9, %v4565_v19, 0.0  ;;  %v5008_v52 = vld [vmem:[%s7222_s30 + $0x8] sm:$0xff] }
0x23db   :  { %v4763_v30 = vadd.f32 %v4762_v6, %v4760_v57  ;;  %v6660_v19 = vpack.c.bf16 %v5008_v52, %v5007_v18  ;;  %v5010_v57 = vld [vmem:[%s7222_s30 + $0x18] sm:$0xff]  ;;  %s6911_s30 = scalar_lea.vmem %s5512_s5, 32 }
0x23dc   :  { %v6663_v6 = vpack.c.bf16 %v5010_v57, %v5009_v26  ;;  %p6912_p12 = scmp.ne.s32.totalorder %s5512_s5, %s6911_s30  ;;  %p6917_p0 = scmp.lt.s32.totalorder %s6911_s30, %s6911_s30 }
0x23dd   :  { %6285 = vmatpush3.msra.mxu0 %v4763_v30  ;;  %v5719_v30 = vld [vmem:[#allocation8] ss:$0 sm:$0xff] }
0x23de   :  { %6287 = vmatmul.mubr.msk.f32.vlgmr.msra.gmra.mrb[66].mxu0 %vm4299_vm8, %v6992_v17  ;;  %6294 = vmatprep.subr.mxu0 %v6991_v25  ;;  %p6918_p1 = por %p6917_p0, %p6916_p13 }
0x23df   :  { %6295 = vmatpush3.msra.mxu0 %v4559_v11  ;;  %6296 = vmatprep.mubr.msk.f32.mxu0 %vm6995_vm7, %v6991_v25  ;;  %v6656_v11 = vpack.c.bf16 %v5005_v10, %v5004_v9 }
0x23e0   :  { %6304 = vmatprep.subr.mxu0 %v6991_v25  ;;  %p6919_p2 = pnand %p6918_p1, %p6912_p12 }
0x24b1   :  { %v4832_v37 = vpop.f32.mrb[66].mxu0 }
0x24b2   :  { %v4839_v20 = vrot.slane %v4832_v37, %v7392_v55  ;;  %v6288_v21 = vpop.f32.mrb[67].mxu0 }
0x24b4   :  { %vm4840_vm10 = vcmp.eq.f32.partialorder %v4839_v20, %v4566_v3 }
0x24b5   :  { %v4841_v22 = vsel %vm4840_vm10, 1.0, %v6991_v25 }
0x24b6   :  { %6292 = vmatmul.mubr.msk.f32.vlgmr.msra.gmra.mrb[88].mxu1 %vm4299_vm8, %v4841_v22  ;;  %6297 = vmatmul.mubr.msk.f32.vlgmr.msra.gmra.mrb[68].mxu0 %vm4299_vm8, %v4841_v22 }
0x24b7   :  { %6301 = vmatprep.mubr.msk.f32.mxu1 %vm6995_vm7, %v6991_v25  ;;  %6306 = vmatprep.mubr.msk.f32.mxu0 %vm6995_vm7, %v6991_v25 }
0x2589   :  { %v4911_v17 = vpop.f32.mrb[88].mxu1  ;;  %v4981_v23 = vpop.f32.mrb[68].mxu0 }
0x258a   :  { %4987 = vperm.xlu1 %6724, %v4911_v17   ;;  %v6293_v27 = vpop.f32.mrb[89].mxu1  ;;  %v6298_v55 = vpop.f32.mrb[69].mxu0  ;;  %v5722_v17 = vld [vmem:[#allocation10] ss:$0 sm:$0xff] }
0x2609   :  { %v4988_v24 = vpop.permute.xlu1 %4987 }
0x260a   :  { %v4990_v36 = vmul.f32 %v4988_v24, %v4981_v23 }
0x260c   :  { %v5013_v38 = vsel %vm5012_vm3, %v4990_v36, 0.0 }
0x260d   :  { %5014 = vadd.xlane.f32.xlu1 %v5013_v38 }
0x269a   :  { %v5015_v39 = vpop.xlane.xlu1 %5014 }
0x269b   :  { %v5016_v45 = vmul.f32 0.033333335, %v5015_v39 }
0x269d   :  { %6300 = vmatpush3.msk.msra.mxu1 %vm374_vm0, %v5016_v45 }
0x269e   :  { %6302 = vmatmul.mubr.msk.f32.vlgmr.msra.gmra.mrb[90].mxu1 %vm361_vm1, %v4991_v47  ;;  %6639 = vmatprep.subr.bf16.mxu1 %v6993_v34 }
0x269f   :  { %6317 = vmatprep.mubr.msk.f32.mxu1 %vm6995_vm7, %v6991_v25  ;;  %6641 = vmatpush3.bf16.msra.mxu1 %v6640_v43 }
0x26a0   :  { %6642 = vmatprep.subr.bf16.mxu1 %v6993_v34 }
0x26a3   :  { %6645 = vmatpush3.bf16.msk.msra.mxu1 %vm7716_vm15, %v6643_v28  ;;  %vm6657_vm15 = vmpackc.low %vm374_vm0, %vm6997_vm14 }
0x26a4   :  { %6339 = vmatprep.subr.mxu1 %v6991_v25 }
0x2771   :  { %v5089_v51 = vpop.f32.mrb[90].mxu1 }
0x2772   :  { %v5093_v53 = vmul.f32 0.5, %v5089_v51  ;;  %v6303_v32 = vpop.f32.mrb[91].mxu1 }
0x2774   :  { %5096 = vperm.xlu0 %6723, %v5093_v53  }
0x27f3   :  { %v5097_v54 = vpop.permute.xlu0 %5096 }
0x27f4   :  { %v5099_v56 = vsub.f32 %v4990_v36, %v5097_v54 }
0x27f6   :  { %v5100_v33 = vmul.f32 %v5099_v56, %v5099_v56 }
0x27f8   :  { %v5101_v58 = vsel %vm5012_vm3, %v5100_v33, 0.0 }
0x27f9   :  { %5102 = vadd.xlane.f32.xlu1 %v5101_v58 }
0x2886   :  { %v5103_v59 = vpop.xlane.xlu1 %5102 }
0x2887   :  { %6305 = vmatpush3.msk.msra.mxu0 %vm374_vm0, %v5103_v59 }
0x2888   :  { %6307 = vmatmul.mubr.msk.f32.vlgmr.msra.gmra.mrb[70].mxu0 %vm361_vm1, %v4991_v47  ;;  %6646 = vmatprep.subr.bf16.mxu0 %v6993_v34 }
0x2889   :  { %6336 = vmatprep.mubr.msk.f32.mxu0 %vm6995_vm7, %v6991_v25  ;;  %6648 = vmatpush3.bf16.msra.mxu0 %v6647_v44 }
0x288a   :  { %6649 = vmatprep.subr.bf16.mxu0 %v6993_v34 }
0x288d   :  { %6651 = vmatpush3.bf16.msra.mxu0 %v6650_v1 }
0x288e   :  { %6652 = vmatprep.subr.bf16.mxu0 %v6993_v34 }
0x2891   :  { %6654 = vmatpush3.bf16.msra.mxu0 %v6653_v5 }
0x2892   :  { %6655 = vmatprep.subr.bf16.mxu0 %v6993_v34 }
0x2895   :  { %6658 = vmatpush3.bf16.msk.msra.mxu0 %vm6657_vm15, %v6656_v11 }
0x295b   :  { %v5173_v60 = vpop.f32.mrb[70].mxu0 }
0x295c   :  { %v5177_v29 = vmul.f32 0.016949153, %v5173_v60  ;;  %v6308_v35 = vpop.f32.mrb[71].mxu0 }
0x295e   :  { %v5178_v48 = vadd.f32 1e-10, %v5177_v29 }
0x2960   :  { %5181 = vperm.xlu1 %6724, %v5178_v48  }
0x29df   :  { %v5182_v15 = vpop.permute.xlu1 %5181 }
0x29e0   :  { %6795 = vrcp.f32 %v5182_v15 }
0x29ea   :  { %v6796_v7 = vpop.eup %6795 }
0x29eb   :  { %v5185_v8 = vmul.f32 %v6796_v7, %v5099_v56 }
0x29ed   :  { %6318 = vmatmul.mubr.msk.f32.vlgmr.msra.gmra.mrb[92].mxu1 %vm2791_vm5, %v5185_v8 }
0x29ee   :  { %6341 = vmatprep.mubr.msk.f32.mxu1 %vm6995_vm7, %v6991_v25 }
0x2ac0   :  { %v5258_v61 = vpop.f32.mrb[92].mxu1 }
0x2ac1   :  { %v5262_v46 = vmul.f32 %v5258_v61, %v4997_v12  ;;  %v6319_v14 = vpop.f32.mrb[93].mxu1 }
0x2ac3   :  { %6337 = vmatmul.mubr.msk.f32.vlgmr.msra.gmra.mrb[72].mxu0 %vm5263_vm11, %v5262_v46 }
0x2b96   :  { %v5336_v13 = vpop.f32.mrb[72].mxu0 }
0x2b97   :  { %v6338_v40 = vpop.f32.mrb[73].mxu0  ;;  %6340 = vmatpush3.msk.msra.mxu1 %vm374_vm0, %v5336_v13  ;;  %vm5503_vm0 = vcmask 17408  }
0x2b98   :  { %6342 = vmatmul.mubr.msk.f32.vlgmr.msra.gmra.mrb[94].mxu1 %vm361_vm1, %v4992_v16  ;;  %6659 = vmatprep.subr.bf16.mxu1 %v6993_v34 }
0x2b99   :  { %6352 = vmatprep.mubr.msk.f32.mxu1 %vm6995_vm7, %v6991_v25  ;;  %6661 = vmatpush3.bf16.msra.mxu1 %v6660_v19 }
0x2b9a   :  { %6662 = vmatprep.subr.bf16.mxu1 %v6993_v34 }
0x2b9d   :  { %6664 = vmatpush3.bf16.msra.mxu1 %v6663_v6 }
0x2c6b   :  { %v5418_v3 = vpop.f32.mrb[94].mxu1 }
0x2c6c   :  { %v5419_v37 = vadd.f32 %v5719_v30, %v5418_v3  ;;  %v6343_v20 = vpop.f32.mrb[95].mxu1 }
0x2c6e   :  { %v5422_v21 = vmul.f32 0.01, %v5419_v37 }
0x2c70   :  { %v5423_v22 = vmax.f32 %v5419_v37, %v5422_v21 }
0x2c72   :  { %6353 = vmatmul.mubr.msk.f32.vlgmr.msra.gmra.mrb[96].mxu1 %vm580_vm4, %v5423_v22 }
0x2d45   :  { %v5499_v25 = vpop.f32.mrb[96].mxu1 }
0x2d46   :  { %v5500_v23 = vadd.f32 %v5722_v17, %v5499_v25  ;;  %v6354_v27 = vpop.f32.mrb[97].mxu1 }
0x2d48   :  { %5504 = vst.msk [vmem:[#allocation11] sm:$0x3] %vm5503_vm0, %v5500_v23 }
0x2d49   :  { %6922 = shalt.err (!%p6919_p2)
}
0x2d4a   :  { %s6923_s13 = scalar_lea.hbm %s7232_s6, 32 }
0x2d4b   :  { %p6924_p3 = scmp.ne.s32.totalorder %s7232_s6, %s6923_s13  ;;  %p6927_p4 = scmp.lt.u32.totalorder %s6923_s13, %s7232_s6 }
0x2d4d   :  { %p6929_p5 = pnand %p6927_p4, %p6924_p3 }
0x2d4f   :  { %6932 = shalt.err (!%p6929_p5)
}
0x2d50   :  { %5514 = dma.vmem_to_hbm [thread:$0]  %s5512_s5, 32, %s7232_s6, [#allocation4]  }
0x2d51   :  { %6939 = dma.done.wait [#allocation4], 32  }
0x2d52   :  { %6940 = vsyncadd [#allocation4], 4294967264 }
0x2d53   :  { %5518 = vsyncpa [#allocation3], 1 }
0x2d54   :  { %5519 = vsyncpa [#allocation6], 1 }
0x2d55   :  { %5520 = vsyncpa [#allocation9], 1 }
0x2d56   :  { %5521 = vsyncpa [#allocation4], 1 }

</bundles_post_ra>
